<compile_context>
chip_gen: v7x
topology: tpu7x:2x2x1
jax: 0.10.0
libtpu: 0.0.40
codegen_flags: <defaults>
</compile_context>

<pallas_src>
import jax
import jax.numpy as jnp
from jax import lax
from jax.experimental import pallas as pl
from jax.experimental.pallas import tpu as pltpu

EPS = 1e-6
NEG_INF = -1e9


def _make_kernel(S, D, H, DFF):
    DK = D // H

    def kernel(x_ref, mask_ref,
               wqkv_ref, bqkv_ref, wo_ref, vecs_ref,
               w1_ref, b1_ref, w2_ref,
               o_ref):
        x = x_ref[0].astype(jnp.float32)              # (S, D)
        vecs = vecs_ref[...]                          # (6, D) f32, packed params
        ln1_g, ln1_b = vecs[0:1], vecs[1:2]
        ln2_g, ln2_b = vecs[2:3], vecs[3:4]
        bo, b2 = vecs[4:5], vecs[5:6]

        def layer_norm(v, g, b):
            mu = jnp.mean(v, axis=-1, keepdims=True)
            diff = v - mu
            # torch.Tensor.std default is unbiased (ddof=1).
            var = jnp.sum(diff * diff, axis=-1, keepdims=True) * (1.0 / (D - 1))
            inv = pl.reciprocal(jnp.sqrt(var) + EPS)  # EUP reciprocal (exact)
            return g * (diff * inv) + b

        # Additive key mask, materialised ONCE and shared by every head. (S, S)
        mask_full = jnp.broadcast_to(
            jnp.where(mask_ref[0] == 0.0, NEG_INF, 0.0).astype(jnp.float32),
            (S, S))

        # ---- sublayer 0: pre-norm self-attention + residual ----
        h_bf = layer_norm(x, ln1_g, ln1_b).astype(jnp.bfloat16)

        def head_body(hh, acc):
            # Fused Q|K|V projection for head hh (1/sqrt(DK) already folded
            # into the Q slice of the weights/bias on the host).
            qkv = jnp.dot(h_bf, wqkv_ref[hh],
                          preferred_element_type=jnp.float32) + bqkv_ref[hh]   # (S, 3*DK)
            qh = qkv[:, :DK].astype(jnp.bfloat16)
            kh = qkv[:, DK:2 * DK].astype(jnp.bfloat16)
            vh = qkv[:, 2 * DK:].astype(jnp.bfloat16)

            scores = jnp.einsum("qd,kd->qk", qh, kh,
                                preferred_element_type=jnp.float32) + mask_full  # (S, S)
            m = jnp.max(scores, axis=-1, keepdims=True)
            e = jnp.exp(scores - m)
            p = e * pl.reciprocal(jnp.sum(e, axis=-1, keepdims=True), approx=True)

            ctx = jnp.dot(p.astype(jnp.bfloat16), vh,
                          preferred_element_type=jnp.float32)                    # (S, DK)
            # Head concat folded into the output projection (sublane slice of wo).
            return acc + jnp.dot(ctx.astype(jnp.bfloat16), wo_ref[hh],
                                 preferred_element_type=jnp.float32)             # (S, D)

        # Carry starts at x + bo: residual and output-projection bias are
        # folded into the accumulator init (no zero-fill, no extra add).
        x1 = lax.fori_loop(0, H, head_body, x + bo)

        # ---- sublayer 1: pre-norm feed-forward + residual ----
        h2 = layer_norm(x1, ln2_g, ln2_b)
        ff = jnp.dot(h2.astype(jnp.bfloat16), w1_ref[...],
                     preferred_element_type=jnp.float32) + b1_ref[...]
        ff = jnp.maximum(ff, 0.0)
        ff = jnp.dot(ff.astype(jnp.bfloat16), w2_ref[...],
                     preferred_element_type=jnp.float32)

        o_ref[0] = (x1 + ff + b2).astype(o_ref.dtype)

    return kernel


def encoder_layer(x, mask, params, *, heads, single_buffer_weights=True):
    B, S, D = x.shape
    H = heads
    DK = D // H
    DFF = params["w1"].shape[1]
    kernel = _make_kernel(S, D, H, DFF)

    bf16 = jnp.bfloat16
    f32 = jnp.float32
    inv_sqrt_dk = 1.0 / float(DK) ** 0.5

    def head_major(w):                                  # (D, D) -> (H, D, DK)
        return w.reshape(D, H, DK).transpose(1, 0, 2)

    # Fused per-head Q|K|V weights; 1/sqrt(DK) folded into the Q slice.
    wqkv = jnp.concatenate(
        [head_major(params["wq"]) * inv_sqrt_dk,
         head_major(params["wk"]),
         head_major(params["wv"])], axis=-1).astype(bf16)               # (H, D, 3*DK)
    bqkv = jnp.concatenate(
        [params["bq"].reshape(H, 1, DK) * inv_sqrt_dk,
         params["bk"].reshape(H, 1, DK),
         params["bv"].reshape(H, 1, DK)], axis=-1).astype(f32)          # (H, 1, 3*DK)
    wo = params["wo"].reshape(H, DK, D).astype(bf16)                    # (H, DK, D)
    # Pack the six tiny (1, D) parameters into one DMA.
    vecs = jnp.concatenate(
        [params["ln1_g"], params["ln1_b"], params["ln2_g"], params["ln2_b"],
         params["bo"], params["b2"]], axis=0).astype(f32)               # (6, D)
    w1 = params["w1"].astype(bf16)
    w2 = params["w2"].astype(bf16)
    b1 = params["b1"].astype(f32)

    def wspec(shape):
        nd = len(shape)
        idx = lambda b, _nd=nd: (0,) * _nd
        if single_buffer_weights:
            # Constant-index weights never change across the grid: one buffer.
            return pl.BlockSpec(shape, idx, pipeline_mode=pl.Buffered(1))
        return pl.BlockSpec(shape, idx)

    in_specs = [
        pl.BlockSpec((1, S, D), lambda b: (b, 0, 0)),   # x
        pl.BlockSpec((1, 1, S), lambda b: (b, 0, 0)),   # mask
        wspec((H, D, 3 * DK)),                          # fused wq|wk|wv
        wspec((H, 1, 3 * DK)),                          # fused bq|bk|bv
        wspec((H, DK, D)),                              # wo (head-major)
        wspec((6, D)),                                  # packed ln/bias vectors
        wspec((D, DFF)), wspec((1, DFF)),               # w1, b1
        wspec((DFF, D)),                                # w2
    ]

    flops_per_batch = (
        2 * S * D * 3 * D       # fused q/k/v projections
        + 4 * S * S * D         # scores + p@v across heads
        + 2 * S * D * D         # output projection
        + 4 * S * D * DFF       # feed-forward
    )
    bytes_weights = 2 * (4 * D * D + 2 * D * DFF)       # bf16 weights
    cost = pl.CostEstimate(
        flops=B * flops_per_batch,
        transcendentals=B * H * S * S,
        bytes_accessed=2 * B * S * D * 4 + B * S * 4 + bytes_weights,
    )

    return pl.pallas_call(
        kernel,
        out_shape=jax.ShapeDtypeStruct((B, S, D), x.dtype),
        grid=(B,),
        in_specs=in_specs,
        out_specs=pl.BlockSpec((1, S, D), lambda b: (b, 0, 0)),
        compiler_params=pltpu.CompilerParams(
            dimension_semantics=("parallel",),
            vmem_limit_bytes=32 * 1024 * 1024,
        ),
        cost_estimate=cost,
    )(x, mask, wqkv, bqkv, wo, vecs, w1, b1, w2)


def init_params(key, D, DFF):
    ks = jax.random.split(key, 6)
    scale = 0.05

    def lin(k, fan_in, fan_out):
        return scale * jax.random.normal(k, (fan_in, fan_out), jnp.float32)

    return {
        "wq": lin(ks[0], D, D), "bq": jnp.zeros((1, D), jnp.float32),
        "wk": lin(ks[1], D, D), "bk": jnp.zeros((1, D), jnp.float32),
        "wv": lin(ks[2], D, D), "bv": jnp.zeros((1, D), jnp.float32),
        "wo": lin(ks[3], D, D), "bo": jnp.zeros((1, D), jnp.float32),
        "ln1_g": jnp.ones((1, D), jnp.float32), "ln1_b": jnp.zeros((1, D), jnp.float32),
        "ln2_g": jnp.ones((1, D), jnp.float32), "ln2_b": jnp.zeros((1, D), jnp.float32),
        "w1": lin(ks[4], D, DFF), "b1": jnp.zeros((1, DFF), jnp.float32),
        "w2": lin(ks[5], DFF, D), "b2": jnp.zeros((1, D), jnp.float32),
    }


if __name__ == "__main__":
    # Lane-dense but small shapes: D is a multiple of 128 so loads, stores and
    # MXU operands are full-width.
    B, S, D, H, DFF = 2, 128, 128, 4, 256

    key = jax.random.PRNGKey(0)
    kx, kp = jax.random.split(key)
    x = jax.random.normal(kx, (B, S, D), jnp.float32)

    # mask: keep everything for batch 0; mask out last 16 key positions for batch 1.
    mask = jnp.ones((B, 1, S), jnp.float32)
    mask = mask.at[1, 0, -16:].set(0.0)

    params = init_params(kp, D, DFF)

    try:
        out = encoder_layer(x, mask, params, heads=H, single_buffer_weights=True)
    except Exception:
        # The only config delta is pipeline_mode=pl.Buffered(1) on the constant
        # weight specs; fall back to default double-buffering if this jax build
        # rejects it.  Genuine kernel bugs will fail identically on both paths.
        out = encoder_layer(x, mask, params, heads=H, single_buffer_weights=False)

    jax.block_until_ready(out)
    assert out.shape == (B, S, D)
    assert bool(jnp.all(jnp.isfinite(out)))
    print("KERNEL_OK")
</pallas_src>

<mosaic_0001>
module attributes {stable_mosaic.version = 11 : i64} {
  func.func @kernel(%arg0: i32, %arg1: memref<1x128x128xf32, #tpu.memory_space<vmem>>, %arg2: memref<1x1x128xf32, #tpu.memory_space<vmem>>, %arg3: memref<4x128x96xbf16, #tpu.memory_space<vmem>>, %arg4: memref<4x1x96xf32, #tpu.memory_space<vmem>>, %arg5: memref<4x32x128xbf16, #tpu.memory_space<vmem>>, %arg6: memref<6x128xf32, #tpu.memory_space<vmem>>, %arg7: memref<128x256xbf16, #tpu.memory_space<vmem>>, %arg8: memref<1x256xf32, #tpu.memory_space<vmem>>, %arg9: memref<256x128xbf16, #tpu.memory_space<vmem>>, %arg10: memref<1x128x128xf32, #tpu.memory_space<vmem>>) attributes {dimension_semantics = [#tpu.dimension_semantics<parallel>], iteration_bounds = array<i64: 2>, scalar_prefetch = 0 : i64, scratch_operands = 0 : i64, tpu.core_type = #tpu.core_type<tc>, window_params = [{transform_indices = @transform_0, window_bounds = array<i64: 1, 128, 128>}, {transform_indices = @transform_1, window_bounds = array<i64: 1, 1, 128>}, {pipeline_mode = #tpu.pipeline_mode<synchronous>, transform_indices = @transform_2, window_bounds = array<i64: 4, 128, 96>}, {pipeline_mode = #tpu.pipeline_mode<synchronous>, transform_indices = @transform_3, window_bounds = array<i64: 4, 1, 96>}, {pipeline_mode = #tpu.pipeline_mode<synchronous>, transform_indices = @transform_4, window_bounds = array<i64: 4, 32, 128>}, {pipeline_mode = #tpu.pipeline_mode<synchronous>, transform_indices = @transform_5, window_bounds = array<i64: 6, 128>}, {pipeline_mode = #tpu.pipeline_mode<synchronous>, transform_indices = @transform_6, window_bounds = array<i64: 128, 256>}, {pipeline_mode = #tpu.pipeline_mode<synchronous>, transform_indices = @transform_7, window_bounds = array<i64: 1, 256>}, {pipeline_mode = #tpu.pipeline_mode<synchronous>, transform_indices = @transform_8, window_bounds = array<i64: 256, 128>}, {transform_indices = @transform_9, window_bounds = array<i64: 1, 128, 128>}]} {
    %c0 = arith.constant 0 : index
    %c0_0 = arith.constant 0 : index
    %c0_1 = arith.constant 0 : index
    %0 = vector.load %arg1[%c0, %c0_0, %c0_1] : memref<1x128x128xf32, #tpu.memory_space<vmem>>, vector<1x128x128xf32>
    %1 = vector.shape_cast %0 : vector<1x128x128xf32> to vector<128x128xf32>
    %c0_2 = arith.constant 0 : index
    %c0_3 = arith.constant 0 : index
    %2 = vector.load %arg6[%c0_2, %c0_3] : memref<6x128xf32, #tpu.memory_space<vmem>>, vector<6x128xf32>
    %3 = vector.extract_strided_slice %2 {offsets = [0, 0], sizes = [1, 128], strides = [1, 1]} : vector<6x128xf32> to vector<1x128xf32>
    %4 = vector.extract_strided_slice %2 {offsets = [1, 0], sizes = [1, 128], strides = [1, 1]} : vector<6x128xf32> to vector<1x128xf32>
    %5 = vector.extract_strided_slice %2 {offsets = [2, 0], sizes = [1, 128], strides = [1, 1]} : vector<6x128xf32> to vector<1x128xf32>
    %6 = vector.extract_strided_slice %2 {offsets = [3, 0], sizes = [1, 128], strides = [1, 1]} : vector<6x128xf32> to vector<1x128xf32>
    %7 = vector.extract_strided_slice %2 {offsets = [4, 0], sizes = [1, 128], strides = [1, 1]} : vector<6x128xf32> to vector<1x128xf32>
    %8 = vector.extract_strided_slice %2 {offsets = [5, 0], sizes = [1, 128], strides = [1, 1]} : vector<6x128xf32> to vector<1x128xf32>
    %c0_4 = arith.constant 0 : index
    %c0_5 = arith.constant 0 : index
    %c0_6 = arith.constant 0 : index
    %9 = vector.load %arg2[%c0_4, %c0_5, %c0_6] : memref<1x1x128xf32, #tpu.memory_space<vmem>>, vector<1x1x128xf32>
    %10 = vector.shape_cast %9 : vector<1x1x128xf32> to vector<1x128xf32>
    %cst = arith.constant 0.000000e+00 : f32
    %11 = vector.broadcast %cst : f32 to vector<1x128xf32>
    %12 = arith.cmpf oeq, %10, %11 : vector<1x128xf32>
    %cst_7 = arith.constant -1.000000e+09 : f32
    %cst_8 = arith.constant 0.000000e+00 : f32
    %13 = vector.broadcast %cst_7 : f32 to vector<1x128xf32>
    %14 = vector.broadcast %cst_8 : f32 to vector<1x128xf32>
    %15 = arith.select %12, %13, %14 : vector<1x128xi1>, vector<1x128xf32>
    %16 = vector.shape_cast %15 : vector<1x128xf32> to vector<1x128xf32>
    %17 = vector.broadcast %16 : vector<1x128xf32> to vector<128x128xf32>
    %cst_9 = arith.constant dense<0.000000e+00> : vector<128xf32>
    %18 = vector.multi_reduction <add>, %1, %cst_9 [1] : vector<128x128xf32> to vector<128xf32>
    %19 = vector.shape_cast %18 : vector<128xf32> to vector<128x1xf32>
    %cst_10 = arith.constant 1.280000e+02 : f32
    %20 = vector.broadcast %cst_10 : f32 to vector<128x1xf32>
    %21 = arith.divf %19, %20 : vector<128x1xf32>
    %22 = vector.broadcast %21 : vector<128x1xf32> to vector<128x128xf32>
    %23 = arith.subf %1, %22 : vector<128x128xf32>
    %24 = arith.mulf %23, %23 : vector<128x128xf32>
    %cst_11 = arith.constant dense<0.000000e+00> : vector<128xf32>
    %25 = vector.multi_reduction <add>, %24, %cst_11 [1] : vector<128x128xf32> to vector<128xf32>
    %26 = vector.shape_cast %25 : vector<128xf32> to vector<128x1xf32>
    %cst_12 = arith.constant 0.00787401571 : f32
    %27 = vector.broadcast %cst_12 : f32 to vector<128x1xf32>
    %28 = arith.mulf %26, %27 : vector<128x1xf32>
    %29 = math.sqrt %28 : vector<128x1xf32>
    %cst_13 = arith.constant 9.99999997E-7 : f32
    %30 = vector.broadcast %cst_13 : f32 to vector<128x1xf32>
    %31 = arith.addf %29, %30 : vector<128x1xf32>
    %32 = tpu.reciprocal %31 : vector<128x1xf32> -> vector<128x1xf32>
    %33 = vector.broadcast %32 : vector<128x1xf32> to vector<128x128xf32>
    %34 = arith.mulf %23, %33 : vector<128x128xf32>
    %35 = vector.broadcast %3 : vector<1x128xf32> to vector<128x128xf32>
    %36 = arith.mulf %35, %34 : vector<128x128xf32>
    %37 = vector.broadcast %4 : vector<1x128xf32> to vector<128x128xf32>
    %38 = arith.addf %36, %37 : vector<128x128xf32>
    %39 = arith.truncf %38 : vector<128x128xf32> to vector<128x128xbf16>
    %40 = vector.broadcast %7 : vector<1x128xf32> to vector<128x128xf32>
    %41 = arith.addf %1, %40 : vector<128x128xf32>
    %c0_i32 = arith.constant 0 : i32
    %c4_i32 = arith.constant 4 : i32
    %42 = arith.addi %c0_i32, %c4_i32 : i32
    %c1_i32 = arith.constant 1 : i32
    %43 = scf.for %arg11 = %c0_i32 to %42 step %c1_i32 iter_args(%arg12 = %41) -> (vector<128x128xf32>)  : i32 {
      %82 = arith.index_cast %arg11 : i32 to index
      %c0_32 = arith.constant 0 : index
      %c0_33 = arith.constant 0 : index
      %83 = vector.load %arg3[%82, %c0_32, %c0_33] : memref<4x128x96xbf16, #tpu.memory_space<vmem>>, vector<1x128x96xbf16>
      %84 = vector.shape_cast %83 : vector<1x128x96xbf16> to vector<128x96xbf16>
      %cst_34 = arith.constant dense<0.000000e+00> : vector<128x96xf32>
      %85 = tpu.matmul %39, %84, %cst_34 {dimension_numbers = #tpu.dot_dimension_numbers<[1], [0], [0], [1], [0, 0, 1, 1], [], []>} : vector<128x128xbf16>, vector<128x96xbf16>, vector<128x96xf32> -> vector<128x96xf32>
      %86 = arith.index_cast %arg11 : i32 to index
      %c0_35 = arith.constant 0 : index
      %c0_36 = arith.constant 0 : index
      %87 = vector.load %arg4[%86, %c0_35, %c0_36] : memref<4x1x96xf32, #tpu.memory_space<vmem>>, vector<1x1x96xf32>
      %88 = vector.shape_cast %87 : vector<1x1x96xf32> to vector<1x96xf32>
      %89 = vector.broadcast %88 : vector<1x96xf32> to vector<128x96xf32>
      %90 = arith.addf %85, %89 : vector<128x96xf32>
      %91 = vector.extract_strided_slice %90 {offsets = [0, 0], sizes = [128, 32], strides = [1, 1]} : vector<128x96xf32> to vector<128x32xf32>
      %92 = arith.truncf %91 : vector<128x32xf32> to vector<128x32xbf16>
      %93 = vector.extract_strided_slice %90 {offsets = [0, 32], sizes = [128, 32], strides = [1, 1]} : vector<128x96xf32> to vector<128x32xf32>
      %94 = arith.truncf %93 : vector<128x32xf32> to vector<128x32xbf16>
      %95 = vector.extract_strided_slice %90 {offsets = [0, 64], sizes = [128, 32], strides = [1, 1]} : vector<128x96xf32> to vector<128x32xf32>
      %96 = arith.truncf %95 : vector<128x32xf32> to vector<128x32xbf16>
      "tpu.trace_start"() <{level = 10 : i32, message = "qd,kd->qk"}> : () -> ()
      %cst_37 = arith.constant dense<0.000000e+00> : vector<128x128xf32>
      %97 = tpu.matmul %92, %94, %cst_37 {dimension_numbers = #tpu.dot_dimension_numbers<[1], [1], [0], [0], [0, 0, 1, 0], [], []>} : vector<128x32xbf16>, vector<128x32xbf16>, vector<128x128xf32> -> vector<128x128xf32>
      "tpu.trace_stop"() : () -> ()
      %98 = arith.addf %97, %17 : vector<128x128xf32>
      %cst_38 = arith.constant dense<0xFF800000> : vector<128xf32>
      %99 = vector.multi_reduction <maximumf>, %98, %cst_38 [1] : vector<128x128xf32> to vector<128xf32>
      %100 = vector.shape_cast %99 : vector<128xf32> to vector<128x1xf32>
      %101 = vector.broadcast %100 : vector<128x1xf32> to vector<128x128xf32>
      %102 = arith.subf %98, %101 : vector<128x128xf32>
      %103 = math.exp %102 : vector<128x128xf32>
      %cst_39 = arith.constant dense<0.000000e+00> : vector<128xf32>
      %104 = vector.multi_reduction <add>, %103, %cst_39 [1] : vector<128x128xf32> to vector<128xf32>
      %105 = vector.shape_cast %104 : vector<128xf32> to vector<128x1xf32>
      %106 = tpu.reciprocal %105 {approx = true} : vector<128x1xf32> -> vector<128x1xf32>
      %107 = vector.broadcast %106 : vector<128x1xf32> to vector<128x128xf32>
      %108 = arith.mulf %103, %107 : vector<128x128xf32>
      %109 = arith.truncf %108 : vector<128x128xf32> to vector<128x128xbf16>
      %cst_40 = arith.constant dense<0.000000e+00> : vector<128x32xf32>
      %110 = tpu.matmul %109, %96, %cst_40 {dimension_numbers = #tpu.dot_dimension_numbers<[1], [0], [0], [1], [0, 0, 1, 1], [], []>} : vector<128x128xbf16>, vector<128x32xbf16>, vector<128x32xf32> -> vector<128x32xf32>
      %111 = arith.truncf %110 : vector<128x32xf32> to vector<128x32xbf16>
      %112 = arith.index_cast %arg11 : i32 to index
      %c0_41 = arith.constant 0 : index
      %c0_42 = arith.constant 0 : index
      %113 = vector.load %arg5[%112, %c0_41, %c0_42] : memref<4x32x128xbf16, #tpu.memory_space<vmem>>, vector<1x32x128xbf16>
      %114 = vector.shape_cast %113 : vector<1x32x128xbf16> to vector<32x128xbf16>
      %cst_43 = arith.constant dense<0.000000e+00> : vector<128x128xf32>
      %115 = tpu.matmul %111, %114, %cst_43 {dimension_numbers = #tpu.dot_dimension_numbers<[1], [0], [0], [1], [0, 0, 1, 1], [], []>} : vector<128x32xbf16>, vector<32x128xbf16>, vector<128x128xf32> -> vector<128x128xf32>
      %116 = arith.addf %arg12, %115 : vector<128x128xf32>
      scf.yield %116 : vector<128x128xf32>
    }
    %c4_i32_14 = arith.constant 4 : i32
    %cst_15 = arith.constant dense<0.000000e+00> : vector<128xf32>
    %44 = vector.multi_reduction <add>, %43, %cst_15 [1] : vector<128x128xf32> to vector<128xf32>
    %45 = vector.shape_cast %44 : vector<128xf32> to vector<128x1xf32>
    %cst_16 = arith.constant 1.280000e+02 : f32
    %46 = vector.broadcast %cst_16 : f32 to vector<128x1xf32>
    %47 = arith.divf %45, %46 : vector<128x1xf32>
    %48 = vector.broadcast %47 : vector<128x1xf32> to vector<128x128xf32>
    %49 = arith.subf %43, %48 : vector<128x128xf32>
    %50 = arith.mulf %49, %49 : vector<128x128xf32>
    %cst_17 = arith.constant dense<0.000000e+00> : vector<128xf32>
    %51 = vector.multi_reduction <add>, %50, %cst_17 [1] : vector<128x128xf32> to vector<128xf32>
    %52 = vector.shape_cast %51 : vector<128xf32> to vector<128x1xf32>
    %cst_18 = arith.constant 0.00787401571 : f32
    %53 = vector.broadcast %cst_18 : f32 to vector<128x1xf32>
    %54 = arith.mulf %52, %53 : vector<128x1xf32>
    %55 = math.sqrt %54 : vector<128x1xf32>
    %cst_19 = arith.constant 9.99999997E-7 : f32
    %56 = vector.broadcast %cst_19 : f32 to vector<128x1xf32>
    %57 = arith.addf %55, %56 : vector<128x1xf32>
    %58 = tpu.reciprocal %57 : vector<128x1xf32> -> vector<128x1xf32>
    %59 = vector.broadcast %58 : vector<128x1xf32> to vector<128x128xf32>
    %60 = arith.mulf %49, %59 : vector<128x128xf32>
    %61 = vector.broadcast %5 : vector<1x128xf32> to vector<128x128xf32>
    %62 = arith.mulf %61, %60 : vector<128x128xf32>
    %63 = vector.broadcast %6 : vector<1x128xf32> to vector<128x128xf32>
    %64 = arith.addf %62, %63 : vector<128x128xf32>
    %65 = arith.truncf %64 : vector<128x128xf32> to vector<128x128xbf16>
    %c0_20 = arith.constant 0 : index
    %c0_21 = arith.constant 0 : index
    %66 = vector.load %arg7[%c0_20, %c0_21] : memref<128x256xbf16, #tpu.memory_space<vmem>>, vector<128x256xbf16>
    %cst_22 = arith.constant dense<0.000000e+00> : vector<128x256xf32>
    %67 = tpu.matmul %65, %66, %cst_22 {dimension_numbers = #tpu.dot_dimension_numbers<[1], [0], [0], [1], [0, 0, 1, 1], [], []>} : vector<128x128xbf16>, vector<128x256xbf16>, vector<128x256xf32> -> vector<128x256xf32>
    %c0_23 = arith.constant 0 : index
    %c0_24 = arith.constant 0 : index
    %68 = vector.load %arg8[%c0_23, %c0_24] : memref<1x256xf32, #tpu.memory_space<vmem>>, vector<1x256xf32>
    %69 = vector.broadcast %68 : vector<1x256xf32> to vector<128x256xf32>
    %70 = arith.addf %67, %69 : vector<128x256xf32>
    %cst_25 = arith.constant 0.000000e+00 : f32
    %71 = vector.broadcast %cst_25 : f32 to vector<128x256xf32>
    %72 = arith.maximumf %70, %71 : vector<128x256xf32>
    %73 = arith.truncf %72 : vector<128x256xf32> to vector<128x256xbf16>
    %c0_26 = arith.constant 0 : index
    %c0_27 = arith.constant 0 : index
    %74 = vector.load %arg9[%c0_26, %c0_27] : memref<256x128xbf16, #tpu.memory_space<vmem>>, vector<256x128xbf16>
    %cst_28 = arith.constant dense<0.000000e+00> : vector<128x128xf32>
    %75 = tpu.matmul %73, %74, %cst_28 {dimension_numbers = #tpu.dot_dimension_numbers<[1], [0], [0], [1], [0, 0, 1, 1], [], []>} : vector<128x256xbf16>, vector<256x128xbf16>, vector<128x128xf32> -> vector<128x128xf32>
    %76 = arith.addf %43, %75 : vector<128x128xf32>
    %77 = vector.broadcast %8 : vector<1x128xf32> to vector<128x128xf32>
    %78 = arith.addf %76, %77 : vector<128x128xf32>
    %c0_29 = arith.constant 0 : index
    %c0_30 = arith.constant 0 : index
    %c0_31 = arith.constant 0 : index
    %79 = vector.load %arg10[%c0_29, %c0_30, %c0_31] : memref<1x128x128xf32, #tpu.memory_space<vmem>>, vector<1x128x128xf32>
    %80 = vector.shape_cast %79 : vector<1x128x128xf32> to vector<128x128xf32>
    %81 = vector.shape_cast %78 : vector<128x128xf32> to vector<1x128x128xf32>
    tpu.vector_store %arg10[%c0_29, %c0_30, %c0_31], %81 {strides = array<i32>} : memref<1x128x128xf32, #tpu.memory_space<vmem>>, vector<1x128x128xf32>,
    return
  }
  func.func @transform_0(%arg0: i32) -> (i32, i32, i32) {
    %c0_i32 = arith.constant 0 : i32
    %c0_i32_0 = arith.constant 0 : i32
    %c0_i32_1 = arith.constant 0 : i32
    return %arg0, %c0_i32, %c0_i32_0 : i32, i32, i32
  }
  func.func @transform_1(%arg0: i32) -> (i32, i32, i32) {
    %c0_i32 = arith.constant 0 : i32
    %c0_i32_0 = arith.constant 0 : i32
    %c0_i32_1 = arith.constant 0 : i32
    return %arg0, %c0_i32, %c0_i32_0 : i32, i32, i32
  }
  func.func @transform_2(%arg0: i32) -> (i32, i32, i32) {
    %c0_i32 = arith.constant 0 : i32
    %c0_i32_0 = arith.constant 0 : i32
    %c0_i32_1 = arith.constant 0 : i32
    %c0_i32_2 = arith.constant 0 : i32
    return %c0_i32, %c0_i32_0, %c0_i32_1 : i32, i32, i32
  }
  func.func @transform_3(%arg0: i32) -> (i32, i32, i32) {
    %c0_i32 = arith.constant 0 : i32
    %c0_i32_0 = arith.constant 0 : i32
    %c0_i32_1 = arith.constant 0 : i32
    %c0_i32_2 = arith.constant 0 : i32
    return %c0_i32, %c0_i32_0, %c0_i32_1 : i32, i32, i32
  }
  func.func @transform_4(%arg0: i32) -> (i32, i32, i32) {
    %c0_i32 = arith.constant 0 : i32
    %c0_i32_0 = arith.constant 0 : i32
    %c0_i32_1 = arith.constant 0 : i32
    %c0_i32_2 = arith.constant 0 : i32
    return %c0_i32, %c0_i32_0, %c0_i32_1 : i32, i32, i32
  }
  func.func @transform_5(%arg0: i32) -> (i32, i32) {
    %c0_i32 = arith.constant 0 : i32
    %c0_i32_0 = arith.constant 0 : i32
    %c0_i32_1 = arith.constant 0 : i32
    return %c0_i32, %c0_i32_0 : i32, i32
  }
  func.func @transform_6(%arg0: i32) -> (i32, i32) {
    %c0_i32 = arith.constant 0 : i32
    %c0_i32_0 = arith.constant 0 : i32
    %c0_i32_1 = arith.constant 0 : i32
    return %c0_i32, %c0_i32_0 : i32, i32
  }
  func.func @transform_7(%arg0: i32) -> (i32, i32) {
    %c0_i32 = arith.constant 0 : i32
    %c0_i32_0 = arith.constant 0 : i32
    %c0_i32_1 = arith.constant 0 : i32
    return %c0_i32, %c0_i32_0 : i32, i32
  }
  func.func @transform_8(%arg0: i32) -> (i32, i32) {
    %c0_i32 = arith.constant 0 : i32
    %c0_i32_0 = arith.constant 0 : i32
    %c0_i32_1 = arith.constant 0 : i32
    return %c0_i32, %c0_i32_0 : i32, i32
  }
  func.func @transform_9(%arg0: i32) -> (i32, i32, i32) {
    %c0_i32 = arith.constant 0 : i32
    %c0_i32_0 = arith.constant 0 : i32
    %c0_i32_1 = arith.constant 0 : i32
    return %arg0, %c0_i32, %c0_i32_0 : i32, i32, i32
  }
}

module attributes {stable_mosaic.version = 11 : i64} {
  func.func @kernel(%arg0: i32, %arg1: memref<1x128x128xf32, #tpu.memory_space<vmem>>, %arg2: memref<1x1x128xf32, #tpu.memory_space<vmem>>, %arg3: memref<4x128x96xbf16, #tpu.memory_space<vmem>>, %arg4: memref<4x1x96xf32, #tpu.memory_space<vmem>>, %arg5: memref<4x32x128xbf16, #tpu.memory_space<vmem>>, %arg6: memref<6x128xf32, #tpu.memory_space<vmem>>, %arg7: memref<128x256xbf16, #tpu.memory_space<vmem>>, %arg8: memref<1x256xf32, #tpu.memory_space<vmem>>, %arg9: memref<256x128xbf16, #tpu.memory_space<vmem>>, %arg10: memref<1x128x128xf32, #tpu.memory_space<vmem>>) attributes {dimension_semantics = [#tpu.dimension_semantics<parallel>], iteration_bounds = array<i64: 2>, scalar_prefetch = 0 : i64, scratch_operands = 0 : i64, tpu.core_type = #tpu.core_type<tc>, window_params = [{transform_indices = @transform_0, window_bounds = array<i64: 1, 128, 128>}, {transform_indices = @transform_1, window_bounds = array<i64: 1, 1, 128>}, {pipeline_mode = #tpu.pipeline_mode<synchronous>, transform_indices = @transform_2, window_bounds = array<i64: 4, 128, 96>}, {pipeline_mode = #tpu.pipeline_mode<synchronous>, transform_indices = @transform_3, window_bounds = array<i64: 4, 1, 96>}, {pipeline_mode = #tpu.pipeline_mode<synchronous>, transform_indices = @transform_4, window_bounds = array<i64: 4, 32, 128>}, {pipeline_mode = #tpu.pipeline_mode<synchronous>, transform_indices = @transform_5, window_bounds = array<i64: 6, 128>}, {pipeline_mode = #tpu.pipeline_mode<synchronous>, transform_indices = @transform_6, window_bounds = array<i64: 128, 256>}, {pipeline_mode = #tpu.pipeline_mode<synchronous>, transform_indices = @transform_7, window_bounds = array<i64: 1, 256>}, {pipeline_mode = #tpu.pipeline_mode<synchronous>, transform_indices = @transform_8, window_bounds = array<i64: 256, 128>}, {transform_indices = @transform_9, window_bounds = array<i64: 1, 128, 128>}]} {
    %c0 = arith.constant 0 : index
    %c0_0 = arith.constant 0 : index
    %c0_1 = arith.constant 0 : index
    %0 = vector.load %arg1[%c0, %c0_0, %c0_1] : memref<1x128x128xf32, #tpu.memory_space<vmem>>, vector<1x128x128xf32>
    %1 = vector.shape_cast %0 : vector<1x128x128xf32> to vector<128x128xf32>
    %c0_2 = arith.constant 0 : index
    %c0_3 = arith.constant 0 : index
    %2 = vector.load %arg6[%c0_2, %c0_3] : memref<6x128xf32, #tpu.memory_space<vmem>>, vector<6x128xf32>
    %3 = vector.extract_strided_slice %2 {offsets = [0, 0], sizes = [1, 128], strides = [1, 1]} : vector<6x128xf32> to vector<1x128xf32>
    %4 = vector.extract_strided_slice %2 {offsets = [1, 0], sizes = [1, 128], strides = [1, 1]} : vector<6x128xf32> to vector<1x128xf32>
    %5 = vector.extract_strided_slice %2 {offsets = [2, 0], sizes = [1, 128], strides = [1, 1]} : vector<6x128xf32> to vector<1x128xf32>
    %6 = vector.extract_strided_slice %2 {offsets = [3, 0], sizes = [1, 128], strides = [1, 1]} : vector<6x128xf32> to vector<1x128xf32>
    %7 = vector.extract_strided_slice %2 {offsets = [4, 0], sizes = [1, 128], strides = [1, 1]} : vector<6x128xf32> to vector<1x128xf32>
    %8 = vector.extract_strided_slice %2 {offsets = [5, 0], sizes = [1, 128], strides = [1, 1]} : vector<6x128xf32> to vector<1x128xf32>
    %c0_4 = arith.constant 0 : index
    %c0_5 = arith.constant 0 : index
    %c0_6 = arith.constant 0 : index
    %9 = vector.load %arg2[%c0_4, %c0_5, %c0_6] : memref<1x1x128xf32, #tpu.memory_space<vmem>>, vector<1x1x128xf32>
    %10 = vector.shape_cast %9 : vector<1x1x128xf32> to vector<1x128xf32>
    %cst = arith.constant 0.000000e+00 : f32
    %11 = vector.broadcast %cst : f32 to vector<1x128xf32>
    %12 = arith.cmpf oeq, %10, %11 : vector<1x128xf32>
    %cst_7 = arith.constant -1.000000e+09 : f32
    %cst_8 = arith.constant 0.000000e+00 : f32
    %13 = vector.broadcast %cst_7 : f32 to vector<1x128xf32>
    %14 = vector.broadcast %cst_8 : f32 to vector<1x128xf32>
    %15 = arith.select %12, %13, %14 : vector<1x128xi1>, vector<1x128xf32>
    %16 = vector.shape_cast %15 : vector<1x128xf32> to vector<1x128xf32>
    %17 = vector.broadcast %16 : vector<1x128xf32> to vector<128x128xf32>
    %cst_9 = arith.constant dense<0.000000e+00> : vector<128xf32>
    %18 = vector.multi_reduction <add>, %1, %cst_9 [1] : vector<128x128xf32> to vector<128xf32>
    %19 = vector.shape_cast %18 : vector<128xf32> to vector<128x1xf32>
    %cst_10 = arith.constant 1.280000e+02 : f32
    %20 = vector.broadcast %cst_10 : f32 to vector<128x1xf32>
    %21 = arith.divf %19, %20 : vector<128x1xf32>
    %22 = vector.broadcast %21 : vector<128x1xf32> to vector<128x128xf32>
    %23 = arith.subf %1, %22 : vector<128x128xf32>
    %24 = arith.mulf %23, %23 : vector<128x128xf32>
    %cst_11 = arith.constant dense<0.000000e+00> : vector<128xf32>
    %25 = vector.multi_reduction <add>, %24, %cst_11 [1] : vector<128x128xf32> to vector<128xf32>
    %26 = vector.shape_cast %25 : vector<128xf32> to vector<128x1xf32>
    %cst_12 = arith.constant 0.00787401571 : f32
    %27 = vector.broadcast %cst_12 : f32 to vector<128x1xf32>
    %28 = arith.mulf %26, %27 : vector<128x1xf32>
    %29 = math.sqrt %28 : vector<128x1xf32>
    %cst_13 = arith.constant 9.99999997E-7 : f32
    %30 = vector.broadcast %cst_13 : f32 to vector<128x1xf32>
    %31 = arith.addf %29, %30 : vector<128x1xf32>
    %32 = tpu.reciprocal %31 : vector<128x1xf32> -> vector<128x1xf32>
    %33 = vector.broadcast %32 : vector<128x1xf32> to vector<128x128xf32>
    %34 = arith.mulf %23, %33 : vector<128x128xf32>
    %35 = vector.broadcast %3 : vector<1x128xf32> to vector<128x128xf32>
    %36 = arith.mulf %35, %34 : vector<128x128xf32>
    %37 = vector.broadcast %4 : vector<1x128xf32> to vector<128x128xf32>
    %38 = arith.addf %36, %37 : vector<128x128xf32>
    %39 = arith.truncf %38 : vector<128x128xf32> to vector<128x128xbf16>
    %40 = vector.broadcast %7 : vector<1x128xf32> to vector<128x128xf32>
    %41 = arith.addf %1, %40 : vector<128x128xf32>
    %c0_i32 = arith.constant 0 : i32
    %c4_i32 = arith.constant 4 : i32
    %42 = arith.addi %c0_i32, %c4_i32 : i32
    %c1_i32 = arith.constant 1 : i32
    %43 = scf.for %arg11 = %c0_i32 to %42 step %c1_i32 iter_args(%arg12 = %41) -> (vector<128x128xf32>)  : i32 {
      %82 = arith.index_cast %arg11 : i32 to index
      %c0_32 = arith.constant 0 : index
      %c0_33 = arith.constant 0 : index
      %83 = vector.load %arg3[%82, %c0_32, %c0_33] : memref<4x128x96xbf16, #tpu.memory_space<vmem>>, vector<1x128x96xbf16>
      %84 = vector.shape_cast %83 : vector<1x128x96xbf16> to vector<128x96xbf16>
      %cst_34 = arith.constant dense<0.000000e+00> : vector<128x96xf32>
      %85 = tpu.matmul %39, %84, %cst_34 {dimension_numbers = #tpu.dot_dimension_numbers<[1], [0], [0], [1], [0, 0, 1, 1], [], []>} : vector<128x128xbf16>, vector<128x96xbf16>, vector<128x96xf32> -> vector<128x96xf32>
      %86 = arith.index_cast %arg11 : i32 to index
      %c0_35 = arith.constant 0 : index
      %c0_36 = arith.constant 0 : index
      %87 = vector.load %arg4[%86, %c0_35, %c0_36] : memref<4x1x96xf32, #tpu.memory_space<vmem>>, vector<1x1x96xf32>
      %88 = vector.shape_cast %87 : vector<1x1x96xf32> to vector<1x96xf32>
      %89 = vector.broadcast %88 : vector<1x96xf32> to vector<128x96xf32>
      %90 = arith.addf %85, %89 : vector<128x96xf32>
      %91 = vector.extract_strided_slice %90 {offsets = [0, 0], sizes = [128, 32], strides = [1, 1]} : vector<128x96xf32> to vector<128x32xf32>
      %92 = arith.truncf %91 : vector<128x32xf32> to vector<128x32xbf16>
      %93 = vector.extract_strided_slice %90 {offsets = [0, 32], sizes = [128, 32], strides = [1, 1]} : vector<128x96xf32> to vector<128x32xf32>
      %94 = arith.truncf %93 : vector<128x32xf32> to vector<128x32xbf16>
      %95 = vector.extract_strided_slice %90 {offsets = [0, 64], sizes = [128, 32], strides = [1, 1]} : vector<128x96xf32> to vector<128x32xf32>
      %96 = arith.truncf %95 : vector<128x32xf32> to vector<128x32xbf16>
      "tpu.trace_start"() <{level = 10 : i32, message = "qd,kd->qk"}> : () -> ()
      %cst_37 = arith.constant dense<0.000000e+00> : vector<128x128xf32>
      %97 = tpu.matmul %92, %94, %cst_37 {dimension_numbers = #tpu.dot_dimension_numbers<[1], [1], [0], [0], [0, 0, 1, 0], [], []>} : vector<128x32xbf16>, vector<128x32xbf16>, vector<128x128xf32> -> vector<128x128xf32>
      "tpu.trace_stop"() : () -> ()
      %98 = arith.addf %97, %17 : vector<128x128xf32>
      %cst_38 = arith.constant dense<0xFF800000> : vector<128xf32>
      %99 = vector.multi_reduction <maximumf>, %98, %cst_38 [1] : vector<128x128xf32> to vector<128xf32>
      %100 = vector.shape_cast %99 : vector<128xf32> to vector<128x1xf32>
      %101 = vector.broadcast %100 : vector<128x1xf32> to vector<128x128xf32>
      %102 = arith.subf %98, %101 : vector<128x128xf32>
      %103 = math.exp %102 : vector<128x128xf32>
      %cst_39 = arith.constant dense<0.000000e+00> : vector<128xf32>
      %104 = vector.multi_reduction <add>, %103, %cst_39 [1] : vector<128x128xf32> to vector<128xf32>
      %105 = vector.shape_cast %104 : vector<128xf32> to vector<128x1xf32>
      %106 = tpu.reciprocal %105 {approx = true} : vector<128x1xf32> -> vector<128x1xf32>
      %107 = vector.broadcast %106 : vector<128x1xf32> to vector<128x128xf32>
      %108 = arith.mulf %103, %107 : vector<128x128xf32>
      %109 = arith.truncf %108 : vector<128x128xf32> to vector<128x128xbf16>
      %cst_40 = arith.constant dense<0.000000e+00> : vector<128x32xf32>
      %110 = tpu.matmul %109, %96, %cst_40 {dimension_numbers = #tpu.dot_dimension_numbers<[1], [0], [0], [1], [0, 0, 1, 1], [], []>} : vector<128x128xbf16>, vector<128x32xbf16>, vector<128x32xf32> -> vector<128x32xf32>
      %111 = arith.truncf %110 : vector<128x32xf32> to vector<128x32xbf16>
      %112 = arith.index_cast %arg11 : i32 to index
      %c0_41 = arith.constant 0 : index
      %c0_42 = arith.constant 0 : index
      %113 = vector.load %arg5[%112, %c0_41, %c0_42] : memref<4x32x128xbf16, #tpu.memory_space<vmem>>, vector<1x32x128xbf16>
      %114 = vector.shape_cast %113 : vector<1x32x128xbf16> to vector<32x128xbf16>
      %cst_43 = arith.constant dense<0.000000e+00> : vector<128x128xf32>
      %115 = tpu.matmul %111, %114, %cst_43 {dimension_numbers = #tpu.dot_dimension_numbers<[1], [0], [0], [1], [0, 0, 1, 1], [], []>} : vector<128x32xbf16>, vector<32x128xbf16>, vector<128x128xf32> -> vector<128x128xf32>
      %116 = arith.addf %arg12, %115 : vector<128x128xf32>
      scf.yield %116 : vector<128x128xf32>
    }
    %c4_i32_14 = arith.constant 4 : i32
    %cst_15 = arith.constant dense<0.000000e+00> : vector<128xf32>
    %44 = vector.multi_reduction <add>, %43, %cst_15 [1] : vector<128x128xf32> to vector<128xf32>
    %45 = vector.shape_cast %44 : vector<128xf32> to vector<128x1xf32>
    %cst_16 = arith.constant 1.280000e+02 : f32
    %46 = vector.broadcast %cst_16 : f32 to vector<128x1xf32>
    %47 = arith.divf %45, %46 : vector<128x1xf32>
    %48 = vector.broadcast %47 : vector<128x1xf32> to vector<128x128xf32>
    %49 = arith.subf %43, %48 : vector<128x128xf32>
    %50 = arith.mulf %49, %49 : vector<128x128xf32>
    %cst_17 = arith.constant dense<0.000000e+00> : vector<128xf32>
    %51 = vector.multi_reduction <add>, %50, %cst_17 [1] : vector<128x128xf32> to vector<128xf32>
    %52 = vector.shape_cast %51 : vector<128xf32> to vector<128x1xf32>
    %cst_18 = arith.constant 0.00787401571 : f32
    %53 = vector.broadcast %cst_18 : f32 to vector<128x1xf32>
    %54 = arith.mulf %52, %53 : vector<128x1xf32>
    %55 = math.sqrt %54 : vector<128x1xf32>
    %cst_19 = arith.constant 9.99999997E-7 : f32
    %56 = vector.broadcast %cst_19 : f32 to vector<128x1xf32>
    %57 = arith.addf %55, %56 : vector<128x1xf32>
    %58 = tpu.reciprocal %57 : vector<128x1xf32> -> vector<128x1xf32>
    %59 = vector.broadcast %58 : vector<128x1xf32> to vector<128x128xf32>
    %60 = arith.mulf %49, %59 : vector<128x128xf32>
    %61 = vector.broadcast %5 : vector<1x128xf32> to vector<128x128xf32>
    %62 = arith.mulf %61, %60 : vector<128x128xf32>
    %63 = vector.broadcast %6 : vector<1x128xf32> to vector<128x128xf32>
    %64 = arith.addf %62, %63 : vector<128x128xf32>
    %65 = arith.truncf %64 : vector<128x128xf32> to vector<128x128xbf16>
    %c0_20 = arith.constant 0 : index
    %c0_21 = arith.constant 0 : index
    %66 = vector.load %arg7[%c0_20, %c0_21] : memref<128x256xbf16, #tpu.memory_space<vmem>>, vector<128x256xbf16>
    %cst_22 = arith.constant dense<0.000000e+00> : vector<128x256xf32>
    %67 = tpu.matmul %65, %66, %cst_22 {dimension_numbers = #tpu.dot_dimension_numbers<[1], [0], [0], [1], [0, 0, 1, 1], [], []>} : vector<128x128xbf16>, vector<128x256xbf16>, vector<128x256xf32> -> vector<128x256xf32>
    %c0_23 = arith.constant 0 : index
    %c0_24 = arith.constant 0 : index
    %68 = vector.load %arg8[%c0_23, %c0_24] : memref<1x256xf32, #tpu.memory_space<vmem>>, vector<1x256xf32>
    %69 = vector.broadcast %68 : vector<1x256xf32> to vector<128x256xf32>
    %70 = arith.addf %67, %69 : vector<128x256xf32>
    %cst_25 = arith.constant 0.000000e+00 : f32
    %71 = vector.broadcast %cst_25 : f32 to vector<128x256xf32>
    %72 = arith.maximumf %70, %71 : vector<128x256xf32>
    %73 = arith.truncf %72 : vector<128x256xf32> to vector<128x256xbf16>
    %c0_26 = arith.constant 0 : index
    %c0_27 = arith.constant 0 : index
    %74 = vector.load %arg9[%c0_26, %c0_27] : memref<256x128xbf16, #tpu.memory_space<vmem>>, vector<256x128xbf16>
    %cst_28 = arith.constant dense<0.000000e+00> : vector<128x128xf32>
    %75 = tpu.matmul %73, %74, %cst_28 {dimension_numbers = #tpu.dot_dimension_numbers<[1], [0], [0], [1], [0, 0, 1, 1], [], []>} : vector<128x256xbf16>, vector<256x128xbf16>, vector<128x128xf32> -> vector<128x128xf32>
    %76 = arith.addf %43, %75 : vector<128x128xf32>
    %77 = vector.broadcast %8 : vector<1x128xf32> to vector<128x128xf32>
    %78 = arith.addf %76, %77 : vector<128x128xf32>
    %c0_29 = arith.constant 0 : index
    %c0_30 = arith.constant 0 : index
    %c0_31 = arith.constant 0 : index
    %79 = vector.load %arg10[%c0_29, %c0_30, %c0_31] : memref<1x128x128xf32, #tpu.memory_space<vmem>>, vector<1x128x128xf32>
    %80 = vector.shape_cast %79 : vector<1x128x128xf32> to vector<128x128xf32>
    %81 = vector.shape_cast %78 : vector<128x128xf32> to vector<1x128x128xf32>
    tpu.vector_store %arg10[%c0_29, %c0_30, %c0_31], %81 {strides = array<i32>} : memref<1x128x128xf32, #tpu.memory_space<vmem>>, vector<1x128x128xf32>,
    return
  }
  func.func @transform_0(%arg0: i32) -> (i32, i32, i32) {
    %c0_i32 = arith.constant 0 : i32
    %c0_i32_0 = arith.constant 0 : i32
    %c0_i32_1 = arith.constant 0 : i32
    return %arg0, %c0_i32, %c0_i32_0 : i32, i32, i32
  }
  func.func @transform_1(%arg0: i32) -> (i32, i32, i32) {
    %c0_i32 = arith.constant 0 : i32
    %c0_i32_0 = arith.constant 0 : i32
    %c0_i32_1 = arith.constant 0 : i32
    return %arg0, %c0_i32, %c0_i32_0 : i32, i32, i32
  }
  func.func @transform_2(%arg0: i32) -> (i32, i32, i32) {
    %c0_i32 = arith.constant 0 : i32
    %c0_i32_0 = arith.constant 0 : i32
    %c0_i32_1 = arith.constant 0 : i32
    %c0_i32_2 = arith.constant 0 : i32
    return %c0_i32, %c0_i32_0, %c0_i32_1 : i32, i32, i32
  }
  func.func @transform_3(%arg0: i32) -> (i32, i32, i32) {
    %c0_i32 = arith.constant 0 : i32
    %c0_i32_0 = arith.constant 0 : i32
    %c0_i32_1 = arith.constant 0 : i32
    %c0_i32_2 = arith.constant 0 : i32
    return %c0_i32, %c0_i32_0, %c0_i32_1 : i32, i32, i32
  }
  func.func @transform_4(%arg0: i32) -> (i32, i32, i32) {
    %c0_i32 = arith.constant 0 : i32
    %c0_i32_0 = arith.constant 0 : i32
    %c0_i32_1 = arith.constant 0 : i32
    %c0_i32_2 = arith.constant 0 : i32
    return %c0_i32, %c0_i32_0, %c0_i32_1 : i32, i32, i32
  }
  func.func @transform_5(%arg0: i32) -> (i32, i32) {
    %c0_i32 = arith.constant 0 : i32
    %c0_i32_0 = arith.constant 0 : i32
    %c0_i32_1 = arith.constant 0 : i32
    return %c0_i32, %c0_i32_0 : i32, i32
  }
  func.func @transform_6(%arg0: i32) -> (i32, i32) {
    %c0_i32 = arith.constant 0 : i32
    %c0_i32_0 = arith.constant 0 : i32
    %c0_i32_1 = arith.constant 0 : i32
    return %c0_i32, %c0_i32_0 : i32, i32
  }
  func.func @transform_7(%arg0: i32) -> (i32, i32) {
    %c0_i32 = arith.constant 0 : i32
    %c0_i32_0 = arith.constant 0 : i32
    %c0_i32_1 = arith.constant 0 : i32
    return %c0_i32, %c0_i32_0 : i32, i32
  }
  func.func @transform_8(%arg0: i32) -> (i32, i32) {
    %c0_i32 = arith.constant 0 : i32
    %c0_i32_0 = arith.constant 0 : i32
    %c0_i32_1 = arith.constant 0 : i32
    return %c0_i32, %c0_i32_0 : i32, i32
  }
  func.func @transform_9(%arg0: i32) -> (i32, i32, i32) {
    %c0_i32 = arith.constant 0 : i32
    %c0_i32_0 = arith.constant 0 : i32
    %c0_i32_1 = arith.constant 0 : i32
    return %arg0, %c0_i32, %c0_i32_0 : i32, i32, i32
  }
}

</mosaic_0001>

<bundles_post_ra>
// kernel: tpu_custom_call.1
= control target key start
LH: loop header
LB: loop body
LE: loop exit
PB: predicated region body
PF: predicated region fallthrough
CT: control target
= control target key end

     0   :  { %14 = vsyncpa [#allocation3], 0  ;;  %s5246_s0 = inlined_call_operand.vmem [shape: f32[2,128,128], index: 0, kind: input, shape index: {}]   ;;  %s5247_s1 = inlined_call_operand.hbm [shape: f32[2,1,128], index: 1, kind: input, shape index: {}]   ;;  %s5248_s2 = inlined_call_operand.vmem [shape: bf16[4,128,96], index: 2, kind: input, shape index: {}]   ;;  %s5249_s3 = inlined_call_operand.vmem [shape: f32[4,1,96], index: 3, kind: input, shape index: {}]   ;;  %s5250_s4 = inlined_call_operand.vmem [shape: bf16[4,32,128], index: 4, kind: input, shape index: {}]   ;;  %s5251_s5 = inlined_call_operand.vmem [shape: f32[6,128], index: 5, kind: input, shape index: {}]   ;;  %s5252_s6 = inlined_call_operand.vmem [shape: bf16[128,256], index: 6, kind: input, shape index: {}]   ;;  %s5253_s7 = inlined_call_operand.vmem [shape: f32[1,256], index: 7, kind: input, shape index: {}]   ;;  %s5254_s8 = inlined_call_operand.hbm [shape: bf16[256,128], index: 8, kind: input, shape index: {}]   ;;  %s5255_s9 = inlined_call_operand.hbm [shape: f32[2,128,128], index: 9, kind: output, shape index: {}]  }
   0x1   :  { %16 = vsyncpa [#allocation3 + $0x1], 0 }
   0x2   :  { %17 = vsyncpa [#allocation6], 0 }
   0x3   :  { %18 = vsyncpa [#allocation4], 0 }
   0x4   :  { %20 = vsyncpa [#allocation4 + $0x1], 0  ;;  %s3733_s30 = smov 0   ;;  %s3735_s10 = smov 0  }
   0x5   :  { %s3737_s11 = smov 0   ;;  %s3739_s12 = smov 0  }
   0x6 LB: > { %s3754_s13 = sadd.s32 4294967295, %s3602_s12   ;;  %s2619_s14 = sadd.s32 4294967294, %s3602_s12   ;;  %s3602_s12 = sphi %s3739_s12, %s5339_s12   ;;  %s3598_s11 = sphi %s3737_s11, %s5342_s11   ;;  %s3594_s10 = sphi %s3735_s10, %s5341_s10   ;;  %s3590_s30 = sphi %s3733_s30, %s5340_s30  }
   0x7   : > { %p72_p0 = scmp.ne.s32.totalorder %s3594_s10, %s3590_s30  ;;  %p5256_p1 = scmp.eq.s32.totalorder %s3754_s13, 0 }
   0x8   : > { %p249_p3 = scmp.eq.s32.totalorder %s2619_s14, 1  ;;  %p2620_p5 = scmp.ge.s32.totalorder %s3602_s12, 1 }
   0x9   : > { %p3763_p4 = por %p5256_p1, %p72_p0  ;;  %p256_p7 = scmp.lt.s32.totalorder %s3602_s12, 3 }
   0xa   : > { %p3768_p6 = por %p249_p3, %p72_p0  ;;  %s3672_s18 = smov [#allocation5]  }
   0xb   : > { %s5269_s15 = scalar_select %p3763_p4, 1, 0 }
   0xc   : > { %s5270_s16 = scalar_select %p3768_p6, 1, 0 }
   0xd   : > { %p3773_p8 = pnand %p2620_p5, %p256_p7  ;;  %s286_s19 = sshll.u32 %s3672_s18, 4  ;;  %s3777_s19 = int_to_ptr.vmem [resolvable:$true] %s286_s19 }
   0xe   : > { %5271 = sst [smem:[#allocation11_spill]] %s5270_s16  ;;  %s3789_s21 = sadd.s32 1, %s3602_s12  }
   0xf   : > { %s5272_s17 = scalar_select %p3773_p8, 1, 0 }
  0x10   : > { %p2971_p9 = pneg %p3773_p8  ;;  %5274 = sst [smem:[#allocation12_spill]] %s3789_s21 }
  0x11   : > { %s59_s22 = sadd.s32 1, %s3598_s11  ;;  %s56_s23 = ssub.s32 %s3602_s12, %s3789_s21 }
  0x12   : > { %p3784_p11 = pnand %p2971_p9, %p5256_p1  ;;  %s3406_s26 = scalar_lea.hbm %s5254_s8, 2048 }
  0x13   : > { %p3407_p12 = scmp.ne.s32.totalorder %s5254_s8, %s3406_s26  ;;  %p3413_p5 = scmp.lt.u32.totalorder %s3406_s26, %s5254_s8 }
  0x14   : > { %p3408_p13 = pneg %p3784_p11 }
  0x16   : > { %p3409_p0 = pnand %p3408_p13, %p3407_p12 }
  0x18   : > { %p3410_p3 = pneg %p3409_p0 }
  0x1a   : > { %p3415_p7 = pnand %p3413_p5, %p3410_p3 }
  0x1c   : > { %3418 = shalt.err (!%p3415_p7)
}
  0x1d   : > { %s3419_s18 = scalar_lea.vmem %s3777_s19, 2048  ;;  %p3427_p2 = scmp.lt.s32.totalorder %s3777_s19, %s3777_s19 }
  0x1e   : > { %p3420_p9 = scmp.ne.s32.totalorder %s3777_s19, %s3419_s18  ;;  %p3428_p6 = scmp.lt.s32.totalorder %s3419_s18, %s3419_s18 }
  0x20   : > { %p3422_p10 = pnand %p3420_p9, %p3408_p13  ;;  %p3429_p4 = por %p3428_p6, %p3427_p2 }
  0x22   : > { %p3423_p1 = pneg %p3422_p10 }
  0x24   : > { %p3430_p8 = pnand %p3429_p4, %p3423_p1 }
  0x26   : > { %3433 = shalt.err (!%p3430_p8)
}
  0x27   : > { %s3673_s24 = smov 64   ;;  %s3674_s25 = smov 4  }
  0x28   : > { %2974 = dma.hbm_to_vmem [thread:$0]  (!%p3784_p11), %s5254_s8, 2048, %s3777_s19, [#allocation6], %s3673_s24, %s3673_s24, %s3674_s25  }
  0x29   : > { %p57_p2 = scmp.eq.s32.totalorder %s56_s23, 0  ;;  %p66_p1 = scmp.ne.s32.totalorder %s3598_s11, %s3594_s10 }
  0x2a   : > { %p67_p4 = scmp.eq.s32.totalorder %s3602_s12, 0  ;;  %p2984_p6 = scmp.lt.s32.totalorder %s3602_s12, 2 }
  0x2b   : > { %s3820_s28 = scalar_select %p57_p2, %s3598_s11, %s59_s22  }
  0x2c   : > { %p68_p8 = por %p67_p4, %p66_p1  ;;  %p5275_p10 = scmp.eq.s32.totalorder %s3754_s13, 1 }
  0x2d   : > { %s308_s14 = sand.u32 1, %s3598_s11   ;;  %s2623_s18 = sshll.u32 %s3602_s12, 4 }
  0x2e   : > { %p3824_p12 = por %p5275_p10, %p66_p1  ;;  %s3833_s16 = scalar_lea.hbm %s5247_s1, %s2623_s18 }
  0x2f   : > { %s311_s19 = scalar_lea.vmem [#allocation2], %s308_s14  ;;  %p3837_p11 = pnand %p2984_p6, %p68_p8 }
  0x30   : > { %s318_s22 = sshll.u32 %s311_s19, 4  ;;  %s309_s24 = scalar_lea.sflag [#allocation3], %s308_s14  ;;  %s3835_s22 = int_to_ptr.vmem [resolvable:$true] %s318_s22 }
  0x31   : > { %s3434_s25 = scalar_lea.hbm %s3833_s16, 16  ;;  %p3436_p0 = pneg %p3837_p11 }
  0x32   : > { %p3435_p13 = scmp.ne.s32.totalorder %s3833_s16, %s3434_s25  ;;  %s3439_s27 = scalar_lea.hbm %s5247_s1, 32 }
  0x33   : > { %p3440_p7 = scmp.lt.u32.totalorder %s3833_s16, %s5247_s1  ;;  %p3441_p9 = scmp.lt.u32.totalorder %s3439_s27, %s3434_s25 }
  0x34   : > { %p3437_p3 = pnand %p3436_p0, %p3435_p13  ;;  %p3443_p1 = scmp.lt.u32.totalorder %s3434_s25, %s3833_s16 }
  0x35   : > { %p3442_p2 = por %p3441_p9, %p3440_p7 }
  0x36   : > { %p3438_p5 = pneg %p3437_p3 }
  0x37   : > { %p3444_p4 = por %p3443_p1, %p3442_p2 }
  0x39   : > { %p3445_p6 = pnand %p3444_p4, %p3438_p5 }
  0x3b   : > { %3448 = shalt.err (!%p3445_p6)
}
  0x3c   : > { %s3449_s14 = scalar_lea.vmem %s3835_s22, 16  ;;  %s3675_s19 = smov [#allocation2]  }
  0x3d   : > { %p3450_p8 = scmp.ne.s32.totalorder %s3835_s22, %s3449_s14  ;;  %s3454_s21 = sshll.u32 %s3675_s19, 4  ;;  %s3455_s21 = int_to_ptr.vmem [resolvable:$false] %s3454_s21 }
  0x3e   : > { %s3456_s26 = scalar_lea.vmem %s3455_s21, 32  ;;  %p3457_p3 = scmp.lt.s32.totalorder %s3835_s22, %s3455_s21 }
  0x3f   : > { %p3452_p10 = pnand %p3450_p8, %p3436_p0  ;;  %p3458_p7 = scmp.lt.s32.totalorder %s3456_s26, %s3449_s14 }
  0x41   : > { %p3453_p13 = pneg %p3452_p10  ;;  %p3459_p9 = por %p3458_p7, %p3457_p3 }
  0x43   : > { %p3460_p2 = pnand %p3459_p9, %p3453_p13 }
  0x45   : > { %3463 = shalt.err (!%p3460_p2)
}
  0x46   : > { %2978 = dma.hbm_to_vmem [thread:$0]  (!%p3837_p11), %s3833_s16, 16, %s3835_s22, %s309_s24  }
  0x47   : > { %p5278_p5 = scmp.ne.s32.totalorder %s5272_s17, 0 }
  0x49   : > { %327 = sbr.rel (%p5278_p5) target bundleno = 2782 (0xade), region = 56 }
  0x50   : > { %s3869_s25 = sand.u32 1, %s3594_s10   ;;  %p5279_p0 = scmp.ne.s32.totalorder %s5269_s15, 0 }
  0x51   : > { %s330_s27 = scalar_lea.sflag [#allocation3], %s3869_s25  ;;  %s332_s18 = scalar_lea.vmem [#allocation2], %s3869_s25 }
  0x52   : > { %3577 = dma.done.wait (%p5279_p0), %s330_s27, 16  }
  0x53   : > { %3579 = vsyncadd (%p5279_p0), %s330_s27, 4294967280  ;;  %p5280_p1 = scmp.eq.s32.totalorder %s3754_s13, 0 }
  0x55   : > { %3581 = dma.done.wait (%p5280_p1), [#allocation6], 2048   ;;  %p5281_p11 = pmov %p5280_p1 }
  0x56   : > { %p375_p4 = scmp.lt.s32.totalorder %s3754_s13, 1  ;;  %v402_v0 = vlaneseq  ;;  %v3895_v4 = vld [vmem:[%s5251_s5] sm:$0x3f]  ;;  %v3676_v39 = vmov 0.0   ;;  %s2626_s14 = sshll.u32 %s3869_s25, 7 }
  0x57   : > { %3583 = vsyncadd (%p5281_p11), [#allocation6], 4294965248  ;;  %v398_v37 = vld [vmem:[%s332_s18] sm:$0x1]  ;;  %s4334_s19 = scalar_lea.vmem [#allocation7], %s2626_s14  ;;  %s4384_s21 = smov 0  }
  0x58   : > { %s376_s16 = scalar_select %p375_p4, %s3754_s13, 1  ;;  %v3883_v1 = vshrl.u32 %v402_v0, 7  ;;  %vm399_vm0 = vcmp.eq.f32.partialorder %v398_v37, 0.0 }
  0x59   : > { %v400_v40 = vsel %vm399_vm0, -1e+09, %v3676_v39 }
  0x5a   : > { %s2697_s17 = sshll.u32 %s376_s16, 7  ;;  %v746_v2 = vsub.s32 4, %v3883_v1  ;;  %v3996_v38 = vsub.s32 0, %v3883_v1 }
  0x5b   : > { %s3889_s15 = scalar_lea.vmem %s5246_s0, %s2697_s17 }
  0x5c   : > { %v381_v3 = vld [vmem:[%s3889_s15] sm:$0xff]  ;;  %v383_v5 = vld [vmem:[%s3889_s15 + $0x10] sm:$0xff]  ;;  %v747_v6 = vrot.slane %v3895_v4, %v746_v2  ;;  %v382_v7 = vld [vmem:[%s3889_s15 + $0x8] sm:$0xff]  ;;  %v3999_v41 = vrot.slane %v400_v40, %v3996_v38 }
  0x5d   : > { %407 = vadd.xlane.f32.xlu0 %v381_v3  ;;  %411 = vadd.xlane.f32.xlu1 %v383_v5  ;;  %v384_v8 = vld [vmem:[%s3889_s15 + $0x18] sm:$0xff]  ;;  %v3902_v9 = vld [vmem:[%s3889_s15 + $0x20] sm:$0xff]  ;;  %v3905_v10 = vld [vmem:[%s3889_s15 + $0x28] sm:$0xff] }
  0x5e   : > { %v3907_v11 = vadd.f32 %v747_v6, %v381_v3   ;;  %v3909_v12 = vadd.f32 %v747_v6, %v383_v5   ;;  %v3911_v13 = vadd.f32 %v747_v6, %v382_v7   ;;  %v3913_v14 = vadd.f32 %v747_v6, %v384_v8   ;;  %v3916_v15 = vld [vmem:[%s3889_s15 + $0x30] sm:$0xff]  ;;  %v3919_v16 = vld [vmem:[%s3889_s15 + $0x38] sm:$0xff]  ;;  %v3922_v17 = vld [vmem:[%s3889_s15 + $0x40] sm:$0xff] }
  0x5f   : > { %v3925_v18 = vadd.f32 %v747_v6, %v3902_v9   ;;  %v3928_v19 = vadd.f32 %v747_v6, %v3905_v10   ;;  %v3931_v20 = vadd.f32 %v747_v6, %v3916_v15   ;;  %v3934_v21 = vadd.f32 %v747_v6, %v3919_v16   ;;  %v3937_v22 = vld [vmem:[%s3889_s15 + $0x48] sm:$0xff]  ;;  %v3940_v23 = vld [vmem:[%s3889_s15 + $0x50] sm:$0xff]  ;;  %v3943_v24 = vld [vmem:[%s3889_s15 + $0x58] sm:$0xff] }
  0x60   : > { %v3946_v25 = vadd.f32 %v747_v6, %v3922_v17   ;;  %v3949_v26 = vadd.f32 %v747_v6, %v3937_v22   ;;  %v3952_v27 = vadd.f32 %v747_v6, %v3940_v23   ;;  %v3955_v28 = vld [vmem:[%s3889_s15 + $0x60] sm:$0xff]  ;;  %v3958_v29 = vld [vmem:[%s3889_s15 + $0x68] sm:$0xff]  ;;  %v3961_v30 = vld [vmem:[%s3889_s15 + $0x70] sm:$0xff]  ;;  %v3964_v31 = vadd.f32 %v747_v6, %v3943_v24  }
  0x61   : > { %409 = vadd.xlane.f32.xlu0 %v382_v7  ;;  %413 = vadd.xlane.f32.xlu1 %v384_v8  ;;  %v3967_v32 = vadd.f32 %v747_v6, %v3955_v28   ;;  %v3970_v33 = vadd.f32 %v747_v6, %v3958_v29   ;;  %v3973_v34 = vadd.f32 %v747_v6, %v3961_v30   ;;  %v3976_v35 = vld [vmem:[%s3889_s15 + $0x78] sm:$0xff] }
  0x62   : > { %v3979_v36 = vadd.f32 %v747_v6, %v3976_v35  }
  0x65   : > { %415 = vadd.xlane.f32.xlu0 %v3902_v9  ;;  %417 = vadd.xlane.f32.xlu1 %v3905_v10 }
  0x69   : > { %419 = vadd.xlane.f32.xlu0 %v3916_v15  ;;  %421 = vadd.xlane.f32.xlu1 %v3919_v16 }
  0x6d   : > { %423 = vadd.xlane.f32.xlu0 %v3922_v17  ;;  %425 = vadd.xlane.f32.xlu1 %v3937_v22 }
  0x71   : > { %427 = vadd.xlane.f32.xlu0 %v3940_v23  ;;  %429 = vadd.xlane.f32.xlu1 %v3943_v24 }
  0x75   : > { %431 = vadd.xlane.f32.xlu0 %v3955_v28  ;;  %433 = vadd.xlane.f32.xlu1 %v3958_v29 }
  0x79   : > { %435 = vadd.xlane.f32.xlu0 %v3961_v30  ;;  %437 = vadd.xlane.f32.xlu1 %v3976_v35 }
  0xea   : > { %v408_v42 = vpop.xlane.xlu0 %407  ;;  %v412_v43 = vpop.xlane.xlu1 %411 }
  0xeb   : > { %v440_v44 = vmul.f32 0.0078125, %v408_v42  ;;  %v442_v45 = vmul.f32 0.0078125, %v412_v43 }
  0xed   : > { %v4001_v46 = vsub.f32 %v381_v3, %v440_v44  ;;  %v4003_v47 = vsub.f32 %v383_v5, %v442_v45 }
  0xee   : > { %v410_v48 = vpop.xlane.xlu0 %409  ;;  %v414_v49 = vpop.xlane.xlu1 %413 }
  0xef   : > { %v441_v50 = vmul.f32 0.0078125, %v410_v48  ;;  %v472_v51 = vmul.f32 %v4001_v46, %v4001_v46  ;;  %v443_v52 = vmul.f32 0.0078125, %v414_v49  ;;  %v474_v55 = vmul.f32 %v4003_v47, %v4003_v47 }
  0xf1   : > { %v4007_v53 = vsub.f32 %v382_v7, %v441_v50  ;;  %488 = vadd.xlane.f32.xlu0 %v472_v51  ;;  %v4009_v54 = vsub.f32 %v384_v8, %v443_v52 }
  0xf2   : > { %v416_v56 = vpop.xlane.xlu0 %415  ;;  %v418_v57 = vpop.xlane.xlu1 %417 }
  0xf3   : > { %v444_v58 = vmul.f32 0.0078125, %v416_v56  ;;  %v473_v59 = vmul.f32 %v4007_v53, %v4007_v53  ;;  %v445_v60 = vmul.f32 0.0078125, %v418_v57  ;;  %v475_v63 = vmul.f32 %v4009_v54, %v4009_v54 }
  0xf5   : > { %v4016_v61 = vsub.f32 %v3902_v9, %v444_v58  ;;  %492 = vadd.xlane.f32.xlu0 %v474_v55  ;;  %490 = vadd.xlane.f32.xlu1 %v473_v59  ;;  %v4019_v62 = vsub.f32 %v3905_v10, %v445_v60 }
  0xf6   : > { %v420_v0 = vpop.xlane.xlu0 %419  ;;  %v422_v2 = vpop.xlane.xlu1 %421 }
  0xf7   : > { %v446_v3 = vmul.f32 0.0078125, %v420_v0  ;;  %v476_v5 = vmul.f32 %v4016_v61, %v4016_v61  ;;  %v447_v6 = vmul.f32 0.0078125, %v422_v2  ;;  %v477_v9 = vmul.f32 %v4019_v62, %v4019_v62 }
  0xf9   : > { %v4026_v7 = vsub.f32 %v3916_v15, %v446_v3  ;;  %494 = vadd.xlane.f32.xlu1 %v475_v63  ;;  %496 = vadd.xlane.f32.xlu0 %v476_v5  ;;  %v4029_v8 = vsub.f32 %v3919_v16, %v447_v6 }
  0xfa   : > { %v424_v10 = vpop.xlane.xlu0 %423  ;;  %v426_v37 = vpop.xlane.xlu1 %425 }
  0xfb   : > { %v448_v39 = vmul.f32 0.0078125, %v424_v10  ;;  %v478_v40 = vmul.f32 %v4026_v7, %v4026_v7  ;;  %v449_v42 = vmul.f32 0.0078125, %v426_v37  ;;  %v479_v16 = vmul.f32 %v4029_v8, %v4029_v8 }
  0xfd   : > { %v4036_v43 = vsub.f32 %v3922_v17, %v448_v39  ;;  %498 = vadd.xlane.f32.xlu1 %v477_v9  ;;  %500 = vadd.xlane.f32.xlu0 %v478_v40  ;;  %v4039_v15 = vsub.f32 %v3937_v22, %v449_v42 }
  0xfe   : > { %v428_v44 = vpop.xlane.xlu0 %427  ;;  %v430_v45 = vpop.xlane.xlu1 %429 }
  0xff   : > { %v450_v48 = vmul.f32 0.0078125, %v428_v44  ;;  %v480_v49 = vmul.f32 %v4036_v43, %v4036_v43  ;;  %v451_v50 = vmul.f32 0.0078125, %v430_v45  ;;  %v481_v22 = vmul.f32 %v4039_v15, %v4039_v15 }
 0x100   : > { %v5262_v44 = vsub.s32 1, %v3883_v1 }
 0x101   : > { %v4046_v51 = vsub.f32 %v3940_v23, %v450_v48  ;;  %502 = vadd.xlane.f32.xlu1 %v479_v16  ;;  %504 = vadd.xlane.f32.xlu0 %v480_v49  ;;  %v4049_v17 = vsub.f32 %v3943_v24, %v451_v50  ;;  %v4086_v49 = vrot.slane %v3895_v4, %v3996_v38 }
 0x102   : > { %v432_v52 = vpop.xlane.xlu0 %431  ;;  %v434_v55 = vpop.xlane.xlu1 %433 }
 0x103   : > { %v452_v56 = vmul.f32 0.0078125, %v432_v52  ;;  %v482_v57 = vmul.f32 %v4046_v51, %v4046_v51  ;;  %v453_v58 = vmul.f32 0.0078125, %v434_v55  ;;  %v483_v24 = vmul.f32 %v4049_v17, %v4049_v17 }
 0x104   : > { %v4092_v55 = vrot.slane %v3895_v4, %v5262_v44 }
 0x105   : > { %v4056_v59 = vsub.f32 %v3955_v28, %v452_v56  ;;  %506 = vadd.xlane.f32.xlu1 %v481_v22  ;;  %508 = vadd.xlane.f32.xlu0 %v482_v57  ;;  %v4059_v23 = vsub.f32 %v3958_v29, %v453_v58 }
 0x106   : > { %v436_v60 = vpop.xlane.xlu0 %435  ;;  %v438_v63 = vpop.xlane.xlu1 %437 }
 0x107   : > { %v454_v0 = vmul.f32 0.0078125, %v436_v60  ;;  %v484_v2 = vmul.f32 %v4056_v59, %v4056_v59  ;;  %v455_v3 = vmul.f32 0.0078125, %v438_v63  ;;  %v485_v29 = vmul.f32 %v4059_v23, %v4059_v23 }
 0x109   : > { %v4066_v5 = vsub.f32 %v3961_v30, %v454_v0  ;;  %510 = vadd.xlane.f32.xlu1 %v483_v24  ;;  %512 = vadd.xlane.f32.xlu0 %v484_v2  ;;  %v4069_v28 = vsub.f32 %v3976_v35, %v455_v3 }
 0x10b   : > { %v486_v6 = vmul.f32 %v4066_v5, %v4066_v5  ;;  %v487_v9 = vmul.f32 %v4069_v28, %v4069_v28 }
 0x10d   : > { %514 = vadd.xlane.f32.xlu1 %v485_v29  ;;  %516 = vadd.xlane.f32.xlu0 %v486_v6 }
 0x111   : > { %518 = vadd.xlane.f32.xlu1 %v487_v9 }
 0x17e   : > { %v489_v30 = vpop.xlane.xlu0 %488 }
 0x17f   : > { %v520_v10 = vmul.f32 0.007874016, %v489_v30 }
 0x181   : > { %3164 = vrsqrt.f32 %v520_v10  ;;  %vm538_vm1 = vcmp.eq.f32.partialorder %v520_v10, inf  ;;  %vm540_vm2 = vcmp.eq.f32.partialorder %v520_v10, 0.0  ;;  %v541_v24 = vand.u32 2147483648, %v520_v10 }
 0x182   : > { %v491_v37 = vpop.xlane.xlu1 %490  ;;  %v493_v39 = vpop.xlane.xlu0 %492 }
 0x183   : > { %v521_v35 = vmul.f32 0.007874016, %v491_v37  ;;  %v522_v40 = vmul.f32 0.007874016, %v493_v39 }
 0x185   : > { %3166 = vrsqrt.f32 %v521_v35  ;;  %vm545_vm3 = vcmp.eq.f32.partialorder %v521_v35, inf  ;;  %vm547_vm4 = vcmp.eq.f32.partialorder %v521_v35, 0.0  ;;  %v548_v60 = vand.u32 2147483648, %v521_v35 }
 0x186   : > { %3168 = vrsqrt.f32 %v522_v40  ;;  %v495_v42 = vpop.xlane.xlu1 %494  ;;  %v497_v16 = vpop.xlane.xlu0 %496  ;;  %vm552_vm5 = vcmp.eq.f32.partialorder %v522_v40, inf  ;;  %vm554_vm6 = vcmp.eq.f32.partialorder %v522_v40, 0.0  ;;  %v555_v0 = vand.u32 2147483648, %v522_v40 }
 0x187   : > { %v4079_v45 = vmul.f32 0.007874016, %v495_v42  ;;  %v4081_v48 = vmul.f32 0.007874016, %v497_v16 }
 0x189   : > { %3170 = vrsqrt.f32 %v4079_v45  ;;  %vm559_vm7 = vcmp.eq.f32.partialorder %v4079_v45, inf  ;;  %vm561_vm8 = vcmp.eq.f32.partialorder %v4079_v45, 0.0  ;;  %vm566_vm9 = vcmp.eq.f32.partialorder %v4081_v48, inf }
 0x18a   : > { %3172 = vrsqrt.f32 %v4081_v48  ;;  %v499_v50 = vpop.xlane.xlu1 %498  ;;  %v501_v22 = vpop.xlane.xlu0 %500  ;;  %vm568_vm10 = vcmp.eq.f32.partialorder %v4081_v48, 0.0 }
 0x18b   : > { %v3165_v52 = vpop.eup %3164  ;;  %v4094_v56 = vmul.f32 0.007874016, %v499_v50  ;;  %v4096_v57 = vmul.f32 0.007874016, %v501_v22  ;;  %v569_v22 = vand.u32 2147483648, %v4081_v48 }
 0x18c   : > { %v537_v58 = vmul.f32 %v3165_v52, %v520_v10 }
 0x18d   : > { %3174 = vrsqrt.f32 %v4094_v56  ;;  %vm573_vm11 = vcmp.eq.f32.partialorder %v4094_v56, inf  ;;  %vm575_vm12 = vcmp.eq.f32.partialorder %v4094_v56, 0.0  ;;  %vm580_vm13 = vcmp.eq.f32.partialorder %v4096_v57, inf }
 0x18e   : > { %v539_v63 = vsel %vm538_vm1, %v520_v10, %v537_v58  ;;  %3176 = vrsqrt.f32 %v4096_v57  ;;  %v503_v2 = vpop.xlane.xlu1 %502  ;;  %v505_v3 = vpop.xlane.xlu0 %504  ;;  %v562_v10 = vand.u32 2147483648, %v4079_v45  ;;  %vm582_vm14 = vcmp.eq.f32.partialorder %v4096_v57, 0.0 }
 0x18f   : > { %v3167_v29 = vpop.eup %3166  ;;  %v542_v6 = vsel %vm540_vm2, %v541_v24, %v539_v63  ;;  %v4101_v9 = vmul.f32 0.007874016, %v503_v2  ;;  %v4103_v30 = vmul.f32 0.007874016, %v505_v3 }
 0x190   : > { %v3169_v37 = vpop.eup %3168  ;;  %v648_v39 = vadd.f32 1e-06, %v542_v6  ;;  %v544_v42 = vmul.f32 %v3167_v29, %v521_v35 }
 0x191   : > { %v551_v16 = vmul.f32 %v3169_v37, %v522_v40  ;;  %3178 = vrsqrt.f32 %v4101_v9  ;;  %v576_v37 = vand.u32 2147483648, %v4094_v56  ;;  %vm587_vm15 = vcmp.eq.f32.partialorder %v4101_v9, inf }
 0x192   : > { %3180 = vrcp.f32 %v648_v39  ;;  %v546_v50 = vsel %vm545_vm3, %v521_v35, %v544_v42  ;;  %v507_v52 = vpop.xlane.xlu1 %506  ;;  %v509_v39 = vpop.xlane.xlu0 %508  ;;  %vm589_vm0 = vcmp.eq.f32.partialorder %v4101_v9, 0.0  ;;  %vm594_vm1 = vcmp.eq.f32.partialorder %v4103_v30, inf }
 0x193   : > { %v3171_v58 = vpop.eup %3170  ;;  %v549_v24 = vsel %vm547_vm4, %v548_v60, %v546_v50  ;;  %v553_v63 = vsel %vm552_vm5, %v522_v40, %v551_v16  ;;  %3182 = vrsqrt.f32 %v4103_v30  ;;  %v4122_v35 = vmul.f32 0.007874016, %v507_v52 }
 0x194   : > { %v3173_v2 = vpop.eup %3172  ;;  %v649_v3 = vadd.f32 1e-06, %v549_v24  ;;  %v556_v29 = vsel %vm554_vm6, %v555_v0, %v553_v63  ;;  %v558_v6 = vmul.f32 %v3171_v58, %v4079_v45  ;;  %v583_v40 = vand.u32 2147483648, %v4096_v57 }
 0x195   : > { %v650_v42 = vadd.f32 1e-06, %v556_v29  ;;  %v565_v44 = vmul.f32 %v3173_v2, %v4081_v48  ;;  %v4134_v52 = vmul.f32 0.007874016, %v509_v39  ;;  %vm596_vm2 = vcmp.eq.f32.partialorder %v4103_v30, 0.0 }
 0x196   : > { %3184 = vrcp.f32 %v649_v3  ;;  %v560_v60 = vsel %vm559_vm7, %v4079_v45, %v558_v6  ;;  %v511_v3 = vpop.xlane.xlu1 %510  ;;  %vm601_vm3 = vcmp.eq.f32.partialorder %v4122_v35, inf  ;;  %vm603_vm4 = vcmp.eq.f32.partialorder %v4122_v35, 0.0 }
 0x197   : > { %v3175_v0 = vpop.eup %3174  ;;  %3186 = vrcp.f32 %v650_v42  ;;  %v563_v16 = vsel %vm561_vm8, %v562_v10, %v560_v60  ;;  %v567_v50 = vsel %vm566_vm9, %v4081_v48, %v565_v44  ;;  %v590_v48 = vand.u32 2147483648, %v4101_v9 }
 0x198   : > { %v3177_v58 = vpop.eup %3176  ;;  %v651_v24 = vadd.f32 1e-06, %v563_v16  ;;  %v570_v63 = vsel %vm568_vm10, %v569_v22, %v567_v50  ;;  %v572_v2 = vmul.f32 %v3175_v0, %v4094_v56  ;;  %3188 = vrsqrt.f32 %v4122_v35  ;;  %v513_v16 = vpop.xlane.xlu0 %512 }
 0x199   : > { %v652_v29 = vadd.f32 1e-06, %v570_v63  ;;  %v579_v45 = vmul.f32 %v3177_v58, %v4096_v57  ;;  %v597_v58 = vand.u32 2147483648, %v4103_v30  ;;  %vm608_vm5 = vcmp.eq.f32.partialorder %v4134_v52, inf }
 0x19a   : > { %3190 = vrcp.f32 %v651_v24  ;;  %v574_v44 = vsel %vm573_vm11, %v4094_v56, %v572_v2  ;;  %v4160_v24 = vmul.f32 0.007874016, %v511_v3  ;;  %vm610_vm6 = vcmp.eq.f32.partialorder %v4134_v52, 0.0 }
 0x19b   : > { %v3179_v10 = vpop.eup %3178  ;;  %3192 = vrcp.f32 %v652_v29  ;;  %v577_v22 = vsel %vm575_vm12, %v576_v37, %v574_v44  ;;  %v581_v6 = vsel %vm580_vm13, %v4096_v57, %v579_v45 }
 0x19c   : > { %v3181_v39 = vpop.eup %3180  ;;  %v653_v42 = vadd.f32 1e-06, %v577_v22  ;;  %v584_v60 = vsel %vm582_vm14, %v583_v40, %v581_v6  ;;  %v586_v0 = vmul.f32 %v3179_v10, %v4101_v9  ;;  %3194 = vrsqrt.f32 %v4134_v52  ;;  %v515_v40 = vpop.xlane.xlu1 %514 }
 0x19d   : > { %v3183_v50 = vpop.eup %3182  ;;  %v680_v56 = vmul.f32 %v3181_v39, %v4001_v46  ;;  %v654_v37 = vadd.f32 1e-06, %v584_v60  ;;  %v4170_v46 = vmul.f32 0.007874016, %v513_v16  ;;  %v4181_v6 = vmul.f32 0.007874016, %v515_v40 }
 0x19e   : > { %3196 = vrcp.f32 %v653_v42  ;;  %v588_v63 = vsel %vm587_vm15, %v4101_v9, %v586_v0  ;;  %v593_v57 = vmul.f32 %v3183_v50, %v4103_v30  ;;  %vm615_vm7 = vcmp.eq.f32.partialorder %v4160_v24, inf }
 0x19f   : > { %3198 = vrcp.f32 %v654_v37  ;;  %v591_v2 = vsel %vm589_vm0, %v590_v48, %v588_v63  ;;  %v700_v29 = vmul.f32 %v4086_v49, %v680_v56  ;;  %v604_v48 = vand.u32 2147483648, %v4122_v35 }
 0x1a0   : > { %v3185_v3 = vpop.eup %3184  ;;  %v655_v45 = vadd.f32 1e-06, %v591_v2  ;;  %v595_v44 = vsel %vm594_vm1, %v4103_v30, %v593_v57  ;;  %3200 = vrsqrt.f32 %v4160_v24  ;;  %v517_v57 = vpop.xlane.xlu0 %516  ;;  %vm617_vm8 = vcmp.eq.f32.partialorder %v4160_v24, 0.0 }
 0x1a1   : > { %v3187_v10 = vpop.eup %3186  ;;  %v681_v22 = vmul.f32 %v3185_v3, %v4007_v53  ;;  %v598_v9 = vsel %vm596_vm2, %v597_v58, %v595_v44  ;;  %v4190_v30 = vadd.f32 %v4092_v55, %v700_v29  ;;  %vm622_vm9 = vcmp.eq.f32.partialorder %v4170_v46, inf }
 0x1a2   : > { %v3189_v39 = vpop.eup %3188  ;;  %v682_v42 = vmul.f32 %v3187_v10, %v4003_v47  ;;  %3202 = vrcp.f32 %v655_v45  ;;  %v656_v60 = vadd.f32 1e-06, %v598_v9  ;;  %v611_v47 = vand.u32 2147483648, %v4134_v52  ;;  %v519_v10 = vpop.xlane.xlu1 %518 }
 0x1a3   : > { %v701_v0 = vmul.f32 %v4086_v49, %v681_v22  ;;  %v600_v16 = vmul.f32 %v3189_v39, %v4122_v35  ;;  %3204 = vrsqrt.f32 %v4170_v46  ;;  %5282 = vst [vmem:[#allocation13_spill] sm:$0xff] %v4190_v30  ;;  %vm624_vm10 = vcmp.eq.f32.partialorder %v4170_v46, 0.0 }
 0x1a4   : > { %v3191_v53 = vpop.eup %3190  ;;  %v702_v50 = vmul.f32 %v4086_v49, %v682_v42  ;;  %3206 = vrcp.f32 %v656_v60  ;;  %vm629_vm11 = vcmp.eq.f32.partialorder %v4181_v6, inf  ;;  %vm631_vm12 = vcmp.eq.f32.partialorder %v4181_v6, 0.0 }
 0x1a5   : > { %v3193_v56 = vpop.eup %3192  ;;  %v4195_v37 = vadd.f32 %v4092_v55, %v701_v0  ;;  %v683_v58 = vmul.f32 %v3191_v53, %v4009_v54  ;;  %v602_v63 = vsel %vm601_vm3, %v4122_v35, %v600_v16  ;;  %3208 = vrsqrt.f32 %v4181_v6 }
 0x1a6   : > { %v3195_v40 = vpop.eup %3194  ;;  %v684_v2 = vmul.f32 %v3193_v56, %v4016_v61  ;;  %v605_v3 = vsel %vm603_vm4, %v604_v48, %v602_v63  ;;  %v4212_v9 = vadd.f32 %v4092_v55, %v702_v50  ;;  %v618_v35 = vand.u32 2147483648, %v4160_v24 }
 0x1a7   : > { %5283 = vst [vmem:[#allocation14_spill] sm:$0xff] %v4195_v37  ;;  %v703_v29 = vmul.f32 %v4086_v49, %v683_v58  ;;  %v657_v45 = vadd.f32 1e-06, %v605_v3  ;;  %v607_v44 = vmul.f32 %v3195_v40, %v4134_v52  ;;  %v4216_v48 = vmul.f32 0.007874016, %v517_v57 }
 0x1a8   : > { %v3197_v22 = vpop.eup %3196  ;;  %5284 = vst [vmem:[#allocation15_spill] sm:$0xff] %v4212_v9  ;;  %v704_v61 = vmul.f32 %v4086_v49, %v684_v2  ;;  %v4229_v56 = vmul.f32 0.007874016, %v519_v10 }
 0x1a9   : > { %v3199_v39 = vpop.eup %3198  ;;  %v4219_v42 = vadd.f32 %v4092_v55, %v703_v29  ;;  %v685_v60 = vmul.f32 %v3197_v22, %v4019_v62  ;;  %3210 = vrcp.f32 %v657_v45  ;;  %v609_v0 = vsel %vm608_vm5, %v4134_v52, %v607_v44 }
 0x1aa   : > { %v3201_v16 = vpop.eup %3200  ;;  %v686_v53 = vmul.f32 %v3199_v39, %v4026_v7  ;;  %v612_v50 = vsel %vm610_vm6, %v611_v47, %v609_v0  ;;  %3212 = vrsqrt.f32 %v4216_v48  ;;  %v4236_v2 = vadd.f32 %v4092_v55, %v704_v61 }
 0x1ab   : > { %v705_v62 = vmul.f32 %v4086_v49, %v685_v60  ;;  %v658_v63 = vadd.f32 1e-06, %v612_v50  ;;  %v614_v57 = vmul.f32 %v3201_v16, %v4160_v24  ;;  %v625_v22 = vand.u32 2147483648, %v4170_v46 }
 0x1ac   : > { %v3203_v40 = vpop.eup %3202  ;;  %5285 = vst [vmem:[#allocation16_spill] sm:$0xff] %v4236_v2  ;;  %v706_v7 = vmul.f32 %v4086_v49, %v686_v53  ;;  %v632_v16 = vand.u32 2147483648, %v4181_v6  ;;  %vm636_vm13 = vcmp.eq.f32.partialorder %v4216_v48, inf  ;;  %vm638_vm14 = vcmp.eq.f32.partialorder %v4216_v48, 0.0 }
 0x1ad   : > { %v3205_v52 = vpop.eup %3204  ;;  %v4242_v47 = vadd.f32 %v4092_v55, %v705_v62  ;;  %v687_v3 = vmul.f32 %v3203_v40, %v4029_v8  ;;  %3214 = vrcp.f32 %v658_v63  ;;  %v616_v29 = vsel %vm615_vm7, %v4160_v24, %v614_v57 }
 0x1ae   : > { %v3207_v45 = vpop.eup %3206  ;;  %v619_v44 = vsel %vm617_vm8, %v618_v35, %v616_v29  ;;  %v621_v10 = vmul.f32 %v3205_v52, %v4170_v46  ;;  %3216 = vrsqrt.f32 %v4229_v56  ;;  %v4264_v53 = vadd.f32 %v4092_v55, %v706_v7 }
 0x1af   : > { %v3209_v61 = vpop.eup %3208  ;;  %v707_v8 = vmul.f32 %v4086_v49, %v687_v3  ;;  %v659_v60 = vadd.f32 1e-06, %v619_v44  ;;  %v688_v0 = vmul.f32 %v3207_v45, %v4036_v43  ;;  %vm643_vm15 = vcmp.eq.f32.partialorder %v4229_v56, inf }
 0x1b0   : > { %v623_v24 = vsel %vm622_vm9, %v4170_v46, %v621_v10  ;;  %v628_v35 = vmul.f32 %v3209_v61, %v4181_v6  ;;  %vm645_vm0 = vcmp.eq.f32.partialorder %v4229_v56, 0.0 }
 0x1b1   : > { %v4267_v50 = vadd.f32 %v4092_v55, %v707_v8  ;;  %3218 = vrcp.f32 %v659_v60  ;;  %v626_v62 = vsel %vm624_vm10, %v625_v22, %v623_v24  ;;  %v708_v7 = vmul.f32 %v4086_v49, %v688_v0 }
 0x1b2   : > { %v660_v63 = vadd.f32 1e-06, %v626_v62  ;;  %v630_v43 = vsel %vm629_vm11, %v4181_v6, %v628_v35  ;;  %v639_v6 = vand.u32 2147483648, %v4216_v48 }
 0x1b3   : > { %v3211_v57 = vpop.eup %3210  ;;  %v633_v52 = vsel %vm631_vm12, %v632_v16, %v630_v43  ;;  %v4284_v8 = vadd.f32 %v4092_v55, %v708_v7 }
 0x1b4   : > { %v3213_v3 = vpop.eup %3212  ;;  %v689_v29 = vmul.f32 %v3211_v57, %v4039_v15  ;;  %3220 = vrcp.f32 %v660_v63  ;;  %v661_v45 = vadd.f32 1e-06, %v633_v52 }
 0x1b5   : > { %v635_v46 = vmul.f32 %v3213_v3, %v4216_v48  ;;  %5286 = vst [vmem:[#allocation17_spill] sm:$0xff] %v4284_v8 }
 0x1b6   : > { %v709_v44 = vmul.f32 %v4086_v49, %v689_v29  ;;  %3222 = vrcp.f32 %v661_v45 }
 0x1b7   : > { %v3215_v10 = vpop.eup %3214  ;;  %v637_v22 = vsel %vm636_vm13, %v4216_v48, %v635_v46  ;;  %v646_v48 = vand.u32 2147483648, %v4229_v56 }
 0x1b8   : > { %v3217_v61 = vpop.eup %3216  ;;  %v4287_v15 = vadd.f32 %v4092_v55, %v709_v44  ;;  %v690_v60 = vmul.f32 %v3215_v10, %v4046_v51  ;;  %v640_v0 = vsel %vm638_vm14, %v639_v6, %v637_v22 }
 0x1b9   : > { %v662_v24 = vadd.f32 1e-06, %v640_v0  ;;  %v642_v35 = vmul.f32 %v3217_v61, %v4229_v56 }
 0x1ba   : > { %5287 = vst [vmem:[#allocation18_spill] sm:$0xff] %v4287_v15  ;;  %v710_v43 = vmul.f32 %v4086_v49, %v690_v60 }
 0x1bb   : > { %v3219_v62 = vpop.eup %3218  ;;  %3224 = vrcp.f32 %v662_v24  ;;  %v644_v63 = vsel %vm643_vm15, %v4229_v56, %v642_v35 }
 0x1bc   : > { %v691_v51 = vmul.f32 %v3219_v62, %v4049_v17  ;;  %v647_v57 = vsel %vm645_vm0, %v646_v48, %v644_v63  ;;  %v4302_v46 = vadd.f32 %v4092_v55, %v710_v43 }
 0x1bd   : > { %v663_v52 = vadd.f32 1e-06, %v647_v57 }
 0x1be   : > { %v3221_v3 = vpop.eup %3220  ;;  %v711_v7 = vmul.f32 %v4086_v49, %v691_v51 }
 0x1bf   : > { %v692_v29 = vmul.f32 %v3221_v3, %v4056_v59  ;;  %3226 = vrcp.f32 %v663_v52 }
 0x1c0   : > { %v3223_v45 = vpop.eup %3222  ;;  %v4305_v44 = vadd.f32 %v4092_v55, %v711_v7 }
 0x1c1   : > { %v712_v56 = vmul.f32 %v4086_v49, %v692_v29  ;;  %v693_v17 = vmul.f32 %v3223_v45, %v4059_v23 }
 0x1c3   : > { %v713_v10 = vmul.f32 %v4086_v49, %v693_v17  ;;  %v4313_v59 = vadd.f32 %v4092_v55, %v712_v56 }
 0x1c5   : > { %v3225_v22 = vpop.eup %3224  ;;  %v4316_v61 = vadd.f32 %v4092_v55, %v713_v10 }
 0x1c6   : > { %v694_v60 = vmul.f32 %v3225_v22, %v4066_v5 }
 0x1c8   : > { %v714_v23 = vmul.f32 %v4086_v49, %v694_v60 }
 0x1c9   : > { %v3227_v24 = vpop.eup %3226 }
 0x1ca   : > { %v695_v35 = vmul.f32 %v3227_v24, %v4069_v28  ;;  %v4325_v62 = vadd.f32 %v4092_v55, %v714_v23 }
 0x1cc   : > { %v715_v48 = vmul.f32 %v4086_v49, %v695_v35 }
 0x1ce   : > { %v4328_v63 = vadd.f32 %v4092_v55, %v715_v48 }
 0x1cf LB: >> { %v5288_v37 = vld [vmem:[#allocation14_spill] sm:$0xff]  ;;  %v5289_v30 = vld [vmem:[#allocation13_spill] sm:$0xff]  ;;  %s2698_s26 = sshll.u32 %s3670_s21, 6  ;;  %v5291_v9 = vld [vmem:[#allocation15_spill] sm:$0xff]  ;;  %v5295_v40 = vpack.c.bf16 %v4267_v50, %v4264_v53  ;;  %v5299_v6 = vpack.c.bf16 %v4305_v44, %v4302_v46  ;;  %v5300_v0 = vpack.c.bf16 %v4316_v61, %v4313_v59  ;;  %s805_s23 = scalar_lea.vmem %s5249_s3, %s3670_s21  ;;  %vm990_vm1 = vcmask 261120   ;;  %s3670_s21 = sphi %s4384_s21, %s769_s21   ;;  %v3666_v11 = vphi %v3907_v11, %v5334_v11   ;;  %v3662_v13 = vphi %v3911_v13, %v5333_v13   ;;  %v3658_v12 = vphi %v3909_v12, %v5332_v12   ;;  %v3654_v14 = vphi %v3913_v14, %v5331_v14   ;;  %v3650_v18 = vphi %v3925_v18, %v5330_v18   ;;  %v3646_v19 = vphi %v3928_v19, %v5329_v19   ;;  %v3642_v20 = vphi %v3931_v20, %v5328_v20   ;;  %v3638_v21 = vphi %v3934_v21, %v5327_v21   ;;  %v3634_v25 = vphi %v3946_v25, %v5326_v25   ;;  %v3630_v26 = vphi %v3949_v26, %v5325_v26   ;;  %v3626_v27 = vphi %v3952_v27, %v5324_v27   ;;  %v3622_v31 = vphi %v3964_v31, %v5323_v31   ;;  %v3618_v32 = vphi %v3967_v32, %v5322_v32   ;;  %v3614_v33 = vphi %v3970_v33, %v5321_v33   ;;  %v3610_v34 = vphi %v3973_v34, %v5320_v34   ;;  %v3606_v36 = vphi %v3979_v36, %v5319_v36  }
 0x1d0   : >> { %v5290_v54 = vpack.c.bf16 %v5288_v37, %v5289_v30  ;;  %s788_s16 = scalar_lea.vmem %s5248_s2, %s2698_s26  ;;  %v5292_v58 = vpack.c.bf16 %v4219_v42, %v5291_v9  ;;  %v5293_v2 = vld [vmem:[#allocation16_spill] sm:$0xff]  ;;  %v5296_v15 = vld [vmem:[#allocation18_spill] sm:$0xff]  ;;  %v5297_v8 = vld [vmem:[#allocation17_spill] sm:$0xff]  ;;  %v5301_v43 = vpack.c.bf16 %v4328_v63, %v4325_v62  ;;  %s3677_s15 = smov 96  }
 0x1d1   : >> { %v3228_v5 = vld [vmem:[%s788_s16] sm:$0xff]   ;;  %v3229_v28 = vld [vmem:[%s788_s16 + $0x8] sm:$0xff]   ;;  %v3230_v49 = vld [vmem:[%s788_s16 + $0x10] sm:$0xff]   ;;  %v5294_v39 = vpack.c.bf16 %v4242_v47, %v5293_v2  ;;  %v5298_v16 = vpack.c.bf16 %v5296_v15, %v5297_v8  ;;  %s3678_s24 = smov 64   ;;  %s2699_s20 = sshll.u32 %s3670_s21, 4 }
 0x1d2   : >> { %2839 = vmatprep.mubr.bf16.mxu0 %v5290_v54  ;;  %2823 = vmatprep.subr.bf16.mxu0 %v3228_v5  ;;  %v3231_v55 = vld [vmem:[%s788_s16 + $0x18] sm:$0xff]   ;;  %v3232_v51 = vld [vmem:[%s788_s16 + $0x20] sm:$0xff]   ;;  %v3233_v57 = vld [vmem:[%s788_s16 + $0x28] sm:$0xff]   ;;  %s4656_s27 = scalar_lea.vmem %s5250_s4, %s2699_s20  ;;  %s769_s21 = sadd.s32 1, %s3670_s21  }
 0x1d3   : >> { %2824 = vmatpush3.bf16.msra.mxu0 %v3228_v5  ;;  %v3234_v52 = vld [vmem:[%s788_s16 + $0x30] sm:$0xff]   ;;  %v3235_v3 = vld [vmem:[%s788_s16 + $0x38] sm:$0xff]   ;;  %v2631_v29 = vld [vmem:[%s805_s23] ss:$0 sm:$0xff]  ;;  %p4733_p6 = scmp.ge.s32.totalorder %s769_s21, 4  }
 0x1d4   : >> { %2825 = vmatprep.subr.bf16.mxu0 %v3229_v28  ;;  %s2469_s18 = sshll.u32 (%p4733_p6), %s4334_s19, 4  ;;  %s3680_s23 = smov (%p4733_p6), [#allocation7]   ;;  %s5199_s18 = int_to_ptr.vmem [resolvable:$true] %s2469_s18 }
 0x1d5   : > { %s3464_s22 = scalar_lea.vmem (%p4733_p6), %s5199_s18, 2048 }
 0x1d6   : > { %p3465_p8 = scmp.ne.s32.totalorder (%p4733_p6), %s5199_s18, %s3464_s22 }
 0x1d7   : >> { %2826 = vmatpush3.bf16.msra.mxu0 %v3229_v28 }
 0x1d8   : >> { %2827 = vmatprep.subr.bf16.mxu0 %v3230_v49  ;;  %p3466_p10 = pnand (%p4733_p6), %p3465_p8, %p3824_p12 }
 0x1da   : > { %p3467_p13 = pneg (%p4733_p6), %p3466_p10 }
 0x1db   : >> { %2828 = vmatpush3.bf16.msra.mxu0 %v3230_v49 }
 0x1dc   : >> { %2829 = vmatprep.subr.bf16.mxu0 %v3231_v55 }
 0x1df   : >> { %2830 = vmatpush3.bf16.msra.mxu0 %v3231_v55 }
 0x1e0   : >> { %2831 = vmatprep.subr.bf16.mxu0 %v3232_v51 }
 0x1e3   : >> { %2832 = vmatpush3.bf16.msra.mxu0 %v3232_v51 }
 0x1e4   : >> { %2833 = vmatprep.subr.bf16.mxu0 %v3233_v57 }
 0x1e7   : >> { %2834 = vmatpush3.bf16.msra.mxu0 %v3233_v57 }
 0x1e8   : >> { %2835 = vmatprep.subr.bf16.mxu0 %v3234_v52 }
 0x1eb   : >> { %2836 = vmatpush3.bf16.msra.mxu0 %v3234_v52 }
 0x1ec   : >> { %2837 = vmatprep.subr.bf16.mxu0 %v3235_v3 }
 0x1ef   : >> { %2838 = vmatpush3.bf16.msra.mxu0 %v3235_v3 }
 0x1f2   : >> { %2840 = vmatmul.mubr.bf16.vlgmr.msra.gmra.mrb[0].mxu0 %v5292_v58 }
 0x1f3   : >> { %2843 = vmatprep.mubr.bf16.mxu0 %v5294_v39 }
 0x1fa   : >> { %2844 = vmatmul.mubr.bf16.gmra.mrb[4].mxu0 %v5295_v40 }
 0x1fb   : >> { %2847 = vmatprep.mubr.bf16.mxu0 %v5298_v16 }
 0x202   : >> { %2848 = vmatmul.mubr.bf16.gmra.mrb[8].mxu0 %v5299_v6 }
 0x203   : >> { %2851 = vmatprep.mubr.bf16.mxu0 %v5300_v0 }
 0x20a   : >> { %2852 = vmatmul.mubr.bf16.gmra.mrb[12].mxu0 %v5301_v43 }
 0x2c5   : >> { %v2841_v7 = vpop.f32.mrb[0].mxu0 }
 0x2c6   : >> { %v895_v45 = vpop.f32.mrb[1].mxu0  ;;  %v904_v17 = vadd.f32 %v2841_v7, %v2631_v29 }
 0x2c7   : >> { %v2842_v56 = vpop.f32.mrb[2].mxu0  ;;  %v896_v60 = vadd.f32 %v2631_v29, %v895_v45 }
 0x2c8   : >> { %v907_v10 = vadd.f32 %v2842_v56, %v2631_v29  ;;  %v898_v22 = vpop.f32.mrb[3].mxu0 }
 0x2c9   : >> { %v899_v24 = vadd.f32 %v2631_v29, %v898_v22 }
 0x2ca   : >> { %v4469_v23 = vpack.c.bf16 %v907_v10, %v904_v17 }
 0x2cb   : >> { %v958_v35 = vpack.c.bf16 %v899_v24, %v896_v60 }
 0x2cd   : >> { %974 = vrot.lane.b32.xlu0 %v958_v35, %s3677_s15  ;;  %2871 = vmatprep.mubr.msk.bf16.mxu1 %vm990_vm1, %v958_v35  ;;  %v2845_v48 = vpop.f32.mrb[4].mxu0 }
 0x2ce   : >> { %v920_v5 = vadd.f32 %v2845_v48, %v2631_v29  ;;  %v911_v28 = vpop.f32.mrb[5].mxu0 }
 0x2cf   : >> { %v912_v49 = vadd.f32 %v2631_v29, %v911_v28  ;;  %v2846_v55 = vpop.f32.mrb[6].mxu0 }
 0x2d0   : >> { %v923_v51 = vadd.f32 %v2846_v55, %v2631_v29  ;;  %v914_v57 = vpop.f32.mrb[7].mxu0 }
 0x2d1   : >> { %v915_v52 = vadd.f32 %v2631_v29, %v914_v57  ;;  %976 = vrot.lane.b32.xlu0 %v4469_v23, %s3677_s15 }
 0x2d2   : >> { %v4475_v3 = vpack.c.bf16 %v923_v51, %v920_v5 }
 0x2d3   : >> { %v4477_v7 = vpack.c.bf16 %v915_v52, %v912_v49 }
 0x2d5   : >> { %978 = vrot.lane.b32.xlu1 %v4477_v7, %s3677_s15  ;;  %v2849_v45 = vpop.f32.mrb[8].mxu0 }
 0x2d6   : >> { %v936_v56 = vadd.f32 %v2849_v45, %v2631_v29  ;;  %v927_v17 = vpop.f32.mrb[9].mxu0 }
 0x2d7   : >> { %v928_v10 = vadd.f32 %v2631_v29, %v927_v17  ;;  %v2850_v22 = vpop.f32.mrb[10].mxu0 }
 0x2d8   : >> { %v939_v60 = vadd.f32 %v2850_v22, %v2631_v29  ;;  %v930_v24 = vpop.f32.mrb[11].mxu0 }
 0x2d9   : >> { %980 = vrot.lane.b32.xlu1 %v4475_v3, %s3677_s15  ;;  %v931_v48 = vadd.f32 %v2631_v29, %v930_v24 }
 0x2da   : >> { %v4483_v28 = vpack.c.bf16 %v939_v60, %v936_v56 }
 0x2db   : >> { %v4485_v5 = vpack.c.bf16 %v931_v48, %v928_v10 }
 0x2dd   : >> { %v2853_v49 = vpop.f32.mrb[12].mxu0  ;;  %984 = vrot.lane.b32.xlu1 %v4483_v28, %s3677_s15  ;;  %982 = vrot.lane.b32.xlu0 %v4485_v5, %s3677_s15 }
 0x2de   : >> { %v952_v55 = vadd.f32 %v2853_v49, %v2631_v29  ;;  %v943_v51 = vpop.f32.mrb[13].mxu0 }
 0x2df   : >> { %v944_v57 = vadd.f32 %v2631_v29, %v943_v51  ;;  %v2854_v52 = vpop.f32.mrb[14].mxu0 }
 0x2e0   : >> { %v955_v45 = vadd.f32 %v2854_v52, %v2631_v29  ;;  %v946_v17 = vpop.f32.mrb[15].mxu0 }
 0x2e1   : >> { %v947_v22 = vadd.f32 %v2631_v29, %v946_v17 }
 0x2e2   : >> { %v4491_v0 = vpack.c.bf16 %v955_v45, %v952_v55 }
 0x2e3   : >> { %v4493_v56 = vpack.c.bf16 %v947_v22, %v944_v57 }
 0x2e4   : >> { %988 = vrot.lane.b32.xlu1 %v4491_v0, %s3677_s15 }
 0x2e5   : >> { %986 = vrot.lane.b32.xlu0 %v4493_v56, %s3677_s15  ;;  %s3468_s15 = sshll.u32 (%p4733_p6), %s3680_s23, 4  ;;  %s3469_s15 = int_to_ptr.vmem [resolvable:$false] %s3468_s15 }
 0x2e6   : > { %p3471_p3 = scmp.lt.s32.totalorder (%p4733_p6), %s5199_s18, %s3469_s15 }
 0x2e8   : >> { %1288 = vrot.lane.b32.xlu1 %v958_v35, %s3678_s24 }
 0x33f   : >> { %v975_v10 = vpop.permute.xlu0 %974 }
 0x340   : >> { %2955 = vmatprep.subr.msk.bf16.mxu1 %vm990_vm1, %v975_v10  ;;  %v1016_v60 = vsel %vm990_vm1, %v975_v10, 0 }
 0x341   : >> { %2856 = vmatpush3.bf16.xpose.msra.mxu1 %v1016_v60 }
 0x343   : >> { %v977_v29 = vpop.permute.xlu0 %976 }
 0x344   : >> { %2956 = vmatprep.subr.msk.bf16.mxu1 %vm990_vm1, %v977_v29  ;;  %v1019_v48 = vsel %vm990_vm1, %v977_v29, 0 }
 0x347   : >> { %v979_v24 = vpop.permute.xlu1 %978 }
 0x348   : >> { %v1022_v55 = vsel %vm990_vm1, %v979_v24, 0 }
 0x349   : >> { %2858 = vmatpush3.bf16.xpose.msra.mxu1 %v1019_v48 }
 0x34a   : >> { %2957 = vmatprep.subr.msk.bf16.mxu1 %vm990_vm1, %v979_v24 }
 0x34b   : >> { %v981_v49 = vpop.permute.xlu1 %980 }
 0x34c   : >> { %v1025_v52 = vsel %vm990_vm1, %v981_v49, 0 }
 0x34f   : >> { %v985_v51 = vpop.permute.xlu1 %984  ;;  %v983_v57 = vpop.permute.xlu0 %982 }
 0x350   : >> { %v1028_v17 = vsel %vm990_vm1, %v983_v57, 0  ;;  %v1031_v10 = vsel %vm990_vm1, %v985_v51, 0 }
 0x351   : >> { %2860 = vmatpush3.bf16.xpose.msra.mxu1 %v1022_v55 }
 0x352   : >> { %2958 = vmatprep.subr.msk.bf16.mxu1 %vm990_vm1, %v981_v49 }
 0x356   : >> { %v989_v35 = vpop.permute.xlu1 %988 }
 0x357   : >> { %v987_v22 = vpop.permute.xlu0 %986  ;;  %v1037_v29 = vsel %vm990_vm1, %v989_v35, 0 }
 0x358   : >> { %v1034_v60 = vsel %vm990_vm1, %v987_v22, 0 }
 0x359   : >> { %2862 = vmatpush3.bf16.xpose.msra.mxu1 %v1025_v52 }
 0x35a   : >> { %v1289_v45 = vpop.permute.xlu1 %1288  ;;  %2959 = vmatprep.subr.msk.bf16.mxu1 %vm990_vm1, %v983_v57 }
 0x35b   : >> { %2887 = vmatprep.subr.bf16.mxu0 %v1289_v45 }
 0x35c   : >> { %2888 = vmatpush3.bf16.msra.mxu0 %v1289_v45 }
 0x361   : >> { %2864 = vmatpush3.bf16.xpose.msra.mxu1 %v1028_v17 }
 0x362   : >> { %2960 = vmatprep.subr.msk.bf16.mxu1 %vm990_vm1, %v985_v51 }
 0x369   : >> { %2866 = vmatpush3.bf16.xpose.msra.mxu1 %v1031_v10 }
 0x36a   : >> { %2961 = vmatprep.subr.msk.bf16.mxu1 %vm990_vm1, %v987_v22 }
 0x371   : >> { %2868 = vmatpush3.bf16.xpose.msra.mxu1 %v1034_v60 }
 0x372   : >> { %2962 = vmatprep.subr.msk.bf16.mxu1 %vm990_vm1, %v989_v35 }
 0x379   : >> { %2870 = vmatpush3.bf16.xpose.msra.mxu1 %v1037_v29 }
 0x37a   : >> { %2939 = vmatprep.subr.bf16.mxu1 %v1289_v45 }
 0x380   : >> { %2872 = vmatmul.mubr.msk.bf16.vlgmr.msra.gmra.mrb[0].mxu1 %vm990_vm1, %v4469_v23 }
 0x381   : >> { %2875 = vmatprep.mubr.msk.bf16.mxu1 %vm990_vm1, %v4477_v7  ;;  %2947 = vmatpush3.bf16.msra.mxu1 %v1289_v45 }
 0x388   : >> { %2876 = vmatmul.mubr.msk.bf16.gmra.mrb[4].mxu1 %vm990_vm1, %v4475_v3 }
 0x389   : >> { %2879 = vmatprep.mubr.msk.bf16.mxu1 %vm990_vm1, %v4485_v5 }
 0x390   : >> { %2880 = vmatmul.mubr.msk.bf16.gmra.mrb[8].mxu1 %vm990_vm1, %v4483_v28 }
 0x391   : >> { %2883 = vmatprep.mubr.msk.bf16.mxu1 %vm990_vm1, %v4493_v56 }
 0x398   : >> { %2884 = vmatmul.mubr.msk.bf16.gmra.mrb[12].mxu1 %vm990_vm1, %v4491_v0 }
 0x453   : >> { %v2873_v24 = vpop.f32.mrb[0].mxu1 }
 0x454   : >> { %v1082_v48 = vadd.f32 %v2873_v24, %v3999_v41  ;;  %v1073_v49 = vpop.f32.mrb[1].mxu1 }
 0x455   : >> { %v2874_v55 = vpop.f32.mrb[2].mxu1  ;;  %v1074_v57 = vadd.f32 %v1073_v49, %v3999_v41 }
 0x456   : >> { %1140 = vmax.xlane.f32.xlu0 %v1082_v48  ;;  %v1076_v51 = vpop.f32.mrb[3].mxu1  ;;  %v1085_v45 = vadd.f32 %v2874_v55, %v3999_v41 }
 0x457   : >> { %v4532_v35 = vadd.f32 %v1076_v51, %v3999_v41 }
 0x459   : >> { %1138 = vmax.xlane.f32.xlu1 %v4532_v35 }
 0x45a   : >> { %1136 = vmax.xlane.f32.xlu0 %v1074_v57 }
 0x45b   : >> { %v2877_v52 = vpop.f32.mrb[4].mxu1 }
 0x45c   : >> { %v1098_v17 = vadd.f32 %v2877_v52, %v3999_v41  ;;  %v1089_v22 = vpop.f32.mrb[5].mxu1 }
 0x45d   : >> { %v2878_v10 = vpop.f32.mrb[6].mxu1  ;;  %v1090_v29 = vadd.f32 %v1089_v22, %v3999_v41 }
 0x45e   : >> { %v1092_v60 = vpop.f32.mrb[7].mxu1  ;;  %1148 = vmax.xlane.f32.xlu1 %v1098_v17  ;;  %1142 = vmax.xlane.f32.xlu0 %v1085_v45  ;;  %v4540_v24 = vadd.f32 %v2878_v10, %v3999_v41 }
 0x45f   : >> { %v4544_v51 = vadd.f32 %v1092_v60, %v3999_v41 }
 0x462   : >> { %1144 = vmax.xlane.f32.xlu1 %v1090_v29  ;;  %1150 = vmax.xlane.f32.xlu0 %v4540_v24 }
 0x463   : >> { %v2881_v49 = vpop.f32.mrb[8].mxu1 }
 0x464   : >> { %v4547_v55 = vadd.f32 %v2881_v49, %v3999_v41  ;;  %v1105_v52 = vpop.f32.mrb[9].mxu1 }
 0x465   : >> { %v2882_v6 = vpop.f32.mrb[10].mxu1  ;;  %v4552_v22 = vadd.f32 %v1105_v52, %v3999_v41 }
 0x466   : >> { %v1108_v16 = vpop.f32.mrb[11].mxu1  ;;  %1156 = vmax.xlane.f32.xlu1 %v4547_v55  ;;  %1146 = vmax.xlane.f32.xlu0 %v4544_v51  ;;  %v4555_v10 = vadd.f32 %v2882_v6, %v3999_v41 }
 0x467   : >> { %v4560_v49 = vadd.f32 %v1108_v16, %v3999_v41 }
 0x46a   : >> { %1152 = vmax.xlane.f32.xlu1 %v4552_v22  ;;  %1158 = vmax.xlane.f32.xlu0 %v4555_v10 }
 0x46b   : >> { %v2885_v60 = vpop.f32.mrb[12].mxu1 }
 0x46c   : >> { %v4563_v39 = vadd.f32 %v2885_v60, %v3999_v41  ;;  %v1121_v40 = vpop.f32.mrb[13].mxu1 }
 0x46d   : >> { %v2886_v43 = vpop.f32.mrb[14].mxu1  ;;  %v4568_v6 = vadd.f32 %v1121_v40, %v3999_v41 }
 0x46e   : >> { %v1124_v54 = vpop.f32.mrb[15].mxu1  ;;  %1164 = vmax.xlane.f32.xlu1 %v4563_v39  ;;  %1154 = vmax.xlane.f32.xlu0 %v4560_v49  ;;  %v4582_v40 = vadd.f32 %v2886_v43, %v3999_v41 }
 0x46f   : >> { %v4586_v16 = vadd.f32 %v1124_v54, %v3999_v41 }
 0x472   : >> { %1160 = vmax.xlane.f32.xlu1 %v4568_v6 }
 0x483   : >> { %1290 = vrot.lane.b32.xlu1 %v4469_v23, %s3678_s24 }
 0x484   : >> { %1292 = vrot.lane.b32.xlu0 %v4477_v7, %s3678_s24 }
 0x487   : >> { %1294 = vrot.lane.b32.xlu1 %v4475_v3, %s3678_s24 }
 0x488   : >> { %1296 = vrot.lane.b32.xlu0 %v4485_v5, %s3678_s24 }
 0x48b   : >> { %1300 = vrot.lane.b32.xlu1 %v4493_v56, %s3678_s24 }
 0x4a7   : >> { %1166 = vmax.xlane.f32.xlu0 %v4582_v40 }
 0x4ab   : >> { %1162 = vmax.xlane.f32.xlu0 %v4586_v16 }
 0x4c1   : >> { %1298 = vrot.lane.b32.xlu0 %v4483_v28, %s3678_s24 }
 0x4e3   : >> { %v1141_v23 = vpop.xlane.xlu0 %1140 }
 0x4e4   : >> { %v1170_v3 = vsub.f32 %v1082_v48, %v1141_v23 }
 0x4e6   : >> { %v1188_v7 = vmul.f32 1.442695, %v1170_v3  ;;  %v1139_v5 = vpop.xlane.xlu1 %1138 }
 0x4e7   : >> { %v1137_v52 = vpop.xlane.xlu0 %1136  ;;  %v1169_v54 = vsub.f32 %v4532_v35, %v1139_v5 }
 0x4e8   : >> { %3238 = vpow2.f32 %v1188_v7  ;;  %v1168_v56 = vsub.f32 %v1074_v57, %v1137_v52 }
 0x4e9   : >> { %v1186_v23 = vmul.f32 1.442695, %v1169_v54 }
 0x4ea   : >> { %v1184_v60 = vmul.f32 1.442695, %v1168_v56 }
 0x4eb   : >> { %v1149_v43 = vpop.xlane.xlu1 %1148  ;;  %v1143_v58 = vpop.xlane.xlu0 %1142 }
 0x4ec   : >> { %3240 = vpow2.f32 %v1184_v60  ;;  %v1174_v2 = vsub.f32 %v1098_v17, %v1149_v43  ;;  %v1171_v8 = vsub.f32 %v1085_v45, %v1143_v58 }
 0x4ee   : >> { %v1196_v9 = vmul.f32 1.442695, %v1174_v2  ;;  %v1190_v15 = vmul.f32 1.442695, %v1171_v8 }
 0x4ef   : >> { %v1145_v30 = vpop.xlane.xlu1 %1144  ;;  %v1151_v37 = vpop.xlane.xlu0 %1150 }
 0x4f0   : >> { %3242 = vpow2.f32 %v1196_v9  ;;  %v1172_v28 = vsub.f32 %v1090_v29, %v1145_v30  ;;  %v1175_v48 = vsub.f32 %v4540_v24, %v1151_v37 }
 0x4f1   : >> { %3244 = vpow2.f32 %v1190_v15 }
 0x4f2   : >> { %v4593_v3 = vpop.eup %3238  ;;  %v1192_v57 = vmul.f32 1.442695, %v1172_v28  ;;  %v1198_v58 = vmul.f32 1.442695, %v1175_v48 }
 0x4f3   : >> { %v1157_v7 = vpop.xlane.xlu1 %1156  ;;  %1220 = vadd.xlane.f32.xlu0 %v4593_v3  ;;  %v1147_v17 = vpop.xlane.xlu0 %1146 }
 0x4f4   : >> { %3246 = vpow2.f32 %v1192_v57  ;;  %v1178_v2 = vsub.f32 %v4547_v55, %v1157_v7  ;;  %v1173_v8 = vsub.f32 %v4544_v51, %v1147_v17 }
 0x4f5   : >> { %3248 = vpow2.f32 %v1186_v23 }
 0x4f6   : >> { %v4598_v9 = vpop.eup %3240  ;;  %v1194_v30 = vmul.f32 1.442695, %v1173_v8  ;;  %3250 = vpow2.f32 %v1198_v58  ;;  %v1204_v35 = vmul.f32 1.442695, %v1178_v2 }
 0x4f7   : >> { %v1153_v37 = vpop.xlane.xlu1 %1152  ;;  %1216 = vadd.xlane.f32.xlu0 %v4598_v9  ;;  %v1159_v15 = vpop.xlane.xlu0 %1158 }
 0x4f8   : >> { %v1176_v45 = vsub.f32 %v4552_v22, %v1153_v37  ;;  %3252 = vpow2.f32 %v1194_v30  ;;  %v1179_v52 = vsub.f32 %v4555_v10, %v1159_v15 }
 0x4f9   : >> { %3254 = vpow2.f32 %v1204_v35 }
 0x4fa   : >> { %v4602_v29 = vpop.eup %3242  ;;  %v1200_v5 = vmul.f32 1.442695, %v1176_v45  ;;  %v1206_v48 = vmul.f32 1.442695, %v1179_v52 }
 0x4fb   : >> { %v4604_v24 = vpop.eup %3244  ;;  %1228 = vadd.xlane.f32.xlu1 %v4602_v29  ;;  %v1165_v51 = vpop.xlane.xlu1 %1164 }
 0x4fc   : >> { %v1155_v55 = vpop.xlane.xlu0 %1154  ;;  %1222 = vadd.xlane.f32.xlu0 %v4604_v24  ;;  %v1182_v60 = vsub.f32 %v4563_v39, %v1165_v51  ;;  %3256 = vpow2.f32 %v1200_v5 }
 0x4fd   : >> { %v1177_v56 = vsub.f32 %v4560_v49, %v1155_v55 }
 0x4fe   : >> { %v4611_v22 = vpop.eup %3246  ;;  %v1212_v10 = vmul.f32 1.442695, %v1182_v60 }
 0x4ff   : >> { %v1202_v43 = vmul.f32 1.442695, %v1177_v56  ;;  %v4613_v54 = vpop.eup %3248  ;;  %1224 = vadd.xlane.f32.xlu1 %v4611_v22  ;;  %v1161_v28 = vpop.xlane.xlu1 %1160 }
 0x500   : >> { %v1180_v23 = vsub.f32 %v4568_v6, %v1161_v28  ;;  %1218 = vadd.xlane.f32.xlu0 %v4613_v54  ;;  %v4618_v57 = vpop.eup %3250  ;;  %v1293_v17 = vpop.permute.xlu0 %1292 }
 0x501   : >> { %3258 = vpow2.f32 %v1202_v43 }
 0x502   : >> { %v4620_v49 = vpop.eup %3252  ;;  %3260 = vpow2.f32 %v1206_v48  ;;  %v1208_v7 = vmul.f32 1.442695, %v1180_v23 }
 0x503   : >> { %v1291_v39 = vpop.permute.xlu1 %1290  ;;  %1230 = vadd.xlane.f32.xlu1 %v4618_v57  ;;  %3262 = vpow2.f32 %v1212_v10  ;;  %v4624_v6 = vpop.eup %3254 }
 0x504   : >> { %1226 = vadd.xlane.f32.xlu0 %v4620_v49  ;;  %2889 = vmatprep.subr.bf16.mxu0 %v1291_v39  ;;  %3264 = vpow2.f32 %v1208_v7  ;;  %v1297_v30 = vpop.permute.xlu0 %1296 }
 0x505   : >> { %2940 = vmatprep.subr.bf16.mxu1 %v1291_v39  ;;  %2890 = vmatpush3.bf16.msra.mxu0 %v1291_v39 }
 0x506   : >> { %2948 = vmatpush3.bf16.msra.mxu1 %v1291_v39  ;;  %2891 = vmatprep.subr.bf16.mxu0 %v1293_v17  ;;  %v4627_v2 = vpop.eup %3256 }
 0x507   : >> { %2941 = vmatprep.subr.bf16.mxu1 %v1293_v17  ;;  %1236 = vadd.xlane.f32.xlu1 %v4624_v6  ;;  %v1295_v58 = vpop.permute.xlu1 %1294 }
 0x509   : >> { %2892 = vmatpush3.bf16.msra.mxu0 %v1293_v17 }
 0x50a   : >> { %2949 = vmatpush3.bf16.msra.mxu1 %v1293_v17  ;;  %2893 = vmatprep.subr.bf16.mxu0 %v1295_v58 }
 0x50b   : >> { %v4629_v8 = vpop.eup %3258  ;;  %2942 = vmatprep.subr.bf16.mxu1 %v1295_v58  ;;  %1232 = vadd.xlane.f32.xlu1 %v4627_v2  ;;  %v1301_v43 = vpop.permute.xlu1 %1300 }
 0x50c   : >> { %1234 = vadd.xlane.f32.xlu0 %v4629_v8  ;;  %v4633_v37 = vpop.eup %3260 }
 0x50d   : >> { %2894 = vmatpush3.bf16.msra.mxu0 %v1295_v58  ;;  %v4635_v15 = vpop.eup %3262 }
 0x50e   : >> { %2950 = vmatpush3.bf16.msra.mxu1 %v1295_v58  ;;  %2895 = vmatprep.subr.bf16.mxu0 %v1297_v30  ;;  %v4639_v35 = vpop.eup %3264 }
 0x50f   : >> { %2943 = vmatprep.subr.bf16.mxu1 %v1297_v30  ;;  %1238 = vadd.xlane.f32.xlu1 %v4633_v37 }
 0x510   : >> { %1244 = vadd.xlane.f32.xlu0 %v4635_v15 }
 0x511   : >> { %2896 = vmatpush3.bf16.msra.mxu0 %v1297_v30 }
 0x512   : >> { %2951 = vmatpush3.bf16.msra.mxu1 %v1297_v30 }
 0x513   : >> { %1240 = vadd.xlane.f32.xlu1 %v4639_v35 }
 0x534   : >> { %v1167_v45 = vpop.xlane.xlu0 %1166 }
 0x535   : >> { %v1183_v51 = vsub.f32 %v4582_v40, %v1167_v45 }
 0x537   : >> { %v1214_v55 = vmul.f32 1.442695, %v1183_v51 }
 0x538   : >> { %v1163_v5 = vpop.xlane.xlu0 %1162 }
 0x539   : >> { %3266 = vpow2.f32 %v1214_v55  ;;  %v1181_v52 = vsub.f32 %v4586_v16, %v1163_v5 }
 0x53b   : >> { %v1210_v56 = vmul.f32 1.442695, %v1181_v52 }
 0x53c   : >> { %v1299_v60 = vpop.permute.xlu0 %1298 }
 0x53d   : >> { %3268 = vpow2.f32 %v1210_v56  ;;  %2897 = vmatprep.subr.bf16.mxu0 %v1299_v60  ;;  %2944 = vmatprep.subr.bf16.mxu1 %v1299_v60 }
 0x53e   : >> { %2898 = vmatpush3.bf16.msra.mxu0 %v1299_v60  ;;  %2952 = vmatpush3.bf16.msra.mxu1 %v1299_v60 }
 0x53f   : >> { %2899 = vmatprep.subr.bf16.mxu0 %v1301_v43  ;;  %2945 = vmatprep.subr.bf16.mxu1 %v1301_v43 }
 0x542   : >> { %2900 = vmatpush3.bf16.msra.mxu0 %v1301_v43  ;;  %2953 = vmatpush3.bf16.msra.mxu1 %v1301_v43 }
 0x543   : >> { %v4644_v28 = vpop.eup %3266 }
 0x544   : >> { %1246 = vadd.xlane.f32.xlu1 %v4644_v28 }
 0x547   : >> { %v4647_v40 = vpop.eup %3268 }
 0x548   : >> { %1242 = vadd.xlane.f32.xlu0 %v4647_v40 }
 0x55e   : >> { %1302 = vrot.lane.b32.xlu0 %v4491_v0, %s3678_s24  ;;  %s3470_s24 = scalar_lea.vmem (%p4733_p6), %s3469_s15, 4096 }
 0x55f   : > { %p3472_p7 = scmp.lt.s32.totalorder (%p4733_p6), %s3470_s24, %s3464_s22 }
 0x561   : > { %p3473_p9 = por (%p4733_p6), %p3472_p7, %p3471_p3 }
 0x563   : > { %p3474_p2 = pnand (%p4733_p6), %p3473_p9, %p3467_p13 }
 0x580   : >> { %v1221_v16 = vpop.xlane.xlu0 %1220 }
 0x581   : >> { %3270 = vrcp.f32 %v1221_v16 }
 0x584   : >> { %v1217_v48 = vpop.xlane.xlu0 %1216 }
 0x588   : >> { %v1229_v23 = vpop.xlane.xlu1 %1228 }
 0x589   : >> { %v1223_v10 = vpop.xlane.xlu0 %1222 }
 0x58a   : >> { %3272 = vrcp.f32 %v1223_v10 }
 0x58b   : >> { %3274 = vrcp.f32 %v1217_v48  ;;  %v3271_v0 = vpop.eup %3270 }
 0x58c   : >> { %v1225_v39 = vpop.xlane.xlu1 %1224  ;;  %v1266_v45 = vmul.f32 %v3271_v0, %v4593_v3 }
 0x58d   : >> { %v1219_v7 = vpop.xlane.xlu0 %1218 }
 0x58e   : >> { %3276 = vrcp.f32 %v1219_v7 }
 0x58f   : >> { %3278 = vrcp.f32 %v1229_v23 }
 0x590   : >> { %v1231_v17 = vpop.xlane.xlu1 %1230 }
 0x591   : >> { %3280 = vrcp.f32 %v1231_v17  ;;  %v1227_v55 = vpop.xlane.xlu0 %1226 }
 0x594   : >> { %v3273_v58 = vpop.eup %3272  ;;  %v1237_v30 = vpop.xlane.xlu1 %1236 }
 0x595   : >> { %v1267_v51 = vmul.f32 %v3273_v58, %v4604_v24  ;;  %v3275_v5 = vpop.eup %3274 }
 0x596   : >> { %v1264_v48 = vmul.f32 %v3275_v5, %v4598_v9 }
 0x597   : >> { %v1281_v52 = vpack.c.bf16 %v1267_v51, %v1266_v45 }
 0x598   : >> { %v3277_v56 = vpop.eup %3276  ;;  %v1233_v60 = vpop.xlane.xlu1 %1232 }
 0x599   : >> { %v3279_v43 = vpop.eup %3278  ;;  %3282 = vrcp.f32 %v1233_v60  ;;  %v1235_v16 = vpop.xlane.xlu0 %1234  ;;  %v1265_v23 = vmul.f32 %v3277_v56, %v4613_v54 }
 0x59a   : >> { %3284 = vrcp.f32 %v1235_v16  ;;  %v1270_v17 = vmul.f32 %v3279_v43, %v4602_v29 }
 0x59b   : >> { %v3281_v10 = vpop.eup %3280  ;;  %v1280_v7 = vpack.c.bf16 %v1265_v23, %v1264_v48  ;;  %v3236_v48 = vld [vmem:[%s4656_s27] sm:$0xff]  }
 0x59c   : >> { %v1271_v3 = vmul.f32 %v3281_v10, %v4618_v57  ;;  %v1239_v9 = vpop.xlane.xlu1 %1238 }
 0x59d   : >> { %2903 = vmatprep.mubr.bf16.mxu0 %v1280_v7  ;;  %3286 = vrcp.f32 %v1239_v9  ;;  %v1245_v29 = vpop.xlane.xlu0 %1244  ;;  %v3237_v7 = vld [vmem:[%s4656_s27 + $0x8] sm:$0xff]   ;;  %s2700_s27 = sshll.u32 (%p4733_p6), %s3754_s13, 11  ;;  %s2456_s13 = scalar_lea.sflag (%p4733_p6), [#allocation4], %s3869_s25 }
 0x59e   : >> { %v1283_v24 = vpack.c.bf16 %v1271_v3, %v1270_v17  ;;  %3288 = vrcp.f32 %v1227_v55  ;;  %s5197_s17 = scalar_lea.hbm (%p4733_p6), %s5255_s9, %s2700_s27 }
 0x59f   : >> { %3290 = vrcp.f32 %v1237_v30 }
 0x5a0   : >> { %v1241_v54 = vpop.xlane.xlu1 %1240  ;;  %3292 = vrcp.f32 %v1225_v39 }
 0x5a3   : >> { %v3283_v0 = vpop.eup %3282 }
 0x5a4   : >> { %v3285_v58 = vpop.eup %3284  ;;  %v1272_v45 = vmul.f32 %v3283_v0, %v4627_v2 }
 0x5a5   : >> { %v1273_v51 = vmul.f32 %v3285_v58, %v4629_v8 }
 0x5a7   : >> { %v1284_v60 = vpack.c.bf16 %v1273_v51, %v1272_v45  ;;  %v3287_v57 = vpop.eup %3286 }
 0x5a8   : >> { %v3289_v43 = vpop.eup %3288  ;;  %v1275_v16 = vmul.f32 %v3287_v57, %v4633_v37 }
 0x5a9   : >> { %2911 = vmatprep.mubr.bf16.mxu1 %v1284_v60  ;;  %v3291_v2 = vpop.eup %3290  ;;  %v1269_v30 = vmul.f32 %v3289_v43, %v4620_v49 }
 0x5aa   : >> { %v3293_v8 = vpop.eup %3292  ;;  %v1274_v39 = vmul.f32 %v3291_v2, %v4624_v6 }
 0x5ab   : >> { %v1268_v23 = vmul.f32 %v3293_v8, %v4611_v22 }
 0x5ac   : >> { %v1285_v10 = vpack.c.bf16 %v1275_v16, %v1274_v39 }
 0x5ad   : >> { %v1282_v3 = vpack.c.bf16 %v1269_v30, %v1268_v23 }
 0x5d1   : >> { %v1247_v5 = vpop.xlane.xlu1 %1246 }
 0x5d2   : >> { %3294 = vrcp.f32 %v1247_v5 }
 0x5d3   : >> { %3296 = vrcp.f32 %v1241_v54 }
 0x5d4   : >> { %3298 = vrcp.f32 %v1245_v29 }
 0x5d5   : >> { %v1243_v56 = vpop.xlane.xlu0 %1242 }
 0x5d6   : >> { %3300 = vrcp.f32 %v1243_v56 }
 0x5d9   : >> { %v1303_v55 = vpop.permute.xlu0 %1302 }
 0x5da   : >> { %2901 = vmatprep.subr.bf16.mxu0 %v1303_v55  ;;  %2946 = vmatprep.subr.bf16.mxu1 %v1303_v55 }
 0x5db   : >> { %2902 = vmatpush3.bf16.msra.mxu0 %v1303_v55  ;;  %2954 = vmatpush3.bf16.msra.mxu1 %v1303_v55 }
 0x5dc   : >> { %2919 = vmatprep.subr.bf16.mxu0 %v3236_v48  ;;  %v3295_v17 = vpop.eup %3294 }
 0x5dd   : >> { %v3297_v0 = vpop.eup %3296  ;;  %v1279_v6 = vmul.f32 %v3295_v17, %v4644_v28 }
 0x5de   : >> { %2904 = vmatmul.mubr.bf16.vlgmr.msra.gmra.mrb[16].mxu0 %v1281_v52  ;;  %2912 = vmatmul.mubr.bf16.vlgmr.msra.gmra.mrb[16].mxu1 %v1285_v10  ;;  %v3299_v37 = vpop.eup %3298  ;;  %v1276_v58 = vmul.f32 %v3297_v0, %v4639_v35 }
 0x5df   : >> { %2907 = vmatprep.mubr.bf16.mxu0 %v1282_v3  ;;  %2920 = vmatpush3.bf16.msra.mxu0 %v3236_v48  ;;  %v1278_v22 = vmul.f32 %v3299_v37, %v4635_v15 }
 0x5e0   : >> { %v3301_v49 = vpop.eup %3300  ;;  %2921 = vmatprep.subr.bf16.mxu0 %v3237_v7 }
 0x5e1   : >> { %v1277_v45 = vmul.f32 %v3301_v49, %v4647_v40  ;;  %v1287_v60 = vpack.c.bf16 %v1279_v6, %v1278_v22 }
 0x5e3   : >> { %v1286_v51 = vpack.c.bf16 %v1277_v45, %v1276_v58  ;;  %2922 = vmatpush3.bf16.msra.mxu0 %v3237_v7 }
 0x5e5   : >> { %2915 = vmatprep.mubr.bf16.mxu1 %v1286_v51 }
 0x5e6   : >> { %2908 = vmatmul.mubr.bf16.gmra.mrb[20].mxu0 %v1283_v24  ;;  %2916 = vmatmul.mubr.bf16.gmra.mrb[20].mxu1 %v1287_v60 }
 0x6b1   : >> { %v2905_v52 = vpop.f32.mrb[16].mxu0  ;;  %v2913_v9 = vpop.f32.mrb[16].mxu1 }
 0x6b2   : >> { %v1346_v54 = vpop.f32.mrb[17].mxu0  ;;  %v1378_v29 = vpop.f32.mrb[17].mxu1 }
 0x6b3   : >> { %v2906_v5 = vpop.f32.mrb[18].mxu0  ;;  %v2914_v57 = vpop.f32.mrb[18].mxu1 }
 0x6b4   : >> { %v1410_v28 = vpack.c.bf16 %v2906_v5, %v2905_v52  ;;  %v1414_v56 = vpack.c.bf16 %v2914_v57, %v2913_v9  ;;  %v1349_v43 = vpop.f32.mrb[19].mxu0  ;;  %v1381_v35 = vpop.f32.mrb[19].mxu1 }
 0x6b5   : >> { %v1409_v2 = vpack.c.bf16 %v1349_v43, %v1346_v54  ;;  %v1413_v40 = vpack.c.bf16 %v1381_v35, %v1378_v29 }
 0x6b7   : >> { %2923 = vmatprep.mubr.msk.bf16.mxu0 %vm990_vm1, %v1409_v2 }
 0x6b8   : >> { %2924 = vmatmul.mubr.msk.bf16.vlgmr.msra.gmra.mrb[24].mxu0 %vm990_vm1, %v1410_v28 }
 0x6b9   : >> { %v2909_v15 = vpop.f32.mrb[20].mxu0  ;;  %v2917_v8 = vpop.f32.mrb[20].mxu1 }
 0x6ba   : >> { %v1362_v24 = vpop.f32.mrb[21].mxu0  ;;  %v1394_v16 = vpop.f32.mrb[21].mxu1 }
 0x6bb   : >> { %v2910_v48 = vpop.f32.mrb[22].mxu0  ;;  %v2918_v55 = vpop.f32.mrb[22].mxu1 }
 0x6bc   : >> { %v1412_v30 = vpack.c.bf16 %v2910_v48, %v2909_v15  ;;  %v1416_v39 = vpack.c.bf16 %v2918_v55, %v2917_v8  ;;  %v1365_v23 = vpop.f32.mrb[23].mxu0  ;;  %v1397_v10 = vpop.f32.mrb[23].mxu1 }
 0x6bd   : >> { %v1411_v7 = vpack.c.bf16 %v1365_v23, %v1362_v24  ;;  %v1415_v17 = vpack.c.bf16 %v1397_v10, %v1394_v16 }
 0x6bf   : >> { %2927 = vmatprep.mubr.msk.bf16.mxu0 %vm990_vm1, %v1411_v7 }
 0x6c0   : >> { %2928 = vmatmul.mubr.msk.bf16.gmra.mrb[28].mxu0 %vm990_vm1, %v1412_v30 }
 0x6c1   : >> { %2931 = vmatprep.mubr.msk.bf16.mxu0 %vm990_vm1, %v1413_v40 }
 0x6c8   : >> { %2932 = vmatmul.mubr.msk.bf16.gmra.mrb[32].mxu0 %vm990_vm1, %v1414_v56 }
 0x6c9   : >> { %2935 = vmatprep.mubr.msk.bf16.mxu0 %vm990_vm1, %v1415_v17 }
 0x6d0   : >> { %2936 = vmatmul.mubr.msk.bf16.gmra.mrb[36].mxu0 %vm990_vm1, %v1416_v39 }
 0x78b   : >> { %v2925_v3 = vpop.f32.mrb[24].mxu0 }
 0x78c   : >> { %v4685_v12 = vadd.f32 %v3658_v12, %v2925_v3   ;;  %v1494_v37 = vpop.f32.mrb[25].mxu0 }
 0x78d   : >> { %v4688_v11 = vadd.f32 %v3666_v11, %v1494_v37   ;;  %v2926_v6 = vpop.f32.mrb[26].mxu0 }
 0x78e   : >> { %v5302_v0 = vmov %v4685_v12  ;;  %v4691_v14 = vadd.f32 %v3654_v14, %v2926_v6   ;;  %v1497_v45 = vpop.f32.mrb[27].mxu0 }
 0x78f   : >> { %v5303_v49 = vmov %v4688_v11  ;;  %v4694_v13 = vadd.f32 %v3662_v13, %v1497_v45   ;;  %1577 = vadd.xlane.f32.xlu1 (%p4733_p6), %v5302_v0 }
 0x790   : >> { %v5304_v58 = vmov %v4691_v14  ;;  %1573 = vadd.xlane.f32.xlu0 (%p4733_p6), %v5303_v49 }
 0x791   : >> { %v5305_v22 = vmov %v4694_v13 }
 0x793   : >> { %v2929_v51 = vpop.f32.mrb[28].mxu0  ;;  %1579 = vadd.xlane.f32.xlu1 (%p4733_p6), %v5304_v58 }
 0x794   : >> { %v4697_v20 = vadd.f32 %v3642_v20, %v2929_v51   ;;  %v1510_v52 = vpop.f32.mrb[29].mxu0  ;;  %1575 = vadd.xlane.f32.xlu0 (%p4733_p6), %v5305_v22 }
 0x795   : >> { %v4700_v18 = vadd.f32 %v3650_v18, %v1510_v52   ;;  %v2930_v12 = vpop.f32.mrb[30].mxu0 }
 0x796   : >> { %v5306_v60 = vmov %v4697_v20  ;;  %v4703_v21 = vadd.f32 %v3638_v21, %v2930_v12   ;;  %v1513_v11 = vpop.f32.mrb[31].mxu0  ;;  %v5332_v12 = vmov %v5302_v0 }
 0x797   : >> { %v5307_v9 = vmov %v4700_v18  ;;  %v4706_v19 = vadd.f32 %v3646_v19, %v1513_v11   ;;  %v5334_v11 = vmov %v5303_v49 }
 0x798   : >> { %v5308_v54 = vmov %v4703_v21  ;;  %1581 = vadd.xlane.f32.xlu0 (%p4733_p6), %v5307_v9 }
 0x799   : >> { %v5309_v29 = vmov %v4706_v19 }
 0x79a   : > { %1583 = vadd.xlane.f32.xlu1 (%p4733_p6), %v5309_v29 }
 0x79b   : >> { %v2933_v14 = vpop.f32.mrb[32].mxu0 }
 0x79c   : >> { %v4709_v27 = vadd.f32 %v3626_v27, %v2933_v14   ;;  %v1526_v13 = vpop.f32.mrb[33].mxu0  ;;  %v5331_v14 = vmov %v5304_v58  ;;  %1585 = vadd.xlane.f32.xlu0 (%p4733_p6), %v5306_v60 }
 0x79d   : >> { %v4712_v25 = vadd.f32 %v3634_v25, %v1526_v13   ;;  %v2934_v20 = vpop.f32.mrb[34].mxu0  ;;  %v5333_v13 = vmov %v5305_v22 }
 0x79e   : >> { %v5310_v5 = vmov %v4709_v27  ;;  %v4715_v31 = vadd.f32 %v3622_v31, %v2934_v20   ;;  %v1529_v18 = vpop.f32.mrb[35].mxu0  ;;  %v5328_v20 = vmov %v5306_v60  ;;  %1587 = vadd.xlane.f32.xlu1 (%p4733_p6), %v5308_v54 }
 0x79f   : >> { %v5311_v57 = vmov %v4712_v25  ;;  %v4718_v26 = vadd.f32 %v3630_v26, %v1529_v18   ;;  %v5330_v18 = vmov %v5307_v9 }
 0x7a0   : >> { %v5312_v28 = vmov %v4715_v31  ;;  %1589 = vadd.xlane.f32.xlu0 (%p4733_p6), %v5311_v57 }
 0x7a1   : >> { %v5313_v56 = vmov %v4718_v26  ;;  %v5323_v31 = vmov %v5312_v28 }
 0x7a2   : >> { %v5325_v26 = vmov %v5313_v56  ;;  %1591 = vadd.xlane.f32.xlu1 (%p4733_p6), %v5313_v56 }
 0x7a3   : >> { %v2937_v21 = vpop.f32.mrb[36].mxu0 }
 0x7a4   : >> { %v4721_v34 = vadd.f32 %v3610_v34, %v2937_v21   ;;  %v1542_v19 = vpop.f32.mrb[37].mxu0  ;;  %v5327_v21 = vmov %v5308_v54  ;;  %768 = sbr.rel (!%p4733_p6) target bundleno = 463 (0x1cf), region = 118  ;;  %1593 = vadd.xlane.f32.xlu0 (%p4733_p6), %v5310_v5 }
 0x7a5   : >> { %v4724_v32 = vadd.f32 %v3618_v32, %v1542_v19   ;;  %v2938_v27 = vpop.f32.mrb[38].mxu0  ;;  %v5329_v19 = vmov %v5309_v29 }
 0x7a6   : >> { %v5314_v43 = vmov %v4721_v34  ;;  %v4727_v36 = vadd.f32 %v3606_v36, %v2938_v27   ;;  %v1545_v25 = vpop.f32.mrb[39].mxu0  ;;  %v5324_v27 = vmov %v5310_v5  ;;  %1595 = vadd.xlane.f32.xlu1 (%p4733_p6), %v5312_v28 }
 0x7a7   : >> { %v5315_v35 = vmov %v4724_v32  ;;  %v4730_v33 = vadd.f32 %v3614_v33, %v1545_v25   ;;  %v5320_v34 = vmov %v5314_v43  ;;  %v5326_v25 = vmov %v5311_v57 }
 0x7a8   : >> { %v5316_v2 = vmov %v4727_v36  ;;  %v5322_v32 = vmov %v5315_v35  ;;  %1597 = vadd.xlane.f32.xlu0 (%p4733_p6), %v5315_v35 }
 0x7a9   : >> { %v5317_v40 = vmov %v4730_v33  ;;  %v5319_v36 = vmov %v5316_v2 }
 0x7aa   : >> { %v5321_v33 = vmov %v5317_v40  ;;  %1599 = vadd.xlane.f32.xlu1 (%p4733_p6), %v5317_v40 }
 0x7ac   : > { %1601 = vadd.xlane.f32.xlu0 %v5314_v43 }
 0x7ae   : > { %1603 = vadd.xlane.f32.xlu1 %v5316_v2 }
 0x81c   : > { %v1578_v31 = vpop.xlane.xlu1 %1577 }
 0x81d   : > { %v1574_v26 = vpop.xlane.xlu0 %1573  ;;  %v1607_v33 = vmul.f32 0.0078125, %v1578_v31 }
 0x81e   : > { %v1605_v32 = vmul.f32 0.0078125, %v1574_v26 }
 0x81f   : > { %v4809_v36 = vsub.f32 %v5302_v0, %v1607_v33 }
 0x820   : > { %v4806_v34 = vsub.f32 %v5303_v49, %v1605_v32  ;;  %v1580_v42 = vpop.xlane.xlu1 %1579 }
 0x821   : > { %v1576_v41 = vpop.xlane.xlu0 %1575  ;;  %v1608_v50 = vmul.f32 0.0078125, %v1580_v42  ;;  %v1639_v59 = vmul.f32 %v4809_v36, %v4809_v36 }
 0x822   : > { %v1606_v47 = vmul.f32 0.0078125, %v1576_v41  ;;  %v1637_v53 = vmul.f32 %v4806_v34, %v4806_v34 }
 0x823   : > { %v4817_v44 = vsub.f32 %v5304_v58, %v1608_v50 }
 0x824   : > { %v4814_v46 = vsub.f32 %v5305_v22, %v1606_v47  ;;  %1653 = vadd.xlane.f32.xlu0 %v1637_v53 }
 0x825   : > { %v1582_v61 = vpop.xlane.xlu0 %1581  ;;  %v1640_v48 = vmul.f32 %v4817_v44, %v4817_v44 }
 0x826   : > { %v1609_v63 = vmul.f32 0.0078125, %v1582_v61  ;;  %v1638_v15 = vmul.f32 %v4814_v46, %v4814_v46 }
 0x827   : > { %v1584_v62 = vpop.xlane.xlu1 %1583 }
 0x828   : > { %v1610_v8 = vmul.f32 0.0078125, %v1584_v62  ;;  %v4824_v24 = vsub.f32 %v5307_v9, %v1609_v63  ;;  %1657 = vadd.xlane.f32.xlu0 %v1639_v59  ;;  %1655 = vadd.xlane.f32.xlu1 %v1638_v15 }
 0x829   : > { %v1586_v55 = vpop.xlane.xlu0 %1585 }
 0x82a   : > { %v4827_v16 = vsub.f32 %v5309_v29, %v1610_v8  ;;  %v1611_v39 = vmul.f32 0.0078125, %v1586_v55  ;;  %v1641_v23 = vmul.f32 %v4824_v24, %v4824_v24  ;;  %v3302_v8 = vld [vmem:[%s5252_s6 + $0x4] ss:$8 sps:$4 sm:$0xff]  }
 0x82b   : > { %v1588_v30 = vpop.xlane.xlu1 %1587  ;;  %2017 = vmatprep.subr.bf16.mxu0 %v3302_v8  ;;  %v3335_v8 = vld [vmem:[#allocation5 + $0x20] sm:$0xff]  }
 0x82c   : > { %v1612_v10 = vmul.f32 0.0078125, %v1588_v30  ;;  %v4834_v7 = vsub.f32 %v5306_v60, %v1611_v39  ;;  %1659 = vadd.xlane.f32.xlu1 %v1640_v48  ;;  %1661 = vadd.xlane.f32.xlu0 %v1641_v23  ;;  %v1642_v3 = vmul.f32 %v4827_v16, %v4827_v16  ;;  %v3304_v39 = vld [vmem:[%s5252_s6] ss:$8 sps:$4 sm:$0xff]  }
 0x82d   : > { %v1590_v37 = vpop.xlane.xlu0 %1589  ;;  %2018 = vmatpush1.bf16.msra.mxu0 %v3304_v39 }
 0x82e   : > { %v4837_v17 = vsub.f32 %v5308_v54, %v1612_v10  ;;  %v1613_v45 = vmul.f32 0.0078125, %v1590_v37  ;;  %v1643_v51 = vmul.f32 %v4834_v7, %v4834_v7  ;;  %v3305_v10 = vld [vmem:[%s5252_s6 + $0x14] ss:$8 sps:$4 sm:$0xff]   ;;  %v3307_v37 = vld [vmem:[%s5252_s6 + $0x10] ss:$8 sps:$4 sm:$0xff]  }
 0x82f   : > { %v1592_v6 = vpop.xlane.xlu1 %1591  ;;  %2019 = vmatprep.subr.bf16.mxu0 %v3305_v10 }
 0x830   : > { %v1614_v52 = vmul.f32 0.0078125, %v1592_v6  ;;  %v4844_v12 = vsub.f32 %v5311_v57, %v1613_v45  ;;  %1663 = vadd.xlane.f32.xlu1 %v1642_v3  ;;  %1665 = vadd.xlane.f32.xlu0 %v1643_v51  ;;  %v1644_v14 = vmul.f32 %v4837_v17, %v4837_v17  ;;  %v3308_v6 = vld [vmem:[%s5252_s6 + $0x24] ss:$8 sps:$4 sm:$0xff]   ;;  %v3310_v45 = vld [vmem:[%s5252_s6 + $0x20] ss:$8 sps:$4 sm:$0xff]  }
 0x831   : > { %v1594_v13 = vpop.xlane.xlu0 %1593  ;;  %2020 = vmatpush1.bf16.msra.mxu0 %v3307_v37  ;;  %v3311_v51 = vld [vmem:[%s5252_s6 + $0x34] ss:$8 sps:$4 sm:$0xff]  }
 0x832   : > { %v4847_v11 = vsub.f32 %v5313_v56, %v1614_v52  ;;  %v1615_v18 = vmul.f32 0.0078125, %v1594_v13  ;;  %v1645_v21 = vmul.f32 %v4844_v12, %v4844_v12  ;;  %2021 = vmatprep.subr.bf16.mxu0 %v3308_v6  ;;  %v3313_v52 = vld [vmem:[%s5252_s6 + $0x30] ss:$8 sps:$4 sm:$0xff]   ;;  %v3316_v13 = vld [vmem:[%s5252_s6 + $0x40] ss:$8 sps:$4 sm:$0xff]  }
 0x833   : > { %v1596_v20 = vpop.xlane.xlu1 %1595 }
 0x834   : > { %v1616_v19 = vmul.f32 0.0078125, %v1596_v20  ;;  %v4854_v27 = vsub.f32 %v5310_v5, %v1615_v18  ;;  %1667 = vadd.xlane.f32.xlu1 %v1644_v14  ;;  %1669 = vadd.xlane.f32.xlu0 %v1645_v21  ;;  %v1646_v26 = vmul.f32 %v4847_v11, %v4847_v11  ;;  %v3314_v14 = vld [vmem:[%s5252_s6 + $0x44] ss:$8 sps:$4 sm:$0xff]   ;;  %v3317_v20 = vld [vmem:[%s5252_s6 + $0x54] ss:$8 sps:$4 sm:$0xff]  }
 0x835   : > { %v1598_v31 = vpop.xlane.xlu0 %1597  ;;  %2022 = vmatpush1.bf16.msra.mxu0 %v3310_v45  ;;  %v3319_v18 = vld [vmem:[%s5252_s6 + $0x50] ss:$8 sps:$4 sm:$0xff]   ;;  %v3320_v21 = vld [vmem:[%s5252_s6 + $0x64] ss:$8 sps:$4 sm:$0xff]  }
 0x836   : > { %v4857_v25 = vsub.f32 %v5312_v28, %v1616_v19  ;;  %v1617_v33 = vmul.f32 0.0078125, %v1598_v31  ;;  %v1647_v41 = vmul.f32 %v4854_v27, %v4854_v27  ;;  %2023 = vmatprep.subr.bf16.mxu0 %v3311_v51  ;;  %v3322_v19 = vld [vmem:[%s5252_s6 + $0x60] ss:$8 sps:$4 sm:$0xff]   ;;  %v3325_v31 = vld [vmem:[%s5252_s6 + $0x70] ss:$8 sps:$4 sm:$0xff]  }
 0x837   : > { %v1600_v32 = vpop.xlane.xlu1 %1599 }
 0x838   : > { %v1618_v42 = vmul.f32 0.0078125, %v1600_v32  ;;  %v4864_v47 = vsub.f32 %v5315_v35, %v1617_v33  ;;  %1671 = vadd.xlane.f32.xlu1 %v1646_v26  ;;  %1673 = vadd.xlane.f32.xlu0 %v1647_v41  ;;  %v1648_v50 = vmul.f32 %v4857_v25, %v4857_v25  ;;  %v3323_v26 = vld [vmem:[%s5252_s6 + $0x74] ss:$8 sps:$4 sm:$0xff]   ;;  %v3679_v32 = vmov 0   ;;  %v3326_v33 = vld [vmem:[#allocation5 + $0x40] sm:$0xff]  }
 0x839   : > { %v1602_v59 = vpop.xlane.xlu0 %1601  ;;  %2024 = vmatpush1.bf16.msra.mxu0 %v3313_v52  ;;  %2049 = vmatprep.mubr.bf16.mxu0 %v3679_v32  ;;  %v3327_v41 = vld [vmem:[#allocation5] sm:$0xff]  }
 0x83a   : > { %v4867_v53 = vsub.f32 %v5317_v40, %v1618_v42  ;;  %v1619_v62 = vmul.f32 0.0078125, %v1602_v59  ;;  %v1649_v63 = vmul.f32 %v4864_v47, %v4864_v47  ;;  %2025 = vmatprep.subr.bf16.mxu0 %v3314_v14  ;;  %v3328_v42 = vld [vmem:[#allocation5 + $0x48] sm:$0xff]   ;;  %2759 = vmatprep.subr.bf16.mxu1 %v3326_v33  ;;  %v3330_v59 = vld [vmem:[#allocation5 + $0x50] sm:$0xff]  }
 0x83b   : > { %v1604_v61 = vpop.xlane.xlu1 %1603  ;;  %2760 = vmatpush3.bf16.msra.mxu1 %v3327_v41 }
 0x83c   : > { %v1620_v15 = vmul.f32 0.0078125, %v1604_v61  ;;  %v4877_v48 = vsub.f32 %v5314_v43, %v1619_v62  ;;  %1675 = vadd.xlane.f32.xlu1 %v1648_v50  ;;  %1677 = vadd.xlane.f32.xlu0 %v1649_v63  ;;  %v1650_v30 = vmul.f32 %v4867_v53, %v4867_v53  ;;  %v3329_v50 = vld [vmem:[#allocation5 + $0x8] sm:$0xff]   ;;  %v3331_v61 = vld [vmem:[#allocation5 + $0x10] sm:$0xff]   ;;  %v3332_v62 = vld [vmem:[#allocation5 + $0x58] sm:$0xff]  }
 0x83d   : > { %2026 = vmatpush1.bf16.msra.mxu0 %v3316_v13  ;;  %2761 = vmatprep.subr.bf16.mxu1 %v3328_v42  ;;  %v3333_v63 = vld [vmem:[#allocation5 + $0x18] sm:$0xff]  }
 0x83e   : > { %v4880_v55 = vsub.f32 %v5316_v2, %v1620_v15  ;;  %v1651_v23 = vmul.f32 %v4877_v48, %v4877_v48  ;;  %2027 = vmatprep.subr.bf16.mxu0 %v3317_v20  ;;  %v3334_v15 = vld [vmem:[#allocation5 + $0x60] sm:$0xff]  }
 0x83f   : > { %2762 = vmatpush3.bf16.msra.mxu1 %v3329_v50 }
 0x840   : > { %1679 = vadd.xlane.f32.xlu1 %v1650_v30  ;;  %1681 = vadd.xlane.f32.xlu0 %v1651_v23  ;;  %v1652_v3 = vmul.f32 %v4880_v55, %v4880_v55  ;;  %v3336_v30 = vld [vmem:[#allocation5 + $0x68] sm:$0xff]  }
 0x841   : > { %2028 = vmatpush1.bf16.msra.mxu0 %v3319_v18  ;;  %2763 = vmatprep.subr.bf16.mxu1 %v3330_v59 }
 0x842   : > { %2029 = vmatprep.subr.bf16.mxu0 %v3320_v21 }
 0x843   : > { %2764 = vmatpush3.bf16.msra.mxu1 %v3331_v61 }
 0x844   : > { %1683 = vadd.xlane.f32.xlu1 %v1652_v3  ;;  %2765 = vmatprep.subr.bf16.mxu1 %v3332_v62 }
 0x845   : > { %2030 = vmatpush1.bf16.msra.mxu0 %v3322_v19 }
 0x846   : > { %2031 = vmatprep.subr.bf16.mxu0 %v3323_v26 }
 0x847   : > { %2766 = vmatpush3.bf16.msra.mxu1 %v3333_v63 }
 0x848   : > { %2767 = vmatprep.subr.bf16.mxu1 %v3334_v15 }
 0x849   : > { %2032 = vmatpush1.bf16.msra.mxu0 %v3325_v31 }
 0x84b   : > { %2768 = vmatpush3.bf16.msra.mxu1 %v3335_v8 }
 0x84c   : > { %2769 = vmatprep.subr.bf16.mxu1 %v3336_v30 }
 0x8b1   : > { %v1654_v39 = vpop.xlane.xlu0 %1653 }
 0x8b2   : > { %v1685_v23 = vmul.f32 0.007874016, %v1654_v39 }
 0x8b4   : > { %3342 = vrsqrt.f32 %v1685_v23  ;;  %vm1703_vm2 = vcmp.eq.f32.partialorder %v1685_v23, inf  ;;  %v1706_v19 = vand.u32 2147483648, %v1685_v23  ;;  %vm1705_vm3 = vcmp.eq.f32.partialorder %v1685_v23, 0.0 }
 0x8b5   : > { %v1656_v10 = vpop.xlane.xlu1 %1655  ;;  %v1658_v3 = vpop.xlane.xlu0 %1657 }
 0x8b6   : > { %v1686_v37 = vmul.f32 0.007874016, %v1656_v10  ;;  %v1687_v6 = vmul.f32 0.007874016, %v1658_v3 }
 0x8b8   : > { %3344 = vrsqrt.f32 %v1686_v37  ;;  %vm1710_vm4 = vcmp.eq.f32.partialorder %v1686_v37, inf  ;;  %v1713_v61 = vand.u32 2147483648, %v1686_v37  ;;  %vm1712_vm5 = vcmp.eq.f32.partialorder %v1686_v37, 0.0 }
 0x8b9   : > { %v1660_v45 = vpop.xlane.xlu1 %1659  ;;  %v1662_v51 = vpop.xlane.xlu0 %1661  ;;  %3346 = vrsqrt.f32 %v1687_v6  ;;  %vm1717_vm6 = vcmp.eq.f32.partialorder %v1687_v6, inf  ;;  %vm1719_vm8 = vcmp.eq.f32.partialorder %v1687_v6, 0.0 }
 0x8ba   : > { %v4934_v52 = vmul.f32 0.007874016, %v1660_v45  ;;  %v4936_v14 = vmul.f32 0.007874016, %v1662_v51 }
 0x8bc   : > { %3348 = vrsqrt.f32 %v4934_v52  ;;  %vm1731_vm7 = vcmp.eq.f32.partialorder %v4936_v14, inf  ;;  %vm1724_vm9 = vcmp.eq.f32.partialorder %v4934_v52, inf  ;;  %vm1733_vm10 = vcmp.eq.f32.partialorder %v4936_v14, 0.0 }
 0x8bd   : > { %v1664_v13 = vpop.xlane.xlu1 %1663  ;;  %3350 = vrsqrt.f32 %v4936_v14  ;;  %v1666_v31 = vpop.xlane.xlu0 %1665  ;;  %vm1726_vm12 = vcmp.eq.f32.partialorder %v4934_v52, 0.0 }
 0x8be   : > { %v3343_v20 = vpop.eup %3342  ;;  %v4938_v18 = vmul.f32 0.007874016, %v1664_v13  ;;  %v4945_v62 = vmul.f32 0.007874016, %v1666_v31  ;;  %v1720_v31 = vand.u32 2147483648, %v1687_v6 }
 0x8bf   : > { %v1702_v21 = vmul.f32 %v3343_v20, %v1685_v23 }
 0x8c0   : > { %3352 = vrsqrt.f32 %v4938_v18  ;;  %vm1738_vm11 = vcmp.eq.f32.partialorder %v4938_v18, inf  ;;  %vm1740_vm13 = vcmp.eq.f32.partialorder %v4938_v18, 0.0  ;;  %vm1745_vm15 = vcmp.eq.f32.partialorder %v4945_v62, inf }
 0x8c1   : > { %v1704_v26 = vsel %vm1703_vm2, %v1685_v23, %v1702_v21  ;;  %v1668_v33 = vpop.xlane.xlu1 %1667  ;;  %v1670_v51 = vpop.xlane.xlu0 %1669  ;;  %vm1747_vm1 = vcmp.eq.f32.partialorder %v4945_v62, 0.0 }
 0x8c2   : > { %v3345_v41 = vpop.eup %3344  ;;  %v1707_v42 = vsel %vm1705_vm3, %v1706_v19, %v1704_v26  ;;  %v4943_v59 = vmul.f32 0.007874016, %v1668_v33  ;;  %v4953_v26 = vmul.f32 0.007874016, %v1670_v51 }
 0x8c3   : > { %v1709_v50 = vmul.f32 %v3345_v41, %v1686_v37  ;;  %v1813_v63 = vadd.f32 1e-06, %v1707_v42  ;;  %v3347_v8 = vpop.eup %3346  ;;  %v1863_v42 = vsub.s32 2, %v3883_v1 }
 0x8c4   : > { %3354 = vrsqrt.f32 %v4943_v59  ;;  %v1716_v3 = vmul.f32 %v3347_v8, %v1687_v6  ;;  %vm1752_vm14 = vcmp.eq.f32.partialorder %v4943_v59, inf  ;;  %vm1754_vm0 = vcmp.eq.f32.partialorder %v4943_v59, 0.0 }
 0x8c5   : > { %v1711_v15 = vsel %vm1710_vm4, %v1686_v37, %v1709_v50  ;;  %3356 = vrsqrt.f32 %v4945_v62  ;;  %v1672_v39 = vpop.xlane.xlu1 %1671  ;;  %vm1759_vm3 = vcmp.eq.f32.partialorder %v4953_v26, inf }
 0x8c6   : > { %v1714_v30 = vsel %vm1712_vm5, %v1713_v61, %v1711_v15  ;;  %v3349_v23 = vpop.eup %3348  ;;  %3358 = vrcp.f32 %v1813_v63  ;;  %v4949_v20 = vmul.f32 0.007874016, %v1672_v39  ;;  %v1718_v37 = vsel %vm1717_vm6, %v1687_v6, %v1716_v3 }
 0x8c7   : > { %v1814_v10 = vadd.f32 1e-06, %v1714_v30  ;;  %v3351_v45 = vpop.eup %3350  ;;  %v1723_v21 = vmul.f32 %v3349_v23, %v4934_v52  ;;  %v1721_v50 = vsel %vm1719_vm8, %v1720_v31, %v1718_v37  ;;  %v1727_v63 = vand.u32 2147483648, %v4934_v52  ;;  %v1674_v23 = vpop.xlane.xlu0 %1673 }
 0x8c8   : > { %v1730_v19 = vmul.f32 %v3351_v45, %v4936_v14  ;;  %v1734_v15 = vand.u32 2147483648, %v4936_v14  ;;  %v1815_v45 = vadd.f32 1e-06, %v1721_v50  ;;  %v4975_v37 = vrot.slane %v3895_v4, %v1863_v42 }
 0x8c9   : > { %3360 = vrcp.f32 %v1814_v10  ;;  %v1676_v41 = vpop.xlane.xlu1 %1675  ;;  %v1725_v61 = vsel %vm1724_vm9, %v4934_v52, %v1723_v21  ;;  %v4978_v52 = vmul.f32 0.007874016, %v1674_v23  ;;  %v1883_v31 = vsub.s32 3, %v3883_v1 }
 0x8ca   : > { %v3353_v13 = vpop.eup %3352  ;;  %3362 = vrsqrt.f32 %v4949_v20  ;;  %v1732_v30 = vsel %vm1731_vm7, %v4936_v14, %v1730_v19  ;;  %v4969_v10 = vmul.f32 0.007874016, %v1676_v41  ;;  %v1728_v51 = vsel %vm1726_vm12, %v1727_v63, %v1725_v61 }
 0x8cb   : > { %v1737_v33 = vmul.f32 %v3353_v13, %v4938_v18  ;;  %3364 = vrsqrt.f32 %v4953_v26  ;;  %v1741_v13 = vand.u32 2147483648, %v4938_v18  ;;  %v1735_v21 = vsel %vm1733_vm10, %v1734_v15, %v1732_v30 }
 0x8cc   : > { %3366 = vrsqrt.f32 %v4969_v10  ;;  %v1817_v61 = vadd.f32 1e-06, %v1735_v21  ;;  %v1755_v42 = vand.u32 2147483648, %v4943_v59  ;;  %vm1766_vm2 = vcmp.eq.f32.partialorder %v4949_v20, inf }
 0x8cd   : > { %v1739_v39 = vsel %vm1738_vm11, %v4938_v18, %v1737_v33  ;;  %v1816_v33 = vadd.f32 1e-06, %v1728_v51  ;;  %3368 = vrcp.f32 %v1815_v45  ;;  %vm1768_vm4 = vcmp.eq.f32.partialorder %v4949_v20, 0.0 }
 0x8ce   : > { %v3355_v8 = vpop.eup %3354  ;;  %v1742_v19 = vsel %vm1740_vm13, %v1741_v13, %v1739_v39  ;;  %3370 = vrsqrt.f32 %v4978_v52  ;;  %v4992_v39 = vrot.slane %v3895_v4, %v1883_v31  ;;  %vm1761_vm5 = vcmp.eq.f32.partialorder %v4953_v26, 0.0 }
 0x8cf   : > { %v3357_v6 = vpop.eup %3356  ;;  %v1751_v14 = vmul.f32 %v3355_v8, %v4943_v59  ;;  %v1818_v63 = vadd.f32 1e-06, %v1742_v19  ;;  %v1680_v8 = vpop.xlane.xlu1 %1679  ;;  %3372 = vrcp.f32 %v1816_v33  ;;  %vm1780_vm6 = vcmp.eq.f32.partialorder %v4969_v10, inf }
 0x8d0   : > { %v3359_v3 = vpop.eup %3358  ;;  %v1744_v41 = vmul.f32 %v3357_v6, %v4945_v62  ;;  %v1748_v6 = vand.u32 2147483648, %v4945_v62  ;;  %v4997_v13 = vmul.f32 0.007874016, %v1680_v8  ;;  %3374 = vrcp.f32 %v1817_v61 }
 0x8d1   : > { %v1845_v50 = vmul.f32 %v3359_v3, %v4806_v34  ;;  %v1753_v15 = vsel %vm1752_vm14, %v4943_v59, %v1751_v14  ;;  %v1678_v3 = vpop.xlane.xlu0 %1677  ;;  %3376 = vrcp.f32 %v1818_v63  ;;  %vm1773_vm7 = vcmp.eq.f32.partialorder %v4978_v52, inf }
 0x8d2   : > { %v1746_v23 = vsel %vm1745_vm15, %v4945_v62, %v1744_v41  ;;  %v1756_v51 = vsel %vm1754_vm0, %v1755_v42, %v1753_v15  ;;  %v5002_v19 = vmul.f32 0.007874016, %v1678_v3  ;;  %3378 = vrsqrt.f32 %v4997_v13 }
 0x8d3   : > { %v3361_v18 = vpop.eup %3360  ;;  %v1865_v45 = vmul.f32 %v4975_v37, %v1845_v50  ;;  %v1749_v14 = vsel %vm1747_vm1, %v1748_v6, %v1746_v23  ;;  %v1820_v33 = vadd.f32 1e-06, %v1756_v51  ;;  %v1769_v50 = vand.u32 2147483648, %v4949_v20  ;;  %v1684_v15 = vpop.xlane.xlu1 %1683 }
 0x8d4   : > { %v3363_v30 = vpop.eup %3362  ;;  %v1846_v34 = vmul.f32 %v3361_v18, %v4814_v46  ;;  %v1819_v42 = vadd.f32 1e-06, %v1749_v14  ;;  %3380 = vrsqrt.f32 %v5002_v19  ;;  %vm1782_vm8 = vcmp.eq.f32.partialorder %v4969_v10, 0.0 }
 0x8d5   : > { %v3365_v59 = vpop.eup %3364  ;;  %v1765_v46 = vmul.f32 %v3363_v30, %v4949_v20  ;;  %v1885_v62 = vadd.f32 %v4992_v39, %v1865_v45  ;;  %v1762_v30 = vand.u32 2147483648, %v4953_v26  ;;  %v1682_v6 = vpop.xlane.xlu0 %1681  ;;  %3382 = vrcp.f32 %v1820_v33 }
 0x8d6   : > { %v1866_v21 = vmul.f32 %v4975_v37, %v1846_v34  ;;  %v1758_v41 = vmul.f32 %v3365_v59, %v4953_v26  ;;  %v3367_v61 = vpop.eup %3366  ;;  %3384 = vrcp.f32 %v1819_v42  ;;  %v1776_v42 = vand.u32 2147483648, %v4978_v52 }
 0x8d7   : > { %v1767_v63 = vsel %vm1766_vm2, %v4949_v20, %v1765_v46  ;;  %v3369_v8 = vpop.eup %3368  ;;  %v5018_v20 = vmul.f32 0.007874016, %v1684_v15  ;;  %v1779_v51 = vmul.f32 %v3367_v61, %v4969_v10  ;;  %vm1775_vm9 = vcmp.eq.f32.partialorder %v4978_v52, 0.0 }
 0x8d8   : > { %v1886_v31 = vadd.f32 %v4992_v39, %v1866_v21  ;;  %v1760_v34 = vsel %vm1759_vm3, %v4953_v26, %v1758_v41  ;;  %v1847_v23 = vmul.f32 %v3369_v8, %v4809_v36  ;;  %v3371_v3 = vpop.eup %3370  ;;  %v1770_v45 = vsel %vm1768_vm4, %v1769_v50, %v1767_v63 }
 0x8d9   : > { %v3373_v59 = vpop.eup %3372  ;;  %v5021_v21 = vmul.f32 0.007874016, %v1682_v6  ;;  %v1763_v14 = vsel %vm1761_vm5, %v1762_v30, %v1760_v34  ;;  %v1772_v33 = vmul.f32 %v3371_v3, %v4978_v52  ;;  %v1783_v41 = vand.u32 2147483648, %v4969_v10 }
 0x8da   : > { %v1901_v18 = vpack.c.bf16 %v1886_v31, %v1885_v62  ;;  %v3375_v46 = vpop.eup %3374  ;;  %v1848_v26 = vmul.f32 %v3373_v59, %v4817_v44  ;;  %v1867_v62 = vmul.f32 %v4975_v37, %v1847_v23  ;;  %v1822_v31 = vadd.f32 1e-06, %v1770_v45 }
 0x8db   : > { %v3377_v36 = vpop.eup %3376  ;;  %3386 = vrsqrt.f32 %v5018_v20  ;;  %v1821_v61 = vadd.f32 1e-06, %v1763_v14  ;;  %v1781_v44 = vsel %vm1780_vm6, %v4969_v10, %v1779_v51  ;;  %v1849_v30 = vmul.f32 %v3375_v46, %v4824_v24 }
 0x8dc   : > { %2050 = vmatmul.mubr.bf16.vlgmr.msra.gmra.mrb[0].mxu0 %v1901_v18  ;;  %v1868_v50 = vmul.f32 %v4975_v37, %v1848_v26  ;;  %v1850_v18 = vmul.f32 %v3377_v36, %v4827_v16  ;;  %v3379_v63 = vpop.eup %3378  ;;  %3388 = vrsqrt.f32 %v5021_v21  ;;  %v1887_v15 = vadd.f32 %v4992_v39, %v1867_v62 }
 0x8dd   : > { %2059 = vmatprep.mubr.bf16.mxu0 %v3679_v32  ;;  %v1774_v6 = vsel %vm1773_vm7, %v4978_v52, %v1772_v33  ;;  %3390 = vrcp.f32 %v1822_v31  ;;  %v1784_v34 = vsel %vm1782_vm8, %v1783_v41, %v1781_v44  ;;  %v1793_v45 = vmul.f32 %v3379_v63, %v4997_v13 }
 0x8de   : > { %v1888_v8 = vadd.f32 %v4992_v39, %v1868_v50  ;;  %v3381_v16 = vpop.eup %3380  ;;  %v1870_v3 = vmul.f32 %v4975_v37, %v1850_v18  ;;  %3392 = vrcp.f32 %v1821_v61  ;;  %v1777_v59 = vsel %vm1775_vm9, %v1776_v42, %v1774_v6 }
 0x8df   : > { %v3383_v10 = vpop.eup %3382  ;;  %vm1794_vm10 = vcmp.eq.f32.partialorder %v4997_v13, inf  ;;  %v1869_v24 = vmul.f32 %v4975_v37, %v1849_v30  ;;  %v1824_v46 = vadd.f32 1e-06, %v1784_v34  ;;  %v1786_v52 = vmul.f32 %v3381_v16, %v5002_v19 }
 0x8e0   : > { %v1902_v23 = vpack.c.bf16 %v1888_v8, %v1887_v15  ;;  %v3385_v51 = vpop.eup %3384  ;;  %vm1787_vm11 = vcmp.eq.f32.partialorder %v5002_v19, inf  ;;  %v1797_v14 = vand.u32 2147483648, %v4997_v13  ;;  %v1890_v26 = vadd.f32 %v4992_v39, %v1870_v3 }
 0x8e1   : > { %v1852_v62 = vmul.f32 %v3383_v10, %v4837_v17  ;;  %v1823_v36 = vadd.f32 1e-06, %v1777_v59  ;;  %v1795_v31 = vsel %vm1794_vm10, %v4997_v13, %v1793_v45  ;;  %vm1796_vm12 = vcmp.eq.f32.partialorder %v4997_v13, 0.0 }
 0x8e2   : > { %v1790_v41 = vand.u32 2147483648, %v5002_v19  ;;  %v1889_v50 = vadd.f32 %v4992_v39, %v1869_v24  ;;  %v1851_v18 = vmul.f32 %v3385_v51, %v4834_v7  ;;  %v1788_v61 = vsel %vm1787_vm11, %v5002_v19, %v1786_v52 }
 0x8e3   : > { %vm1789_vm13 = vcmp.eq.f32.partialorder %v5002_v19, 0.0  ;;  %3394 = vrcp.f32 %v1824_v46  ;;  %v1798_v44 = vsel %vm1796_vm12, %v1797_v14, %v1795_v31  ;;  %v1872_v63 = vmul.f32 %v4975_v37, %v1852_v62 }
 0x8e4   : > { %2060 = vmatmul.mubr.bf16.gmra.mrb[4].mxu0 %v1902_v23  ;;  %v1903_v17 = vpack.c.bf16 %v1890_v26, %v1889_v50  ;;  %3396 = vrcp.f32 %v1823_v36  ;;  %v1791_v8 = vsel %vm1789_vm13, %v1790_v41, %v1788_v61  ;;  %vm1808_vm14 = vcmp.eq.f32.partialorder %v5018_v20, inf }
 0x8e5   : > { %2069 = vmatprep.mubr.bf16.mxu0 %v3679_v32  ;;  %v3387_v33 = vpop.eup %3386  ;;  %v1871_v7 = vmul.f32 %v4975_v37, %v1851_v18  ;;  %v1826_v6 = vadd.f32 1e-06, %v1798_v44  ;;  %vm1801_vm15 = vcmp.eq.f32.partialorder %v5021_v21, inf  ;;  %v1811_v16 = vand.u32 2147483648, %v5018_v20 }
 0x8e6   : > { %v3389_v42 = vpop.eup %3388  ;;  %v1807_v13 = vmul.f32 %v3387_v33, %v5018_v20  ;;  %v1892_v34 = vadd.f32 %v4992_v39, %v1872_v63  ;;  %v1825_v3 = vadd.f32 1e-06, %v1791_v8  ;;  %vm1810_vm0 = vcmp.eq.f32.partialorder %v5018_v20, 0.0 }
 0x8e7   : > { %v3391_v15 = vpop.eup %3390  ;;  %v1800_v19 = vmul.f32 %v3389_v42, %v5021_v21  ;;  %v1804_v45 = vand.u32 2147483648, %v5021_v21  ;;  %v1891_v59 = vadd.f32 %v4992_v39, %v1871_v7  ;;  %vm1803_vm1 = vcmp.eq.f32.partialorder %v5021_v21, 0.0 }
 0x8e8   : > { %v3393_v30 = vpop.eup %3392  ;;  %v1854_v23 = vmul.f32 %v3391_v15, %v4847_v11  ;;  %v1809_v10 = vsel %vm1808_vm14, %v5018_v20, %v1807_v13  ;;  %3398 = vrcp.f32 %v1826_v6 }
 0x8e9   : > { %v1853_v24 = vmul.f32 %v3393_v30, %v4844_v12  ;;  %v1802_v51 = vsel %vm1801_vm15, %v5021_v21, %v1800_v19  ;;  %v1812_v46 = vsel %vm1810_vm0, %v1811_v16, %v1809_v10  ;;  %v1904_v52 = vpack.c.bf16 %v1892_v34, %v1891_v59  ;;  %v3337_v59 = vld [vmem:[#allocation5 + $0x28] sm:$0xff]  }
 0x8ea   : > { %v1874_v11 = vmul.f32 %v4975_v37, %v1854_v23  ;;  %3400 = vrcp.f32 %v1825_v3  ;;  %v1805_v26 = vsel %vm1803_vm1, %v1804_v45, %v1802_v51  ;;  %v1828_v36 = vadd.f32 1e-06, %v1812_v46  ;;  %2770 = vmatpush3.bf16.msra.mxu1 %v3337_v59  ;;  %v3340_v51 = vld [vmem:[#allocation5 + $0x78] sm:$0xff]  }
 0x8eb   : > { %v1873_v20 = vmul.f32 %v4975_v37, %v1853_v24  ;;  %v1827_v21 = vadd.f32 1e-06, %v1805_v26  ;;  %v3339_v24 = vld [vmem:[#allocation5 + $0x30] sm:$0xff]  }
 0x8ec   : > { %2070 = vmatmul.mubr.bf16.gmra.mrb[8].mxu0 %v1903_v17  ;;  %v1894_v12 = vadd.f32 %v4992_v39, %v1874_v11  ;;  %3402 = vrcp.f32 %v1828_v36 }
 0x8ed   : > { %2079 = vmatprep.mubr.bf16.mxu0 %v3679_v32  ;;  %v3395_v14 = vpop.eup %3394  ;;  %v1893_v33 = vadd.f32 %v4992_v39, %v1873_v20  ;;  %3404 = vrcp.f32 %v1827_v21 }
 0x8ee   : > { %v3397_v62 = vpop.eup %3396  ;;  %v1856_v31 = vmul.f32 %v3395_v14, %v4857_v25 }
 0x8ef   : > { %v1855_v41 = vmul.f32 %v3397_v62, %v4854_v27  ;;  %v1905_v50 = vpack.c.bf16 %v1894_v12, %v1893_v33 }
 0x8f0   : > { %v1876_v18 = vmul.f32 %v4975_v37, %v1856_v31 }
 0x8f1   : > { %v1875_v42 = vmul.f32 %v4975_v37, %v1855_v41 }
 0x8f2   : > { %v3399_v61 = vpop.eup %3398  ;;  %v1896_v17 = vadd.f32 %v4992_v39, %v1876_v18 }
 0x8f3   : > { %v1858_v25 = vmul.f32 %v3399_v61, %v4867_v53  ;;  %v1895_v63 = vadd.f32 %v4992_v39, %v1875_v42 }
 0x8f4   : > { %2080 = vmatmul.mubr.bf16.gmra.mrb[12].mxu0 %v1904_v52  ;;  %v3401_v44 = vpop.eup %3400 }
 0x8f5   : > { %2089 = vmatprep.mubr.bf16.mxu0 %v3679_v32  ;;  %v1857_v27 = vmul.f32 %v3401_v44, %v4864_v47  ;;  %v1906_v15 = vpack.c.bf16 %v1896_v17, %v1895_v63  ;;  %v1878_v13 = vmul.f32 %v4975_v37, %v1858_v25 }
 0x8f6   : > { %v3403_v8 = vpop.eup %3402 }
 0x8f7   : > { %v1877_v7 = vmul.f32 %v4975_v37, %v1857_v27  ;;  %v3405_v30 = vpop.eup %3404  ;;  %v1898_v6 = vadd.f32 %v4992_v39, %v1878_v13  ;;  %v1860_v19 = vmul.f32 %v3403_v8, %v4880_v55  ;;  %v3338_v55 = vld [vmem:[#allocation5 + $0x70] sm:$0xff]  }
 0x8f8   : > { %v1859_v16 = vmul.f32 %v3405_v30, %v4877_v48  ;;  %2771 = vmatprep.subr.bf16.mxu1 %v3338_v55  ;;  %v3341_v48 = vld [vmem:[#allocation5 + $0x38] sm:$0xff]  }
 0x8f9   : > { %v1897_v53 = vadd.f32 %v4992_v39, %v1877_v7  ;;  %v1880_v47 = vmul.f32 %v4975_v37, %v1860_v19  ;;  %2772 = vmatpush3.bf16.msra.mxu1 %v3339_v24 }
 0x8fa   : > { %v1879_v23 = vmul.f32 %v4975_v37, %v1859_v16  ;;  %2773 = vmatprep.subr.bf16.mxu1 %v3340_v51 }
 0x8fb   : > { %v1907_v34 = vpack.c.bf16 %v1898_v6, %v1897_v53  ;;  %v1900_v3 = vadd.f32 %v4992_v39, %v1880_v47 }
 0x8fc   : > { %2090 = vmatmul.mubr.bf16.gmra.mrb[16].mxu0 %v1905_v50  ;;  %v1899_v10 = vadd.f32 %v4992_v39, %v1879_v23  ;;  %v5335_v39 = vsub.s32 1, %v3883_v1 }
 0x8fd   : > { %2099 = vmatprep.mubr.bf16.mxu0 %v3679_v32  ;;  %2774 = vmatpush3.bf16.msra.mxu1 %v3341_v48 }
 0x8fe   : > { %v1908_v45 = vpack.c.bf16 %v1900_v3, %v1899_v10 }
 0x904   : > { %2100 = vmatmul.mubr.bf16.gmra.mrb[20].mxu0 %v1906_v15 }
 0x905   : > { %2109 = vmatprep.mubr.bf16.mxu0 %v3679_v32 }
 0x90c   : > { %2110 = vmatmul.mubr.bf16.gmra.mrb[24].mxu0 %v1907_v34 }
 0x90d   : > { %2119 = vmatprep.mubr.bf16.mxu0 %v3679_v32  ;;  %v1925_v32 = vld [vmem:[%s5253_s7] sm:$0x3] }
 0x90e   : > { %v5105_v37 = vrot.slane %v1925_v32, %v3996_v38  ;;  %v5109_v46 = vrot.slane %v1925_v32, %v5335_v39 }
 0x914   : > { %2120 = vmatmul.mubr.bf16.gmra.mrb[28].mxu0 %v1908_v45 }
 0x9af   : > { %v2051_v52 = vpop.f32.mrb[0].mxu0 }
 0x9b0   : > { %v2052_v11 = vadd.f32 %v2051_v52, %v5105_v37  ;;  %v2053_v14 = vpop.f32.mrb[1].mxu0 }
 0x9b1   : > { %v2054_v26 = vadd.f32 %v2053_v14, %v5109_v46  ;;  %v2055_v20 = vpop.f32.mrb[2].mxu0 }
 0x9b2   : > { %v2056_v62 = vadd.f32 %v2055_v20, %v5105_v37  ;;  %v2057_v36 = vpop.f32.mrb[3].mxu0  ;;  %v2130_v31 = vmax.f32 %v2052_v11, 0.0 }
 0x9b3   : > { %v2058_v12 = vadd.f32 %v2057_v36, %v5109_v46  ;;  %v2131_v38 = vmax.f32 %v2054_v26, 0.0 }
 0x9b4   : > { %v2132_v21 = vmax.f32 %v2056_v62, 0.0 }
 0x9b5   : > { %v2133_v33 = vmax.f32 %v2058_v12, 0.0 }
 0x9b6   : > { %v2162_v41 = vpack.c.bf16 %v2132_v21, %v2130_v31 }
 0x9b7   : > { %v2163_v50 = vpack.c.bf16 %v2133_v33, %v2131_v38  ;;  %v2061_v18 = vpop.f32.mrb[4].mxu0 }
 0x9b8   : > { %v2062_v61 = vadd.f32 %v2061_v18, %v5105_v37  ;;  %v2063_v42 = vpop.f32.mrb[5].mxu0 }
 0x9b9   : > { %2338 = vmatprep.mubr.bf16.mxu1 %v2163_v50  ;;  %v2064_v44 = vadd.f32 %v2063_v42, %v5109_v46  ;;  %v2065_v17 = vpop.f32.mrb[6].mxu0 }
 0x9ba   : > { %2339 = vmatmul.mubr.bf16.vlgmr.msra.gmra.mrb[0].mxu1 %v2162_v41  ;;  %v2066_v25 = vadd.f32 %v2065_v17, %v5105_v37  ;;  %v2067_v63 = vpop.f32.mrb[7].mxu0  ;;  %v2134_v15 = vmax.f32 %v2062_v61, 0.0 }
 0x9bb   : > { %v2068_v27 = vadd.f32 %v2067_v63, %v5109_v46  ;;  %v2135_v8 = vmax.f32 %v2064_v44, 0.0 }
 0x9bc   : > { %v2136_v13 = vmax.f32 %v2066_v25, 0.0 }
 0x9bd   : > { %v2137_v7 = vmax.f32 %v2068_v27, 0.0 }
 0x9be   : > { %v2164_v30 = vpack.c.bf16 %v2136_v13, %v2134_v15 }
 0x9bf   : > { %v2165_v6 = vpack.c.bf16 %v2137_v7, %v2135_v8  ;;  %v2071_v19 = vpop.f32.mrb[8].mxu0 }
 0x9c0   : > { %v2072_v53 = vadd.f32 %v2071_v19, %v5105_v37  ;;  %v2073_v16 = vpop.f32.mrb[9].mxu0 }
 0x9c1   : > { %v2074_v34 = vadd.f32 %v2073_v16, %v5109_v46  ;;  %v2075_v47 = vpop.f32.mrb[10].mxu0  ;;  %2346 = vmatprep.mubr.bf16.mxu1 %v2165_v6 }
 0x9c2   : > { %v2076_v23 = vadd.f32 %v2075_v47, %v5105_v37  ;;  %v2077_v3 = vpop.f32.mrb[11].mxu0  ;;  %2347 = vmatmul.mubr.bf16.gmra.mrb[4].mxu1 %v2164_v30  ;;  %v2138_v45 = vmax.f32 %v2072_v53, 0.0 }
 0x9c3   : > { %v2078_v10 = vadd.f32 %v2077_v3, %v5109_v46  ;;  %v2139_v55 = vmax.f32 %v2074_v34, 0.0 }
 0x9c4   : > { %v2140_v59 = vmax.f32 %v2076_v23, 0.0 }
 0x9c5   : > { %v2141_v24 = vmax.f32 %v2078_v10, 0.0 }
 0x9c6   : > { %v2166_v51 = vpack.c.bf16 %v2140_v59, %v2138_v45 }
 0x9c7   : > { %v2167_v48 = vpack.c.bf16 %v2141_v24, %v2139_v55  ;;  %v2081_v32 = vpop.f32.mrb[12].mxu0 }
 0x9c8   : > { %v2082_v39 = vadd.f32 %v2081_v32, %v5105_v37  ;;  %v2083_v52 = vpop.f32.mrb[13].mxu0 }
 0x9c9   : > { %v2084_v11 = vadd.f32 %v2083_v52, %v5109_v46  ;;  %v2085_v14 = vpop.f32.mrb[14].mxu0  ;;  %2354 = vmatprep.mubr.bf16.mxu1 %v2167_v48 }
 0x9ca   : > { %v2086_v26 = vadd.f32 %v2085_v14, %v5105_v37  ;;  %v2087_v20 = vpop.f32.mrb[15].mxu0  ;;  %2355 = vmatmul.mubr.bf16.gmra.mrb[8].mxu1 %v2166_v51  ;;  %v2142_v36 = vmax.f32 %v2082_v39, 0.0 }
 0x9cb   : > { %v2088_v62 = vadd.f32 %v2087_v20, %v5109_v46  ;;  %v2143_v31 = vmax.f32 %v2084_v11, 0.0 }
 0x9cc   : > { %v2144_v12 = vmax.f32 %v2086_v26, 0.0 }
 0x9cd   : > { %v2145_v21 = vmax.f32 %v2088_v62, 0.0 }
 0x9ce   : > { %v2168_v38 = vpack.c.bf16 %v2144_v12, %v2142_v36 }
 0x9cf   : > { %v2169_v33 = vpack.c.bf16 %v2145_v21, %v2143_v31  ;;  %v2091_v41 = vpop.f32.mrb[16].mxu0 }
 0x9d0   : > { %v2092_v50 = vadd.f32 %v2091_v41, %v5105_v37  ;;  %v2093_v18 = vpop.f32.mrb[17].mxu0 }
 0x9d1   : > { %v2094_v61 = vadd.f32 %v2093_v18, %v5109_v46  ;;  %v2095_v42 = vpop.f32.mrb[18].mxu0  ;;  %2362 = vmatprep.mubr.bf16.mxu1 %v2169_v33 }
 0x9d2   : > { %v2096_v44 = vadd.f32 %v2095_v42, %v5105_v37  ;;  %v2097_v17 = vpop.f32.mrb[19].mxu0  ;;  %2363 = vmatmul.mubr.bf16.gmra.mrb[12].mxu1 %v2168_v38  ;;  %v2146_v63 = vmax.f32 %v2092_v50, 0.0 }
 0x9d3   : > { %v2098_v25 = vadd.f32 %v2097_v17, %v5109_v46  ;;  %v2147_v15 = vmax.f32 %v2094_v61, 0.0 }
 0x9d4   : > { %v2148_v27 = vmax.f32 %v2096_v44, 0.0 }
 0x9d5   : > { %v2149_v13 = vmax.f32 %v2098_v25, 0.0 }
 0x9d6   : > { %v2170_v8 = vpack.c.bf16 %v2148_v27, %v2146_v63 }
 0x9d7   : > { %v2171_v7 = vpack.c.bf16 %v2149_v13, %v2147_v15  ;;  %v2101_v30 = vpop.f32.mrb[20].mxu0 }
 0x9d8   : > { %v2102_v6 = vadd.f32 %v2101_v30, %v5105_v37  ;;  %v2103_v19 = vpop.f32.mrb[21].mxu0 }
 0x9d9   : > { %v2104_v53 = vadd.f32 %v2103_v19, %v5109_v46  ;;  %v2105_v16 = vpop.f32.mrb[22].mxu0  ;;  %2370 = vmatprep.mubr.bf16.mxu1 %v2171_v7 }
 0x9da   : > { %v2106_v34 = vadd.f32 %v2105_v16, %v5105_v37  ;;  %v2107_v47 = vpop.f32.mrb[23].mxu0  ;;  %2371 = vmatmul.mubr.bf16.gmra.mrb[16].mxu1 %v2170_v8  ;;  %v2150_v3 = vmax.f32 %v2102_v6, 0.0  ;;  %v2421_v8 = vsub.s32 5, %v3883_v1 }
 0x9db   : > { %v2108_v23 = vadd.f32 %v2107_v47, %v5109_v46  ;;  %v2151_v45 = vmax.f32 %v2104_v53, 0.0 }
 0x9dc   : > { %v2152_v10 = vmax.f32 %v2106_v34, 0.0 }
 0x9dd   : > { %v2153_v59 = vmax.f32 %v2108_v23, 0.0 }
 0x9de   : > { %v2172_v55 = vpack.c.bf16 %v2152_v10, %v2150_v3 }
 0x9df   : > { %v2173_v24 = vpack.c.bf16 %v2153_v59, %v2151_v45  ;;  %v2111_v51 = vpop.f32.mrb[24].mxu0 }
 0x9e0   : > { %v2112_v48 = vadd.f32 %v2111_v51, %v5105_v37  ;;  %v2113_v32 = vpop.f32.mrb[25].mxu0 }
 0x9e1   : > { %v2114_v39 = vadd.f32 %v2113_v32, %v5109_v46  ;;  %v2115_v52 = vpop.f32.mrb[26].mxu0  ;;  %2378 = vmatprep.mubr.bf16.mxu1 %v2173_v24 }
 0x9e2   : > { %v2116_v11 = vadd.f32 %v2115_v52, %v5105_v37  ;;  %v2117_v14 = vpop.f32.mrb[27].mxu0  ;;  %2379 = vmatmul.mubr.bf16.gmra.mrb[20].mxu1 %v2172_v55  ;;  %v2154_v20 = vmax.f32 %v2112_v48, 0.0 }
 0x9e3   : > { %v2118_v26 = vadd.f32 %v2117_v14, %v5109_v46  ;;  %v2155_v36 = vmax.f32 %v2114_v39, 0.0 }
 0x9e4   : > { %v2156_v62 = vmax.f32 %v2116_v11, 0.0 }
 0x9e5   : > { %v2157_v12 = vmax.f32 %v2118_v26, 0.0 }
 0x9e6   : > { %v2174_v31 = vpack.c.bf16 %v2156_v62, %v2154_v20 }
 0x9e7   : > { %v2175_v21 = vpack.c.bf16 %v2157_v12, %v2155_v36  ;;  %v2121_v38 = vpop.f32.mrb[28].mxu0 }
 0x9e8   : > { %v2122_v33 = vadd.f32 %v2121_v38, %v5105_v37  ;;  %v2123_v41 = vpop.f32.mrb[29].mxu0 }
 0x9e9   : > { %v2124_v50 = vadd.f32 %v2123_v41, %v5109_v46  ;;  %v2125_v18 = vpop.f32.mrb[30].mxu0  ;;  %2386 = vmatprep.mubr.bf16.mxu1 %v2175_v21 }
 0x9ea   : > { %v2126_v61 = vadd.f32 %v2125_v18, %v5105_v37  ;;  %v2127_v42 = vpop.f32.mrb[31].mxu0  ;;  %2387 = vmatmul.mubr.bf16.gmra.mrb[24].mxu1 %v2174_v31  ;;  %v2158_v17 = vmax.f32 %v2122_v33, 0.0  ;;  %v5145_v37 = vrot.slane %v3895_v4, %v2421_v8 }
 0x9eb   : > { %v2128_v44 = vadd.f32 %v2127_v42, %v5109_v46  ;;  %v2159_v63 = vmax.f32 %v2124_v50, 0.0 }
 0x9ec   : > { %v2160_v25 = vmax.f32 %v2126_v61, 0.0 }
 0x9ed   : > { %v2161_v27 = vmax.f32 %v2128_v44, 0.0 }
 0x9ee   : > { %v2176_v15 = vpack.c.bf16 %v2160_v25, %v2158_v17 }
 0x9ef   : > { %v2177_v13 = vpack.c.bf16 %v2161_v27, %v2159_v63 }
 0x9f1   : > { %2394 = vmatprep.mubr.bf16.mxu1 %v2177_v13 }
 0x9f2   : > { %2395 = vmatmul.mubr.bf16.gmra.mrb[28].mxu1 %v2176_v15 }
 0xa8d   : > { %v2775_v7 = vpop.f32.mrb[0].mxu1 }
 0xa8e   : > { %v2776_v30 = vpop.f32.mrb[1].mxu1 }
 0xa8f   : > { %v2777_v6 = vadd.f32 %v2776_v30, %v2775_v7  ;;  %v2778_v19 = vpop.f32.mrb[2].mxu1 }
 0xa90   : > { %v2779_v46 = vpop.f32.mrb[3].mxu1 }
 0xa91   : > { %v2403_v53 = vadd.f32 %v2777_v6, %v5303_v49  ;;  %v2780_v16 = vadd.f32 %v2779_v46, %v2778_v19 }
 0xa93   : > { %v2423_v34 = vadd.f32 %v5145_v37, %v2403_v53  ;;  %v2404_v47 = vadd.f32 %v2780_v16, %v5305_v22 }
 0xa95   : > { %2439 = vst [vmem:[%s4334_s19] sm:$0xff] %v2423_v34  ;;  %v2424_v1 = vadd.f32 %v5145_v37, %v2404_v47  ;;  %v2781_v23 = vpop.f32.mrb[4].mxu1 }
 0xa96   : > { %v2782_v3 = vpop.f32.mrb[5].mxu1 }
 0xa97   : > { %2440 = vst [vmem:[%s4334_s19 + $0x8] sm:$0xff] %v2424_v1  ;;  %v2783_v10 = vadd.f32 %v2782_v3, %v2781_v23  ;;  %v2784_v4 = vpop.f32.mrb[6].mxu1 }
 0xa98   : > { %v2785_v45 = vpop.f32.mrb[7].mxu1 }
 0xa99   : > { %v2405_v59 = vadd.f32 %v2783_v10, %v5302_v0  ;;  %v2786_v49 = vadd.f32 %v2785_v45, %v2784_v4 }
 0xa9b   : > { %v2425_v55 = vadd.f32 %v5145_v37, %v2405_v59  ;;  %v2406_v24 = vadd.f32 %v2786_v49, %v5304_v58 }
 0xa9d   : > { %2441 = vst [vmem:[%s4334_s19 + $0x10] sm:$0xff] %v2425_v55  ;;  %v2426_v22 = vadd.f32 %v5145_v37, %v2406_v24  ;;  %v2787_v51 = vpop.f32.mrb[8].mxu1 }
 0xa9e   : > { %v2788_v48 = vpop.f32.mrb[9].mxu1 }
 0xa9f   : > { %2442 = vst [vmem:[%s4334_s19 + $0x18] sm:$0xff] %v2426_v22  ;;  %v2789_v32 = vadd.f32 %v2788_v48, %v2787_v51  ;;  %v2790_v39 = vpop.f32.mrb[10].mxu1 }
 0xaa0   : > { %v2791_v52 = vpop.f32.mrb[11].mxu1 }
 0xaa1   : > { %v2407_v11 = vadd.f32 %v2789_v32, %v5307_v9  ;;  %v2792_v0 = vadd.f32 %v2791_v52, %v2790_v39 }
 0xaa3   : > { %v2427_v14 = vadd.f32 %v5145_v37, %v2407_v11  ;;  %v2408_v26 = vadd.f32 %v2792_v0, %v5309_v29 }
 0xaa5   : > { %2443 = vst [vmem:[%s4334_s19 + $0x20] sm:$0xff] %v2427_v14  ;;  %v2428_v58 = vadd.f32 %v5145_v37, %v2408_v26  ;;  %v2793_v20 = vpop.f32.mrb[12].mxu1 }
 0xaa6   : > { %v2794_v62 = vpop.f32.mrb[13].mxu1 }
 0xaa7   : > { %2444 = vst [vmem:[%s4334_s19 + $0x28] sm:$0xff] %v2428_v58  ;;  %v2795_v36 = vadd.f32 %v2794_v62, %v2793_v20  ;;  %v2796_v12 = vpop.f32.mrb[14].mxu1 }
 0xaa8   : > { %v2797_v31 = vpop.f32.mrb[15].mxu1 }
 0xaa9   : > { %v2409_v21 = vadd.f32 %v2795_v36, %v5306_v60  ;;  %v2798_v9 = vadd.f32 %v2797_v31, %v2796_v12 }
 0xaab   : > { %v2429_v38 = vadd.f32 %v5145_v37, %v2409_v21  ;;  %v2410_v33 = vadd.f32 %v2798_v9, %v5308_v54 }
 0xaad   : > { %2445 = vst [vmem:[%s4334_s19 + $0x30] sm:$0xff] %v2429_v38  ;;  %v2430_v29 = vadd.f32 %v5145_v37, %v2410_v33  ;;  %v2799_v41 = vpop.f32.mrb[16].mxu1 }
 0xaae   : > { %v2800_v50 = vpop.f32.mrb[17].mxu1 }
 0xaaf   : > { %2446 = vst [vmem:[%s4334_s19 + $0x38] sm:$0xff] %v2430_v29  ;;  %v2801_v18 = vadd.f32 %v2800_v50, %v2799_v41  ;;  %v2802_v61 = vpop.f32.mrb[18].mxu1 }
 0xab0   : > { %v2803_v42 = vpop.f32.mrb[19].mxu1 }
 0xab1   : > { %v2411_v44 = vadd.f32 %v2801_v18, %v5311_v57  ;;  %v2804_v60 = vadd.f32 %v2803_v42, %v2802_v61 }
 0xab3   : > { %v2431_v17 = vadd.f32 %v5145_v37, %v2411_v44  ;;  %v2412_v25 = vadd.f32 %v2804_v60, %v5313_v56 }
 0xab5   : > { %2447 = vst [vmem:[%s4334_s19 + $0x40] sm:$0xff] %v2431_v17  ;;  %v2432_v54 = vadd.f32 %v5145_v37, %v2412_v25  ;;  %v2805_v63 = vpop.f32.mrb[20].mxu1 }
 0xab6   : > { %v2806_v27 = vpop.f32.mrb[21].mxu1 }
 0xab7   : > { %2448 = vst [vmem:[%s4334_s19 + $0x48] sm:$0xff] %v2432_v54  ;;  %v2807_v15 = vadd.f32 %v2806_v27, %v2805_v63  ;;  %v2808_v13 = vpop.f32.mrb[22].mxu1 }
 0xab8   : > { %v2809_v8 = vpop.f32.mrb[23].mxu1 }
 0xab9   : > { %v2413_v7 = vadd.f32 %v2807_v15, %v5310_v5  ;;  %v2810_v57 = vadd.f32 %v2809_v8, %v2808_v13 }
 0xabb   : > { %v2433_v30 = vadd.f32 %v5145_v37, %v2413_v7  ;;  %v2414_v6 = vadd.f32 %v2810_v57, %v5312_v28 }
 0xabd   : > { %2449 = vst [vmem:[%s4334_s19 + $0x50] sm:$0xff] %v2433_v30  ;;  %v2434_v56 = vadd.f32 %v5145_v37, %v2414_v6  ;;  %v2811_v19 = vpop.f32.mrb[24].mxu1 }
 0xabe   : > { %v2812_v46 = vpop.f32.mrb[25].mxu1 }
 0xabf   : > { %2450 = vst [vmem:[%s4334_s19 + $0x58] sm:$0xff] %v2434_v56  ;;  %v2813_v53 = vadd.f32 %v2812_v46, %v2811_v19  ;;  %v2814_v16 = vpop.f32.mrb[26].mxu1 }
 0xac0   : > { %v2815_v34 = vpop.f32.mrb[27].mxu1 }
 0xac1   : > { %v2415_v5 = vadd.f32 %v2813_v53, %v5315_v35  ;;  %v2816_v47 = vadd.f32 %v2815_v34, %v2814_v16 }
 0xac3   : > { %v2435_v1 = vadd.f32 %v5145_v37, %v2415_v5  ;;  %v2416_v23 = vadd.f32 %v2816_v47, %v5317_v40 }
 0xac5   : > { %2451 = vst [vmem:[%s4334_s19 + $0x60] sm:$0xff] %v2435_v1  ;;  %v2436_v28 = vadd.f32 %v5145_v37, %v2416_v23  ;;  %v2817_v3 = vpop.f32.mrb[28].mxu1 }
 0xac6   : > { %v2818_v10 = vpop.f32.mrb[29].mxu1 }
 0xac7   : > { %2452 = vst [vmem:[%s4334_s19 + $0x68] sm:$0xff] %v2436_v28  ;;  %v2819_v4 = vadd.f32 %v2818_v10, %v2817_v3  ;;  %v2820_v45 = vpop.f32.mrb[30].mxu1 }
 0xac8   : > { %v2821_v59 = vpop.f32.mrb[31].mxu1 }
 0xac9   : > { %v2417_v35 = vadd.f32 %v2819_v4, %v5314_v43  ;;  %v2822_v49 = vadd.f32 %v2821_v59, %v2820_v45 }
 0xacb   : > { %v2437_v40 = vadd.f32 %v5145_v37, %v2417_v35  ;;  %v2418_v55 = vadd.f32 %v2822_v49, %v5316_v2 }
 0xacd   : > { %2453 = vst [vmem:[%s4334_s19 + $0x70] sm:$0xff] %v2437_v40  ;;  %v2438_v43 = vadd.f32 %v5145_v37, %v2418_v55 }
 0xacf   : > { %2454 = vst [vmem:[%s4334_s19 + $0x78] sm:$0xff] %v2438_v43 }
 0xad0   : > { %3477 = shalt.err (!%p3474_p2)
}
 0xad1   : > { %s3478_s19 = scalar_lea.hbm %s5197_s17, 2048  ;;  %s3482_s26 = scalar_lea.hbm %s5255_s9, 4096 }
 0xad2   : > { %p3479_p5 = scmp.ne.s32.totalorder %s5197_s17, %s3478_s19  ;;  %p3483_p11 = scmp.lt.u32.totalorder %s5197_s17, %s5255_s9 }
 0xad3   : > { %p3484_p4 = scmp.lt.u32.totalorder %s3482_s26, %s3478_s19  ;;  %p3486_p8 = scmp.lt.u32.totalorder %s3478_s19, %s5197_s17 }
 0xad4   : > { %p3480_p0 = pnand %p3479_p5, %p3824_p12 }
 0xad5   : > { %p3485_p6 = por %p3484_p4, %p3483_p11 }
 0xad6   : > { %p3481_p1 = pneg %p3480_p0 }
 0xad7   : > { %p3487_p10 = por %p3486_p8, %p3485_p6 }
 0xad9   : > { %p3488_p13 = pnand %p3487_p10, %p3481_p1 }
 0xadb   : > { %3491 = shalt.err (!%p3488_p13)
}
 0xadc   : > { %s3681_s16 = smov 128   ;;  %s3682_s22 = smov 8  }
 0xadd   : > { %2969 = dma.vmem_to_hbm [thread:$0]  (%p3824_p12), %s5199_s18, 2048, %s5197_s17, %s2456_s13, %s3681_s16, %s3681_s16, %s3682_s22  }
 0xade PF: > { %s5336_s23 = sld [smem:[#allocation11_spill]]  ;;  %s2484_s15 = sand.u32 1, %s3590_s30  }
 0xadf   : > { %p5338_p7 = scmp.ge.s32.totalorder %s3602_s12, 2  ;;  %s2485_s24 = scalar_lea.sflag [#allocation4], %s2484_s15 }
 0xae4   : > { %p5337_p3 = scmp.ne.s32.totalorder %s5336_s23, 0 }
 0xae6   : > { %p2980_p9 = pnand %p5338_p7, %p5337_p3 }
 0xae8   : > { %3585 = dma.done.wait (!%p2980_p9), %s2485_s24, 2048  }
 0xae9   : > { %3587 = vsyncadd (!%p2980_p9), %s2485_s24, 4294965248  ;;  %s5339_s12 = sld [smem:[#allocation12_spill]]  ;;  %s5340_s30 = smov %s3594_s10 }
 0xaea   : > { %s5341_s10 = smov %s3598_s11  ;;  %s5342_s11 = smov %s3820_s28 }
 0xaef   : > { %p23_p2 = scmp.ge.s32.totalorder %s5339_s12, 4  }
 0xaf1   :  { %25 = sbr.rel (!%p23_p2) target bundleno = 6 (0x6), region = 129 }
 0xaf8   :  { %2490 = vsyncpa [#allocation3], 1 }
 0xaf9   :  { %2492 = vsyncpa [#allocation3 + $0x1], 1 }
 0xafa   :  { %2493 = vsyncpa [#allocation6], 1 }
 0xafb   :  { %2494 = vsyncpa [#allocation4], 1 }
 0xafc   :  { %2496 = vsyncpa [#allocation4 + $0x1], 1 }

// kernel: tpu_custom_call.1
= control target key start
LH: loop header
LB: loop body
LE: loop exit
PB: predicated region body
PF: predicated region fallthrough
CT: control target
= control target key end

     0   :  { %14 = vsyncpa [#allocation3], 0  ;;  %s5246_s0 = inlined_call_operand.vmem [shape: f32[2,128,128], index: 0, kind: input, shape index: {}]   ;;  %s5247_s1 = inlined_call_operand.hbm [shape: f32[2,1,128], index: 1, kind: input, shape index: {}]   ;;  %s5248_s2 = inlined_call_operand.vmem [shape: bf16[4,128,96], index: 2, kind: input, shape index: {}]   ;;  %s5249_s3 = inlined_call_operand.vmem [shape: f32[4,1,96], index: 3, kind: input, shape index: {}]   ;;  %s5250_s4 = inlined_call_operand.vmem [shape: bf16[4,32,128], index: 4, kind: input, shape index: {}]   ;;  %s5251_s5 = inlined_call_operand.vmem [shape: f32[6,128], index: 5, kind: input, shape index: {}]   ;;  %s5252_s6 = inlined_call_operand.vmem [shape: bf16[128,256], index: 6, kind: input, shape index: {}]   ;;  %s5253_s7 = inlined_call_operand.vmem [shape: f32[1,256], index: 7, kind: input, shape index: {}]   ;;  %s5254_s8 = inlined_call_operand.hbm [shape: bf16[256,128], index: 8, kind: input, shape index: {}]   ;;  %s5255_s9 = inlined_call_operand.hbm [shape: f32[2,128,128], index: 9, kind: output, shape index: {}]  }
   0x1   :  { %16 = vsyncpa [#allocation3 + $0x1], 0 }
   0x2   :  { %17 = vsyncpa [#allocation6], 0 }
   0x3   :  { %18 = vsyncpa [#allocation4], 0 }
   0x4   :  { %20 = vsyncpa [#allocation4 + $0x1], 0  ;;  %s3733_s30 = smov 0   ;;  %s3735_s10 = smov 0  }
   0x5   :  { %s3737_s11 = smov 0   ;;  %s3739_s12 = smov 0  }
   0x6 LB: > { %s3754_s13 = sadd.s32 4294967295, %s3602_s12   ;;  %s2619_s14 = sadd.s32 4294967294, %s3602_s12   ;;  %s3602_s12 = sphi %s3739_s12, %s5339_s12   ;;  %s3598_s11 = sphi %s3737_s11, %s5342_s11   ;;  %s3594_s10 = sphi %s3735_s10, %s5341_s10   ;;  %s3590_s30 = sphi %s3733_s30, %s5340_s30  }
   0x7   : > { %p72_p0 = scmp.ne.s32.totalorder %s3594_s10, %s3590_s30  ;;  %p5256_p1 = scmp.eq.s32.totalorder %s3754_s13, 0 }
   0x8   : > { %p249_p3 = scmp.eq.s32.totalorder %s2619_s14, 1  ;;  %p2620_p5 = scmp.ge.s32.totalorder %s3602_s12, 1 }
   0x9   : > { %p3763_p4 = por %p5256_p1, %p72_p0  ;;  %p256_p7 = scmp.lt.s32.totalorder %s3602_s12, 3 }
   0xa   : > { %p3768_p6 = por %p249_p3, %p72_p0  ;;  %s3672_s18 = smov [#allocation5]  }
   0xb   : > { %s5269_s15 = scalar_select %p3763_p4, 1, 0 }
   0xc   : > { %s5270_s16 = scalar_select %p3768_p6, 1, 0 }
   0xd   : > { %p3773_p8 = pnand %p2620_p5, %p256_p7  ;;  %s286_s19 = sshll.u32 %s3672_s18, 4  ;;  %s3777_s19 = int_to_ptr.vmem [resolvable:$true] %s286_s19 }
   0xe   : > { %5271 = sst [smem:[#allocation11_spill]] %s5270_s16  ;;  %s3789_s21 = sadd.s32 1, %s3602_s12  }
   0xf   : > { %s5272_s17 = scalar_select %p3773_p8, 1, 0 }
  0x10   : > { %p2971_p9 = pneg %p3773_p8  ;;  %5274 = sst [smem:[#allocation12_spill]] %s3789_s21 }
  0x11   : > { %s59_s22 = sadd.s32 1, %s3598_s11  ;;  %s56_s23 = ssub.s32 %s3602_s12, %s3789_s21 }
  0x12   : > { %p3784_p11 = pnand %p2971_p9, %p5256_p1  ;;  %s3406_s26 = scalar_lea.hbm %s5254_s8, 2048 }
  0x13   : > { %p3407_p12 = scmp.ne.s32.totalorder %s5254_s8, %s3406_s26  ;;  %p3413_p5 = scmp.lt.u32.totalorder %s3406_s26, %s5254_s8 }
  0x14   : > { %p3408_p13 = pneg %p3784_p11 }
  0x16   : > { %p3409_p0 = pnand %p3408_p13, %p3407_p12 }
  0x18   : > { %p3410_p3 = pneg %p3409_p0 }
  0x1a   : > { %p3415_p7 = pnand %p3413_p5, %p3410_p3 }
  0x1c   : > { %3418 = shalt.err (!%p3415_p7)
}
  0x1d   : > { %s3419_s18 = scalar_lea.vmem %s3777_s19, 2048  ;;  %p3427_p2 = scmp.lt.s32.totalorder %s3777_s19, %s3777_s19 }
  0x1e   : > { %p3420_p9 = scmp.ne.s32.totalorder %s3777_s19, %s3419_s18  ;;  %p3428_p6 = scmp.lt.s32.totalorder %s3419_s18, %s3419_s18 }
  0x20   : > { %p3422_p10 = pnand %p3420_p9, %p3408_p13  ;;  %p3429_p4 = por %p3428_p6, %p3427_p2 }
  0x22   : > { %p3423_p1 = pneg %p3422_p10 }
  0x24   : > { %p3430_p8 = pnand %p3429_p4, %p3423_p1 }
  0x26   : > { %3433 = shalt.err (!%p3430_p8)
}
  0x27   : > { %s3673_s24 = smov 64   ;;  %s3674_s25 = smov 4  }
  0x28   : > { %2974 = dma.hbm_to_vmem [thread:$0]  (!%p3784_p11), %s5254_s8, 2048, %s3777_s19, [#allocation6], %s3673_s24, %s3673_s24, %s3674_s25  }
  0x29   : > { %p57_p2 = scmp.eq.s32.totalorder %s56_s23, 0  ;;  %p66_p1 = scmp.ne.s32.totalorder %s3598_s11, %s3594_s10 }
  0x2a   : > { %p67_p4 = scmp.eq.s32.totalorder %s3602_s12, 0  ;;  %p2984_p6 = scmp.lt.s32.totalorder %s3602_s12, 2 }
  0x2b   : > { %s3820_s28 = scalar_select %p57_p2, %s3598_s11, %s59_s22  }
  0x2c   : > { %p68_p8 = por %p67_p4, %p66_p1  ;;  %p5275_p10 = scmp.eq.s32.totalorder %s3754_s13, 1 }
  0x2d   : > { %s308_s14 = sand.u32 1, %s3598_s11   ;;  %s2623_s18 = sshll.u32 %s3602_s12, 4 }
  0x2e   : > { %p3824_p12 = por %p5275_p10, %p66_p1  ;;  %s3833_s16 = scalar_lea.hbm %s5247_s1, %s2623_s18 }
  0x2f   : > { %s311_s19 = scalar_lea.vmem [#allocation2], %s308_s14  ;;  %p3837_p11 = pnand %p2984_p6, %p68_p8 }
  0x30   : > { %s318_s22 = sshll.u32 %s311_s19, 4  ;;  %s309_s24 = scalar_lea.sflag [#allocation3], %s308_s14  ;;  %s3835_s22 = int_to_ptr.vmem [resolvable:$true] %s318_s22 }
  0x31   : > { %s3434_s25 = scalar_lea.hbm %s3833_s16, 16  ;;  %p3436_p0 = pneg %p3837_p11 }
  0x32   : > { %p3435_p13 = scmp.ne.s32.totalorder %s3833_s16, %s3434_s25  ;;  %s3439_s27 = scalar_lea.hbm %s5247_s1, 32 }
  0x33   : > { %p3440_p7 = scmp.lt.u32.totalorder %s3833_s16, %s5247_s1  ;;  %p3441_p9 = scmp.lt.u32.totalorder %s3439_s27, %s3434_s25 }
  0x34   : > { %p3437_p3 = pnand %p3436_p0, %p3435_p13  ;;  %p3443_p1 = scmp.lt.u32.totalorder %s3434_s25, %s3833_s16 }
  0x35   : > { %p3442_p2 = por %p3441_p9, %p3440_p7 }
  0x36   : > { %p3438_p5 = pneg %p3437_p3 }
  0x37   : > { %p3444_p4 = por %p3443_p1, %p3442_p2 }
  0x39   : > { %p3445_p6 = pnand %p3444_p4, %p3438_p5 }
  0x3b   : > { %3448 = shalt.err (!%p3445_p6)
}
  0x3c   : > { %s3449_s14 = scalar_lea.vmem %s3835_s22, 16  ;;  %s3675_s19 = smov [#allocation2]  }
  0x3d   : > { %p3450_p8 = scmp.ne.s32.totalorder %s3835_s22, %s3449_s14  ;;  %s3454_s21 = sshll.u32 %s3675_s19, 4  ;;  %s3455_s21 = int_to_ptr.vmem [resolvable:$false] %s3454_s21 }
  0x3e   : > { %s3456_s26 = scalar_lea.vmem %s3455_s21, 32  ;;  %p3457_p3 = scmp.lt.s32.totalorder %s3835_s22, %s3455_s21 }
  0x3f   : > { %p3452_p10 = pnand %p3450_p8, %p3436_p0  ;;  %p3458_p7 = scmp.lt.s32.totalorder %s3456_s26, %s3449_s14 }
  0x41   : > { %p3453_p13 = pneg %p3452_p10  ;;  %p3459_p9 = por %p3458_p7, %p3457_p3 }
  0x43   : > { %p3460_p2 = pnand %p3459_p9, %p3453_p13 }
  0x45   : > { %3463 = shalt.err (!%p3460_p2)
}
  0x46   : > { %2978 = dma.hbm_to_vmem [thread:$0]  (!%p3837_p11), %s3833_s16, 16, %s3835_s22, %s309_s24  }
  0x47   : > { %p5278_p5 = scmp.ne.s32.totalorder %s5272_s17, 0 }
  0x49   : > { %327 = sbr.rel (%p5278_p5) target bundleno = 2782 (0xade), region = 56 }
  0x50   : > { %s3869_s25 = sand.u32 1, %s3594_s10   ;;  %p5279_p0 = scmp.ne.s32.totalorder %s5269_s15, 0 }
  0x51   : > { %s330_s27 = scalar_lea.sflag [#allocation3], %s3869_s25  ;;  %s332_s18 = scalar_lea.vmem [#allocation2], %s3869_s25 }
  0x52   : > { %3577 = dma.done.wait (%p5279_p0), %s330_s27, 16  }
  0x53   : > { %3579 = vsyncadd (%p5279_p0), %s330_s27, 4294967280  ;;  %p5280_p1 = scmp.eq.s32.totalorder %s3754_s13, 0 }
  0x55   : > { %3581 = dma.done.wait (%p5280_p1), [#allocation6], 2048   ;;  %p5281_p11 = pmov %p5280_p1 }
  0x56   : > { %p375_p4 = scmp.lt.s32.totalorder %s3754_s13, 1  ;;  %v402_v0 = vlaneseq  ;;  %v3895_v4 = vld [vmem:[%s5251_s5] sm:$0x3f]  ;;  %v3676_v39 = vmov 0.0   ;;  %s2626_s14 = sshll.u32 %s3869_s25, 7 }
  0x57   : > { %3583 = vsyncadd (%p5281_p11), [#allocation6], 4294965248  ;;  %v398_v37 = vld [vmem:[%s332_s18] sm:$0x1]  ;;  %s4334_s19 = scalar_lea.vmem [#allocation7], %s2626_s14  ;;  %s4384_s21 = smov 0  }
  0x58   : > { %s376_s16 = scalar_select %p375_p4, %s3754_s13, 1  ;;  %v3883_v1 = vshrl.u32 %v402_v0, 7  ;;  %vm399_vm0 = vcmp.eq.f32.partialorder %v398_v37, 0.0 }
  0x59   : > { %v400_v40 = vsel %vm399_vm0, -1e+09, %v3676_v39 }
  0x5a   : > { %s2697_s17 = sshll.u32 %s376_s16, 7  ;;  %v746_v2 = vsub.s32 4, %v3883_v1  ;;  %v3996_v38 = vsub.s32 0, %v3883_v1 }
  0x5b   : > { %s3889_s15 = scalar_lea.vmem %s5246_s0, %s2697_s17 }
  0x5c   : > { %v381_v3 = vld [vmem:[%s3889_s15] sm:$0xff]  ;;  %v383_v5 = vld [vmem:[%s3889_s15 + $0x10] sm:$0xff]  ;;  %v747_v6 = vrot.slane %v3895_v4, %v746_v2  ;;  %v382_v7 = vld [vmem:[%s3889_s15 + $0x8] sm:$0xff]  ;;  %v3999_v41 = vrot.slane %v400_v40, %v3996_v38 }
  0x5d   : > { %407 = vadd.xlane.f32.xlu0 %v381_v3  ;;  %411 = vadd.xlane.f32.xlu1 %v383_v5  ;;  %v384_v8 = vld [vmem:[%s3889_s15 + $0x18] sm:$0xff]  ;;  %v3902_v9 = vld [vmem:[%s3889_s15 + $0x20] sm:$0xff]  ;;  %v3905_v10 = vld [vmem:[%s3889_s15 + $0x28] sm:$0xff] }
  0x5e   : > { %v3907_v11 = vadd.f32 %v747_v6, %v381_v3   ;;  %v3909_v12 = vadd.f32 %v747_v6, %v383_v5   ;;  %v3911_v13 = vadd.f32 %v747_v6, %v382_v7   ;;  %v3913_v14 = vadd.f32 %v747_v6, %v384_v8   ;;  %v3916_v15 = vld [vmem:[%s3889_s15 + $0x30] sm:$0xff]  ;;  %v3919_v16 = vld [vmem:[%s3889_s15 + $0x38] sm:$0xff]  ;;  %v3922_v17 = vld [vmem:[%s3889_s15 + $0x40] sm:$0xff] }
  0x5f   : > { %v3925_v18 = vadd.f32 %v747_v6, %v3902_v9   ;;  %v3928_v19 = vadd.f32 %v747_v6, %v3905_v10   ;;  %v3931_v20 = vadd.f32 %v747_v6, %v3916_v15   ;;  %v3934_v21 = vadd.f32 %v747_v6, %v3919_v16   ;;  %v3937_v22 = vld [vmem:[%s3889_s15 + $0x48] sm:$0xff]  ;;  %v3940_v23 = vld [vmem:[%s3889_s15 + $0x50] sm:$0xff]  ;;  %v3943_v24 = vld [vmem:[%s3889_s15 + $0x58] sm:$0xff] }
  0x60   : > { %v3946_v25 = vadd.f32 %v747_v6, %v3922_v17   ;;  %v3949_v26 = vadd.f32 %v747_v6, %v3937_v22   ;;  %v3952_v27 = vadd.f32 %v747_v6, %v3940_v23   ;;  %v3955_v28 = vld [vmem:[%s3889_s15 + $0x60] sm:$0xff]  ;;  %v3958_v29 = vld [vmem:[%s3889_s15 + $0x68] sm:$0xff]  ;;  %v3961_v30 = vld [vmem:[%s3889_s15 + $0x70] sm:$0xff]  ;;  %v3964_v31 = vadd.f32 %v747_v6, %v3943_v24  }
  0x61   : > { %409 = vadd.xlane.f32.xlu0 %v382_v7  ;;  %413 = vadd.xlane.f32.xlu1 %v384_v8  ;;  %v3967_v32 = vadd.f32 %v747_v6, %v3955_v28   ;;  %v3970_v33 = vadd.f32 %v747_v6, %v3958_v29   ;;  %v3973_v34 = vadd.f32 %v747_v6, %v3961_v30   ;;  %v3976_v35 = vld [vmem:[%s3889_s15 + $0x78] sm:$0xff] }
  0x62   : > { %v3979_v36 = vadd.f32 %v747_v6, %v3976_v35  }
  0x65   : > { %415 = vadd.xlane.f32.xlu0 %v3902_v9  ;;  %417 = vadd.xlane.f32.xlu1 %v3905_v10 }
  0x69   : > { %419 = vadd.xlane.f32.xlu0 %v3916_v15  ;;  %421 = vadd.xlane.f32.xlu1 %v3919_v16 }
  0x6d   : > { %423 = vadd.xlane.f32.xlu0 %v3922_v17  ;;  %425 = vadd.xlane.f32.xlu1 %v3937_v22 }
  0x71   : > { %427 = vadd.xlane.f32.xlu0 %v3940_v23  ;;  %429 = vadd.xlane.f32.xlu1 %v3943_v24 }
  0x75   : > { %431 = vadd.xlane.f32.xlu0 %v3955_v28  ;;  %433 = vadd.xlane.f32.xlu1 %v3958_v29 }
  0x79   : > { %435 = vadd.xlane.f32.xlu0 %v3961_v30  ;;  %437 = vadd.xlane.f32.xlu1 %v3976_v35 }
  0xea   : > { %v408_v42 = vpop.xlane.xlu0 %407  ;;  %v412_v43 = vpop.xlane.xlu1 %411 }
  0xeb   : > { %v440_v44 = vmul.f32 0.0078125, %v408_v42  ;;  %v442_v45 = vmul.f32 0.0078125, %v412_v43 }
  0xed   : > { %v4001_v46 = vsub.f32 %v381_v3, %v440_v44  ;;  %v4003_v47 = vsub.f32 %v383_v5, %v442_v45 }
  0xee   : > { %v410_v48 = vpop.xlane.xlu0 %409  ;;  %v414_v49 = vpop.xlane.xlu1 %413 }
  0xef   : > { %v441_v50 = vmul.f32 0.0078125, %v410_v48  ;;  %v472_v51 = vmul.f32 %v4001_v46, %v4001_v46  ;;  %v443_v52 = vmul.f32 0.0078125, %v414_v49  ;;  %v474_v55 = vmul.f32 %v4003_v47, %v4003_v47 }
  0xf1   : > { %v4007_v53 = vsub.f32 %v382_v7, %v441_v50  ;;  %488 = vadd.xlane.f32.xlu0 %v472_v51  ;;  %v4009_v54 = vsub.f32 %v384_v8, %v443_v52 }
  0xf2   : > { %v416_v56 = vpop.xlane.xlu0 %415  ;;  %v418_v57 = vpop.xlane.xlu1 %417 }
  0xf3   : > { %v444_v58 = vmul.f32 0.0078125, %v416_v56  ;;  %v473_v59 = vmul.f32 %v4007_v53, %v4007_v53  ;;  %v445_v60 = vmul.f32 0.0078125, %v418_v57  ;;  %v475_v63 = vmul.f32 %v4009_v54, %v4009_v54 }
  0xf5   : > { %v4016_v61 = vsub.f32 %v3902_v9, %v444_v58  ;;  %492 = vadd.xlane.f32.xlu0 %v474_v55  ;;  %490 = vadd.xlane.f32.xlu1 %v473_v59  ;;  %v4019_v62 = vsub.f32 %v3905_v10, %v445_v60 }
  0xf6   : > { %v420_v0 = vpop.xlane.xlu0 %419  ;;  %v422_v2 = vpop.xlane.xlu1 %421 }
  0xf7   : > { %v446_v3 = vmul.f32 0.0078125, %v420_v0  ;;  %v476_v5 = vmul.f32 %v4016_v61, %v4016_v61  ;;  %v447_v6 = vmul.f32 0.0078125, %v422_v2  ;;  %v477_v9 = vmul.f32 %v4019_v62, %v4019_v62 }
  0xf9   : > { %v4026_v7 = vsub.f32 %v3916_v15, %v446_v3  ;;  %494 = vadd.xlane.f32.xlu1 %v475_v63  ;;  %496 = vadd.xlane.f32.xlu0 %v476_v5  ;;  %v4029_v8 = vsub.f32 %v3919_v16, %v447_v6 }
  0xfa   : > { %v424_v10 = vpop.xlane.xlu0 %423  ;;  %v426_v37 = vpop.xlane.xlu1 %425 }
  0xfb   : > { %v448_v39 = vmul.f32 0.0078125, %v424_v10  ;;  %v478_v40 = vmul.f32 %v4026_v7, %v4026_v7  ;;  %v449_v42 = vmul.f32 0.0078125, %v426_v37  ;;  %v479_v16 = vmul.f32 %v4029_v8, %v4029_v8 }
  0xfd   : > { %v4036_v43 = vsub.f32 %v3922_v17, %v448_v39  ;;  %498 = vadd.xlane.f32.xlu1 %v477_v9  ;;  %500 = vadd.xlane.f32.xlu0 %v478_v40  ;;  %v4039_v15 = vsub.f32 %v3937_v22, %v449_v42 }
  0xfe   : > { %v428_v44 = vpop.xlane.xlu0 %427  ;;  %v430_v45 = vpop.xlane.xlu1 %429 }
  0xff   : > { %v450_v48 = vmul.f32 0.0078125, %v428_v44  ;;  %v480_v49 = vmul.f32 %v4036_v43, %v4036_v43  ;;  %v451_v50 = vmul.f32 0.0078125, %v430_v45  ;;  %v481_v22 = vmul.f32 %v4039_v15, %v4039_v15 }
 0x100   : > { %v5262_v44 = vsub.s32 1, %v3883_v1 }
 0x101   : > { %v4046_v51 = vsub.f32 %v3940_v23, %v450_v48  ;;  %502 = vadd.xlane.f32.xlu1 %v479_v16  ;;  %504 = vadd.xlane.f32.xlu0 %v480_v49  ;;  %v4049_v17 = vsub.f32 %v3943_v24, %v451_v50  ;;  %v4086_v49 = vrot.slane %v3895_v4, %v3996_v38 }
 0x102   : > { %v432_v52 = vpop.xlane.xlu0 %431  ;;  %v434_v55 = vpop.xlane.xlu1 %433 }
 0x103   : > { %v452_v56 = vmul.f32 0.0078125, %v432_v52  ;;  %v482_v57 = vmul.f32 %v4046_v51, %v4046_v51  ;;  %v453_v58 = vmul.f32 0.0078125, %v434_v55  ;;  %v483_v24 = vmul.f32 %v4049_v17, %v4049_v17 }
 0x104   : > { %v4092_v55 = vrot.slane %v3895_v4, %v5262_v44 }
 0x105   : > { %v4056_v59 = vsub.f32 %v3955_v28, %v452_v56  ;;  %506 = vadd.xlane.f32.xlu1 %v481_v22  ;;  %508 = vadd.xlane.f32.xlu0 %v482_v57  ;;  %v4059_v23 = vsub.f32 %v3958_v29, %v453_v58 }
 0x106   : > { %v436_v60 = vpop.xlane.xlu0 %435  ;;  %v438_v63 = vpop.xlane.xlu1 %437 }
 0x107   : > { %v454_v0 = vmul.f32 0.0078125, %v436_v60  ;;  %v484_v2 = vmul.f32 %v4056_v59, %v4056_v59  ;;  %v455_v3 = vmul.f32 0.0078125, %v438_v63  ;;  %v485_v29 = vmul.f32 %v4059_v23, %v4059_v23 }
 0x109   : > { %v4066_v5 = vsub.f32 %v3961_v30, %v454_v0  ;;  %510 = vadd.xlane.f32.xlu1 %v483_v24  ;;  %512 = vadd.xlane.f32.xlu0 %v484_v2  ;;  %v4069_v28 = vsub.f32 %v3976_v35, %v455_v3 }
 0x10b   : > { %v486_v6 = vmul.f32 %v4066_v5, %v4066_v5  ;;  %v487_v9 = vmul.f32 %v4069_v28, %v4069_v28 }
 0x10d   : > { %514 = vadd.xlane.f32.xlu1 %v485_v29  ;;  %516 = vadd.xlane.f32.xlu0 %v486_v6 }
 0x111   : > { %518 = vadd.xlane.f32.xlu1 %v487_v9 }
 0x17e   : > { %v489_v30 = vpop.xlane.xlu0 %488 }
 0x17f   : > { %v520_v10 = vmul.f32 0.007874016, %v489_v30 }
 0x181   : > { %3164 = vrsqrt.f32 %v520_v10  ;;  %vm538_vm1 = vcmp.eq.f32.partialorder %v520_v10, inf  ;;  %vm540_vm2 = vcmp.eq.f32.partialorder %v520_v10, 0.0  ;;  %v541_v24 = vand.u32 2147483648, %v520_v10 }
 0x182   : > { %v491_v37 = vpop.xlane.xlu1 %490  ;;  %v493_v39 = vpop.xlane.xlu0 %492 }
 0x183   : > { %v521_v35 = vmul.f32 0.007874016, %v491_v37  ;;  %v522_v40 = vmul.f32 0.007874016, %v493_v39 }
 0x185   : > { %3166 = vrsqrt.f32 %v521_v35  ;;  %vm545_vm3 = vcmp.eq.f32.partialorder %v521_v35, inf  ;;  %vm547_vm4 = vcmp.eq.f32.partialorder %v521_v35, 0.0  ;;  %v548_v60 = vand.u32 2147483648, %v521_v35 }
 0x186   : > { %3168 = vrsqrt.f32 %v522_v40  ;;  %v495_v42 = vpop.xlane.xlu1 %494  ;;  %v497_v16 = vpop.xlane.xlu0 %496  ;;  %vm552_vm5 = vcmp.eq.f32.partialorder %v522_v40, inf  ;;  %vm554_vm6 = vcmp.eq.f32.partialorder %v522_v40, 0.0  ;;  %v555_v0 = vand.u32 2147483648, %v522_v40 }
 0x187   : > { %v4079_v45 = vmul.f32 0.007874016, %v495_v42  ;;  %v4081_v48 = vmul.f32 0.007874016, %v497_v16 }
 0x189   : > { %3170 = vrsqrt.f32 %v4079_v45  ;;  %vm559_vm7 = vcmp.eq.f32.partialorder %v4079_v45, inf  ;;  %vm561_vm8 = vcmp.eq.f32.partialorder %v4079_v45, 0.0  ;;  %vm566_vm9 = vcmp.eq.f32.partialorder %v4081_v48, inf }
 0x18a   : > { %3172 = vrsqrt.f32 %v4081_v48  ;;  %v499_v50 = vpop.xlane.xlu1 %498  ;;  %v501_v22 = vpop.xlane.xlu0 %500  ;;  %vm568_vm10 = vcmp.eq.f32.partialorder %v4081_v48, 0.0 }
 0x18b   : > { %v3165_v52 = vpop.eup %3164  ;;  %v4094_v56 = vmul.f32 0.007874016, %v499_v50  ;;  %v4096_v57 = vmul.f32 0.007874016, %v501_v22  ;;  %v569_v22 = vand.u32 2147483648, %v4081_v48 }
 0x18c   : > { %v537_v58 = vmul.f32 %v3165_v52, %v520_v10 }
 0x18d   : > { %3174 = vrsqrt.f32 %v4094_v56  ;;  %vm573_vm11 = vcmp.eq.f32.partialorder %v4094_v56, inf  ;;  %vm575_vm12 = vcmp.eq.f32.partialorder %v4094_v56, 0.0  ;;  %vm580_vm13 = vcmp.eq.f32.partialorder %v4096_v57, inf }
 0x18e   : > { %v539_v63 = vsel %vm538_vm1, %v520_v10, %v537_v58  ;;  %3176 = vrsqrt.f32 %v4096_v57  ;;  %v503_v2 = vpop.xlane.xlu1 %502  ;;  %v505_v3 = vpop.xlane.xlu0 %504  ;;  %v562_v10 = vand.u32 2147483648, %v4079_v45  ;;  %vm582_vm14 = vcmp.eq.f32.partialorder %v4096_v57, 0.0 }
 0x18f   : > { %v3167_v29 = vpop.eup %3166  ;;  %v542_v6 = vsel %vm540_vm2, %v541_v24, %v539_v63  ;;  %v4101_v9 = vmul.f32 0.007874016, %v503_v2  ;;  %v4103_v30 = vmul.f32 0.007874016, %v505_v3 }
 0x190   : > { %v3169_v37 = vpop.eup %3168  ;;  %v648_v39 = vadd.f32 1e-06, %v542_v6  ;;  %v544_v42 = vmul.f32 %v3167_v29, %v521_v35 }
 0x191   : > { %v551_v16 = vmul.f32 %v3169_v37, %v522_v40  ;;  %3178 = vrsqrt.f32 %v4101_v9  ;;  %v576_v37 = vand.u32 2147483648, %v4094_v56  ;;  %vm587_vm15 = vcmp.eq.f32.partialorder %v4101_v9, inf }
 0x192   : > { %3180 = vrcp.f32 %v648_v39  ;;  %v546_v50 = vsel %vm545_vm3, %v521_v35, %v544_v42  ;;  %v507_v52 = vpop.xlane.xlu1 %506  ;;  %v509_v39 = vpop.xlane.xlu0 %508  ;;  %vm589_vm0 = vcmp.eq.f32.partialorder %v4101_v9, 0.0  ;;  %vm594_vm1 = vcmp.eq.f32.partialorder %v4103_v30, inf }
 0x193   : > { %v3171_v58 = vpop.eup %3170  ;;  %v549_v24 = vsel %vm547_vm4, %v548_v60, %v546_v50  ;;  %v553_v63 = vsel %vm552_vm5, %v522_v40, %v551_v16  ;;  %3182 = vrsqrt.f32 %v4103_v30  ;;  %v4122_v35 = vmul.f32 0.007874016, %v507_v52 }
 0x194   : > { %v3173_v2 = vpop.eup %3172  ;;  %v649_v3 = vadd.f32 1e-06, %v549_v24  ;;  %v556_v29 = vsel %vm554_vm6, %v555_v0, %v553_v63  ;;  %v558_v6 = vmul.f32 %v3171_v58, %v4079_v45  ;;  %v583_v40 = vand.u32 2147483648, %v4096_v57 }
 0x195   : > { %v650_v42 = vadd.f32 1e-06, %v556_v29  ;;  %v565_v44 = vmul.f32 %v3173_v2, %v4081_v48  ;;  %v4134_v52 = vmul.f32 0.007874016, %v509_v39  ;;  %vm596_vm2 = vcmp.eq.f32.partialorder %v4103_v30, 0.0 }
 0x196   : > { %3184 = vrcp.f32 %v649_v3  ;;  %v560_v60 = vsel %vm559_vm7, %v4079_v45, %v558_v6  ;;  %v511_v3 = vpop.xlane.xlu1 %510  ;;  %vm601_vm3 = vcmp.eq.f32.partialorder %v4122_v35, inf  ;;  %vm603_vm4 = vcmp.eq.f32.partialorder %v4122_v35, 0.0 }
 0x197   : > { %v3175_v0 = vpop.eup %3174  ;;  %3186 = vrcp.f32 %v650_v42  ;;  %v563_v16 = vsel %vm561_vm8, %v562_v10, %v560_v60  ;;  %v567_v50 = vsel %vm566_vm9, %v4081_v48, %v565_v44  ;;  %v590_v48 = vand.u32 2147483648, %v4101_v9 }
 0x198   : > { %v3177_v58 = vpop.eup %3176  ;;  %v651_v24 = vadd.f32 1e-06, %v563_v16  ;;  %v570_v63 = vsel %vm568_vm10, %v569_v22, %v567_v50  ;;  %v572_v2 = vmul.f32 %v3175_v0, %v4094_v56  ;;  %3188 = vrsqrt.f32 %v4122_v35  ;;  %v513_v16 = vpop.xlane.xlu0 %512 }
 0x199   : > { %v652_v29 = vadd.f32 1e-06, %v570_v63  ;;  %v579_v45 = vmul.f32 %v3177_v58, %v4096_v57  ;;  %v597_v58 = vand.u32 2147483648, %v4103_v30  ;;  %vm608_vm5 = vcmp.eq.f32.partialorder %v4134_v52, inf }
 0x19a   : > { %3190 = vrcp.f32 %v651_v24  ;;  %v574_v44 = vsel %vm573_vm11, %v4094_v56, %v572_v2  ;;  %v4160_v24 = vmul.f32 0.007874016, %v511_v3  ;;  %vm610_vm6 = vcmp.eq.f32.partialorder %v4134_v52, 0.0 }
 0x19b   : > { %v3179_v10 = vpop.eup %3178  ;;  %3192 = vrcp.f32 %v652_v29  ;;  %v577_v22 = vsel %vm575_vm12, %v576_v37, %v574_v44  ;;  %v581_v6 = vsel %vm580_vm13, %v4096_v57, %v579_v45 }
 0x19c   : > { %v3181_v39 = vpop.eup %3180  ;;  %v653_v42 = vadd.f32 1e-06, %v577_v22  ;;  %v584_v60 = vsel %vm582_vm14, %v583_v40, %v581_v6  ;;  %v586_v0 = vmul.f32 %v3179_v10, %v4101_v9  ;;  %3194 = vrsqrt.f32 %v4134_v52  ;;  %v515_v40 = vpop.xlane.xlu1 %514 }
 0x19d   : > { %v3183_v50 = vpop.eup %3182  ;;  %v680_v56 = vmul.f32 %v3181_v39, %v4001_v46  ;;  %v654_v37 = vadd.f32 1e-06, %v584_v60  ;;  %v4170_v46 = vmul.f32 0.007874016, %v513_v16  ;;  %v4181_v6 = vmul.f32 0.007874016, %v515_v40 }
 0x19e   : > { %3196 = vrcp.f32 %v653_v42  ;;  %v588_v63 = vsel %vm587_vm15, %v4101_v9, %v586_v0  ;;  %v593_v57 = vmul.f32 %v3183_v50, %v4103_v30  ;;  %vm615_vm7 = vcmp.eq.f32.partialorder %v4160_v24, inf }
 0x19f   : > { %3198 = vrcp.f32 %v654_v37  ;;  %v591_v2 = vsel %vm589_vm0, %v590_v48, %v588_v63  ;;  %v700_v29 = vmul.f32 %v4086_v49, %v680_v56  ;;  %v604_v48 = vand.u32 2147483648, %v4122_v35 }
 0x1a0   : > { %v3185_v3 = vpop.eup %3184  ;;  %v655_v45 = vadd.f32 1e-06, %v591_v2  ;;  %v595_v44 = vsel %vm594_vm1, %v4103_v30, %v593_v57  ;;  %3200 = vrsqrt.f32 %v4160_v24  ;;  %v517_v57 = vpop.xlane.xlu0 %516  ;;  %vm617_vm8 = vcmp.eq.f32.partialorder %v4160_v24, 0.0 }
 0x1a1   : > { %v3187_v10 = vpop.eup %3186  ;;  %v681_v22 = vmul.f32 %v3185_v3, %v4007_v53  ;;  %v598_v9 = vsel %vm596_vm2, %v597_v58, %v595_v44  ;;  %v4190_v30 = vadd.f32 %v4092_v55, %v700_v29  ;;  %vm622_vm9 = vcmp.eq.f32.partialorder %v4170_v46, inf }
 0x1a2   : > { %v3189_v39 = vpop.eup %3188  ;;  %v682_v42 = vmul.f32 %v3187_v10, %v4003_v47  ;;  %3202 = vrcp.f32 %v655_v45  ;;  %v656_v60 = vadd.f32 1e-06, %v598_v9  ;;  %v611_v47 = vand.u32 2147483648, %v4134_v52  ;;  %v519_v10 = vpop.xlane.xlu1 %518 }
 0x1a3   : > { %v701_v0 = vmul.f32 %v4086_v49, %v681_v22  ;;  %v600_v16 = vmul.f32 %v3189_v39, %v4122_v35  ;;  %3204 = vrsqrt.f32 %v4170_v46  ;;  %5282 = vst [vmem:[#allocation13_spill] sm:$0xff] %v4190_v30  ;;  %vm624_vm10 = vcmp.eq.f32.partialorder %v4170_v46, 0.0 }
 0x1a4   : > { %v3191_v53 = vpop.eup %3190  ;;  %v702_v50 = vmul.f32 %v4086_v49, %v682_v42  ;;  %3206 = vrcp.f32 %v656_v60  ;;  %vm629_vm11 = vcmp.eq.f32.partialorder %v4181_v6, inf  ;;  %vm631_vm12 = vcmp.eq.f32.partialorder %v4181_v6, 0.0 }
 0x1a5   : > { %v3193_v56 = vpop.eup %3192  ;;  %v4195_v37 = vadd.f32 %v4092_v55, %v701_v0  ;;  %v683_v58 = vmul.f32 %v3191_v53, %v4009_v54  ;;  %v602_v63 = vsel %vm601_vm3, %v4122_v35, %v600_v16  ;;  %3208 = vrsqrt.f32 %v4181_v6 }
 0x1a6   : > { %v3195_v40 = vpop.eup %3194  ;;  %v684_v2 = vmul.f32 %v3193_v56, %v4016_v61  ;;  %v605_v3 = vsel %vm603_vm4, %v604_v48, %v602_v63  ;;  %v4212_v9 = vadd.f32 %v4092_v55, %v702_v50  ;;  %v618_v35 = vand.u32 2147483648, %v4160_v24 }
 0x1a7   : > { %5283 = vst [vmem:[#allocation14_spill] sm:$0xff] %v4195_v37  ;;  %v703_v29 = vmul.f32 %v4086_v49, %v683_v58  ;;  %v657_v45 = vadd.f32 1e-06, %v605_v3  ;;  %v607_v44 = vmul.f32 %v3195_v40, %v4134_v52  ;;  %v4216_v48 = vmul.f32 0.007874016, %v517_v57 }
 0x1a8   : > { %v3197_v22 = vpop.eup %3196  ;;  %5284 = vst [vmem:[#allocation15_spill] sm:$0xff] %v4212_v9  ;;  %v704_v61 = vmul.f32 %v4086_v49, %v684_v2  ;;  %v4229_v56 = vmul.f32 0.007874016, %v519_v10 }
 0x1a9   : > { %v3199_v39 = vpop.eup %3198  ;;  %v4219_v42 = vadd.f32 %v4092_v55, %v703_v29  ;;  %v685_v60 = vmul.f32 %v3197_v22, %v4019_v62  ;;  %3210 = vrcp.f32 %v657_v45  ;;  %v609_v0 = vsel %vm608_vm5, %v4134_v52, %v607_v44 }
 0x1aa   : > { %v3201_v16 = vpop.eup %3200  ;;  %v686_v53 = vmul.f32 %v3199_v39, %v4026_v7  ;;  %v612_v50 = vsel %vm610_vm6, %v611_v47, %v609_v0  ;;  %3212 = vrsqrt.f32 %v4216_v48  ;;  %v4236_v2 = vadd.f32 %v4092_v55, %v704_v61 }
 0x1ab   : > { %v705_v62 = vmul.f32 %v4086_v49, %v685_v60  ;;  %v658_v63 = vadd.f32 1e-06, %v612_v50  ;;  %v614_v57 = vmul.f32 %v3201_v16, %v4160_v24  ;;  %v625_v22 = vand.u32 2147483648, %v4170_v46 }
 0x1ac   : > { %v3203_v40 = vpop.eup %3202  ;;  %5285 = vst [vmem:[#allocation16_spill] sm:$0xff] %v4236_v2  ;;  %v706_v7 = vmul.f32 %v4086_v49, %v686_v53  ;;  %v632_v16 = vand.u32 2147483648, %v4181_v6  ;;  %vm636_vm13 = vcmp.eq.f32.partialorder %v4216_v48, inf  ;;  %vm638_vm14 = vcmp.eq.f32.partialorder %v4216_v48, 0.0 }
 0x1ad   : > { %v3205_v52 = vpop.eup %3204  ;;  %v4242_v47 = vadd.f32 %v4092_v55, %v705_v62  ;;  %v687_v3 = vmul.f32 %v3203_v40, %v4029_v8  ;;  %3214 = vrcp.f32 %v658_v63  ;;  %v616_v29 = vsel %vm615_vm7, %v4160_v24, %v614_v57 }
 0x1ae   : > { %v3207_v45 = vpop.eup %3206  ;;  %v619_v44 = vsel %vm617_vm8, %v618_v35, %v616_v29  ;;  %v621_v10 = vmul.f32 %v3205_v52, %v4170_v46  ;;  %3216 = vrsqrt.f32 %v4229_v56  ;;  %v4264_v53 = vadd.f32 %v4092_v55, %v706_v7 }
 0x1af   : > { %v3209_v61 = vpop.eup %3208  ;;  %v707_v8 = vmul.f32 %v4086_v49, %v687_v3  ;;  %v659_v60 = vadd.f32 1e-06, %v619_v44  ;;  %v688_v0 = vmul.f32 %v3207_v45, %v4036_v43  ;;  %vm643_vm15 = vcmp.eq.f32.partialorder %v4229_v56, inf }
 0x1b0   : > { %v623_v24 = vsel %vm622_vm9, %v4170_v46, %v621_v10  ;;  %v628_v35 = vmul.f32 %v3209_v61, %v4181_v6  ;;  %vm645_vm0 = vcmp.eq.f32.partialorder %v4229_v56, 0.0 }
 0x1b1   : > { %v4267_v50 = vadd.f32 %v4092_v55, %v707_v8  ;;  %3218 = vrcp.f32 %v659_v60  ;;  %v626_v62 = vsel %vm624_vm10, %v625_v22, %v623_v24  ;;  %v708_v7 = vmul.f32 %v4086_v49, %v688_v0 }
 0x1b2   : > { %v660_v63 = vadd.f32 1e-06, %v626_v62  ;;  %v630_v43 = vsel %vm629_vm11, %v4181_v6, %v628_v35  ;;  %v639_v6 = vand.u32 2147483648, %v4216_v48 }
 0x1b3   : > { %v3211_v57 = vpop.eup %3210  ;;  %v633_v52 = vsel %vm631_vm12, %v632_v16, %v630_v43  ;;  %v4284_v8 = vadd.f32 %v4092_v55, %v708_v7 }
 0x1b4   : > { %v3213_v3 = vpop.eup %3212  ;;  %v689_v29 = vmul.f32 %v3211_v57, %v4039_v15  ;;  %3220 = vrcp.f32 %v660_v63  ;;  %v661_v45 = vadd.f32 1e-06, %v633_v52 }
 0x1b5   : > { %v635_v46 = vmul.f32 %v3213_v3, %v4216_v48  ;;  %5286 = vst [vmem:[#allocation17_spill] sm:$0xff] %v4284_v8 }
 0x1b6   : > { %v709_v44 = vmul.f32 %v4086_v49, %v689_v29  ;;  %3222 = vrcp.f32 %v661_v45 }
 0x1b7   : > { %v3215_v10 = vpop.eup %3214  ;;  %v637_v22 = vsel %vm636_vm13, %v4216_v48, %v635_v46  ;;  %v646_v48 = vand.u32 2147483648, %v4229_v56 }
 0x1b8   : > { %v3217_v61 = vpop.eup %3216  ;;  %v4287_v15 = vadd.f32 %v4092_v55, %v709_v44  ;;  %v690_v60 = vmul.f32 %v3215_v10, %v4046_v51  ;;  %v640_v0 = vsel %vm638_vm14, %v639_v6, %v637_v22 }
 0x1b9   : > { %v662_v24 = vadd.f32 1e-06, %v640_v0  ;;  %v642_v35 = vmul.f32 %v3217_v61, %v4229_v56 }
 0x1ba   : > { %5287 = vst [vmem:[#allocation18_spill] sm:$0xff] %v4287_v15  ;;  %v710_v43 = vmul.f32 %v4086_v49, %v690_v60 }
 0x1bb   : > { %v3219_v62 = vpop.eup %3218  ;;  %3224 = vrcp.f32 %v662_v24  ;;  %v644_v63 = vsel %vm643_vm15, %v4229_v56, %v642_v35 }
 0x1bc   : > { %v691_v51 = vmul.f32 %v3219_v62, %v4049_v17  ;;  %v647_v57 = vsel %vm645_vm0, %v646_v48, %v644_v63  ;;  %v4302_v46 = vadd.f32 %v4092_v55, %v710_v43 }
 0x1bd   : > { %v663_v52 = vadd.f32 1e-06, %v647_v57 }
 0x1be   : > { %v3221_v3 = vpop.eup %3220  ;;  %v711_v7 = vmul.f32 %v4086_v49, %v691_v51 }
 0x1bf   : > { %v692_v29 = vmul.f32 %v3221_v3, %v4056_v59  ;;  %3226 = vrcp.f32 %v663_v52 }
 0x1c0   : > { %v3223_v45 = vpop.eup %3222  ;;  %v4305_v44 = vadd.f32 %v4092_v55, %v711_v7 }
 0x1c1   : > { %v712_v56 = vmul.f32 %v4086_v49, %v692_v29  ;;  %v693_v17 = vmul.f32 %v3223_v45, %v4059_v23 }
 0x1c3   : > { %v713_v10 = vmul.f32 %v4086_v49, %v693_v17  ;;  %v4313_v59 = vadd.f32 %v4092_v55, %v712_v56 }
 0x1c5   : > { %v3225_v22 = vpop.eup %3224  ;;  %v4316_v61 = vadd.f32 %v4092_v55, %v713_v10 }
 0x1c6   : > { %v694_v60 = vmul.f32 %v3225_v22, %v4066_v5 }
 0x1c8   : > { %v714_v23 = vmul.f32 %v4086_v49, %v694_v60 }
 0x1c9   : > { %v3227_v24 = vpop.eup %3226 }
 0x1ca   : > { %v695_v35 = vmul.f32 %v3227_v24, %v4069_v28  ;;  %v4325_v62 = vadd.f32 %v4092_v55, %v714_v23 }
 0x1cc   : > { %v715_v48 = vmul.f32 %v4086_v49, %v695_v35 }
 0x1ce   : > { %v4328_v63 = vadd.f32 %v4092_v55, %v715_v48 }
 0x1cf LB: >> { %v5288_v37 = vld [vmem:[#allocation14_spill] sm:$0xff]  ;;  %v5289_v30 = vld [vmem:[#allocation13_spill] sm:$0xff]  ;;  %s2698_s26 = sshll.u32 %s3670_s21, 6  ;;  %v5291_v9 = vld [vmem:[#allocation15_spill] sm:$0xff]  ;;  %v5295_v40 = vpack.c.bf16 %v4267_v50, %v4264_v53  ;;  %v5299_v6 = vpack.c.bf16 %v4305_v44, %v4302_v46  ;;  %v5300_v0 = vpack.c.bf16 %v4316_v61, %v4313_v59  ;;  %s805_s23 = scalar_lea.vmem %s5249_s3, %s3670_s21  ;;  %vm990_vm1 = vcmask 261120   ;;  %s3670_s21 = sphi %s4384_s21, %s769_s21   ;;  %v3666_v11 = vphi %v3907_v11, %v5334_v11   ;;  %v3662_v13 = vphi %v3911_v13, %v5333_v13   ;;  %v3658_v12 = vphi %v3909_v12, %v5332_v12   ;;  %v3654_v14 = vphi %v3913_v14, %v5331_v14   ;;  %v3650_v18 = vphi %v3925_v18, %v5330_v18   ;;  %v3646_v19 = vphi %v3928_v19, %v5329_v19   ;;  %v3642_v20 = vphi %v3931_v20, %v5328_v20   ;;  %v3638_v21 = vphi %v3934_v21, %v5327_v21   ;;  %v3634_v25 = vphi %v3946_v25, %v5326_v25   ;;  %v3630_v26 = vphi %v3949_v26, %v5325_v26   ;;  %v3626_v27 = vphi %v3952_v27, %v5324_v27   ;;  %v3622_v31 = vphi %v3964_v31, %v5323_v31   ;;  %v3618_v32 = vphi %v3967_v32, %v5322_v32   ;;  %v3614_v33 = vphi %v3970_v33, %v5321_v33   ;;  %v3610_v34 = vphi %v3973_v34, %v5320_v34   ;;  %v3606_v36 = vphi %v3979_v36, %v5319_v36  }
 0x1d0   : >> { %v5290_v54 = vpack.c.bf16 %v5288_v37, %v5289_v30  ;;  %s788_s16 = scalar_lea.vmem %s5248_s2, %s2698_s26  ;;  %v5292_v58 = vpack.c.bf16 %v4219_v42, %v5291_v9  ;;  %v5293_v2 = vld [vmem:[#allocation16_spill] sm:$0xff]  ;;  %v5296_v15 = vld [vmem:[#allocation18_spill] sm:$0xff]  ;;  %v5297_v8 = vld [vmem:[#allocation17_spill] sm:$0xff]  ;;  %v5301_v43 = vpack.c.bf16 %v4328_v63, %v4325_v62  ;;  %s3677_s15 = smov 96  }
 0x1d1   : >> { %v3228_v5 = vld [vmem:[%s788_s16] sm:$0xff]   ;;  %v3229_v28 = vld [vmem:[%s788_s16 + $0x8] sm:$0xff]   ;;  %v3230_v49 = vld [vmem:[%s788_s16 + $0x10] sm:$0xff]   ;;  %v5294_v39 = vpack.c.bf16 %v4242_v47, %v5293_v2  ;;  %v5298_v16 = vpack.c.bf16 %v5296_v15, %v5297_v8  ;;  %s3678_s24 = smov 64   ;;  %s2699_s20 = sshll.u32 %s3670_s21, 4 }
 0x1d2   : >> { %2839 = vmatprep.mubr.bf16.mxu0 %v5290_v54  ;;  %2823 = vmatprep.subr.bf16.mxu0 %v3228_v5  ;;  %v3231_v55 = vld [vmem:[%s788_s16 + $0x18] sm:$0xff]   ;;  %v3232_v51 = vld [vmem:[%s788_s16 + $0x20] sm:$0xff]   ;;  %v3233_v57 = vld [vmem:[%s788_s16 + $0x28] sm:$0xff]   ;;  %s4656_s27 = scalar_lea.vmem %s5250_s4, %s2699_s20  ;;  %s769_s21 = sadd.s32 1, %s3670_s21  }
 0x1d3   : >> { %2824 = vmatpush3.bf16.msra.mxu0 %v3228_v5  ;;  %v3234_v52 = vld [vmem:[%s788_s16 + $0x30] sm:$0xff]   ;;  %v3235_v3 = vld [vmem:[%s788_s16 + $0x38] sm:$0xff]   ;;  %v2631_v29 = vld [vmem:[%s805_s23] ss:$0 sm:$0xff]  ;;  %p4733_p6 = scmp.ge.s32.totalorder %s769_s21, 4  }
 0x1d4   : >> { %2825 = vmatprep.subr.bf16.mxu0 %v3229_v28  ;;  %s2469_s18 = sshll.u32 (%p4733_p6), %s4334_s19, 4  ;;  %s3680_s23 = smov (%p4733_p6), [#allocation7]   ;;  %s5199_s18 = int_to_ptr.vmem [resolvable:$true] %s2469_s18 }
 0x1d5   : > { %s3464_s22 = scalar_lea.vmem (%p4733_p6), %s5199_s18, 2048 }
 0x1d6   : > { %p3465_p8 = scmp.ne.s32.totalorder (%p4733_p6), %s5199_s18, %s3464_s22 }
 0x1d7   : >> { %2826 = vmatpush3.bf16.msra.mxu0 %v3229_v28 }
 0x1d8   : >> { %2827 = vmatprep.subr.bf16.mxu0 %v3230_v49  ;;  %p3466_p10 = pnand (%p4733_p6), %p3465_p8, %p3824_p12 }
 0x1da   : > { %p3467_p13 = pneg (%p4733_p6), %p3466_p10 }
 0x1db   : >> { %2828 = vmatpush3.bf16.msra.mxu0 %v3230_v49 }
 0x1dc   : >> { %2829 = vmatprep.subr.bf16.mxu0 %v3231_v55 }
 0x1df   : >> { %2830 = vmatpush3.bf16.msra.mxu0 %v3231_v55 }
 0x1e0   : >> { %2831 = vmatprep.subr.bf16.mxu0 %v3232_v51 }
 0x1e3   : >> { %2832 = vmatpush3.bf16.msra.mxu0 %v3232_v51 }
 0x1e4   : >> { %2833 = vmatprep.subr.bf16.mxu0 %v3233_v57 }
 0x1e7   : >> { %2834 = vmatpush3.bf16.msra.mxu0 %v3233_v57 }
 0x1e8   : >> { %2835 = vmatprep.subr.bf16.mxu0 %v3234_v52 }
 0x1eb   : >> { %2836 = vmatpush3.bf16.msra.mxu0 %v3234_v52 }
 0x1ec   : >> { %2837 = vmatprep.subr.bf16.mxu0 %v3235_v3 }
 0x1ef   : >> { %2838 = vmatpush3.bf16.msra.mxu0 %v3235_v3 }
 0x1f2   : >> { %2840 = vmatmul.mubr.bf16.vlgmr.msra.gmra.mrb[0].mxu0 %v5292_v58 }
 0x1f3   : >> { %2843 = vmatprep.mubr.bf16.mxu0 %v5294_v39 }
 0x1fa   : >> { %2844 = vmatmul.mubr.bf16.gmra.mrb[4].mxu0 %v5295_v40 }
 0x1fb   : >> { %2847 = vmatprep.mubr.bf16.mxu0 %v5298_v16 }
 0x202   : >> { %2848 = vmatmul.mubr.bf16.gmra.mrb[8].mxu0 %v5299_v6 }
 0x203   : >> { %2851 = vmatprep.mubr.bf16.mxu0 %v5300_v0 }
 0x20a   : >> { %2852 = vmatmul.mubr.bf16.gmra.mrb[12].mxu0 %v5301_v43 }
 0x2c5   : >> { %v2841_v7 = vpop.f32.mrb[0].mxu0 }
 0x2c6   : >> { %v895_v45 = vpop.f32.mrb[1].mxu0  ;;  %v904_v17 = vadd.f32 %v2841_v7, %v2631_v29 }
 0x2c7   : >> { %v2842_v56 = vpop.f32.mrb[2].mxu0  ;;  %v896_v60 = vadd.f32 %v2631_v29, %v895_v45 }
 0x2c8   : >> { %v907_v10 = vadd.f32 %v2842_v56, %v2631_v29  ;;  %v898_v22 = vpop.f32.mrb[3].mxu0 }
 0x2c9   : >> { %v899_v24 = vadd.f32 %v2631_v29, %v898_v22 }
 0x2ca   : >> { %v4469_v23 = vpack.c.bf16 %v907_v10, %v904_v17 }
 0x2cb   : >> { %v958_v35 = vpack.c.bf16 %v899_v24, %v896_v60 }
 0x2cd   : >> { %974 = vrot.lane.b32.xlu0 %v958_v35, %s3677_s15  ;;  %2871 = vmatprep.mubr.msk.bf16.mxu1 %vm990_vm1, %v958_v35  ;;  %v2845_v48 = vpop.f32.mrb[4].mxu0 }
 0x2ce   : >> { %v920_v5 = vadd.f32 %v2845_v48, %v2631_v29  ;;  %v911_v28 = vpop.f32.mrb[5].mxu0 }
 0x2cf   : >> { %v912_v49 = vadd.f32 %v2631_v29, %v911_v28  ;;  %v2846_v55 = vpop.f32.mrb[6].mxu0 }
 0x2d0   : >> { %v923_v51 = vadd.f32 %v2846_v55, %v2631_v29  ;;  %v914_v57 = vpop.f32.mrb[7].mxu0 }
 0x2d1   : >> { %v915_v52 = vadd.f32 %v2631_v29, %v914_v57  ;;  %976 = vrot.lane.b32.xlu0 %v4469_v23, %s3677_s15 }
 0x2d2   : >> { %v4475_v3 = vpack.c.bf16 %v923_v51, %v920_v5 }
 0x2d3   : >> { %v4477_v7 = vpack.c.bf16 %v915_v52, %v912_v49 }
 0x2d5   : >> { %978 = vrot.lane.b32.xlu1 %v4477_v7, %s3677_s15  ;;  %v2849_v45 = vpop.f32.mrb[8].mxu0 }
 0x2d6   : >> { %v936_v56 = vadd.f32 %v2849_v45, %v2631_v29  ;;  %v927_v17 = vpop.f32.mrb[9].mxu0 }
 0x2d7   : >> { %v928_v10 = vadd.f32 %v2631_v29, %v927_v17  ;;  %v2850_v22 = vpop.f32.mrb[10].mxu0 }
 0x2d8   : >> { %v939_v60 = vadd.f32 %v2850_v22, %v2631_v29  ;;  %v930_v24 = vpop.f32.mrb[11].mxu0 }
 0x2d9   : >> { %980 = vrot.lane.b32.xlu1 %v4475_v3, %s3677_s15  ;;  %v931_v48 = vadd.f32 %v2631_v29, %v930_v24 }
 0x2da   : >> { %v4483_v28 = vpack.c.bf16 %v939_v60, %v936_v56 }
 0x2db   : >> { %v4485_v5 = vpack.c.bf16 %v931_v48, %v928_v10 }
 0x2dd   : >> { %v2853_v49 = vpop.f32.mrb[12].mxu0  ;;  %984 = vrot.lane.b32.xlu1 %v4483_v28, %s3677_s15  ;;  %982 = vrot.lane.b32.xlu0 %v4485_v5, %s3677_s15 }
 0x2de   : >> { %v952_v55 = vadd.f32 %v2853_v49, %v2631_v29  ;;  %v943_v51 = vpop.f32.mrb[13].mxu0 }
 0x2df   : >> { %v944_v57 = vadd.f32 %v2631_v29, %v943_v51  ;;  %v2854_v52 = vpop.f32.mrb[14].mxu0 }
 0x2e0   : >> { %v955_v45 = vadd.f32 %v2854_v52, %v2631_v29  ;;  %v946_v17 = vpop.f32.mrb[15].mxu0 }
 0x2e1   : >> { %v947_v22 = vadd.f32 %v2631_v29, %v946_v17 }
 0x2e2   : >> { %v4491_v0 = vpack.c.bf16 %v955_v45, %v952_v55 }
 0x2e3   : >> { %v4493_v56 = vpack.c.bf16 %v947_v22, %v944_v57 }
 0x2e4   : >> { %988 = vrot.lane.b32.xlu1 %v4491_v0, %s3677_s15 }
 0x2e5   : >> { %986 = vrot.lane.b32.xlu0 %v4493_v56, %s3677_s15  ;;  %s3468_s15 = sshll.u32 (%p4733_p6), %s3680_s23, 4  ;;  %s3469_s15 = int_to_ptr.vmem [resolvable:$false] %s3468_s15 }
 0x2e6   : > { %p3471_p3 = scmp.lt.s32.totalorder (%p4733_p6), %s5199_s18, %s3469_s15 }
 0x2e8   : >> { %1288 = vrot.lane.b32.xlu1 %v958_v35, %s3678_s24 }
 0x33f   : >> { %v975_v10 = vpop.permute.xlu0 %974 }
 0x340   : >> { %2955 = vmatprep.subr.msk.bf16.mxu1 %vm990_vm1, %v975_v10  ;;  %v1016_v60 = vsel %vm990_vm1, %v975_v10, 0 }
 0x341   : >> { %2856 = vmatpush3.bf16.xpose.msra.mxu1 %v1016_v60 }
 0x343   : >> { %v977_v29 = vpop.permute.xlu0 %976 }
 0x344   : >> { %2956 = vmatprep.subr.msk.bf16.mxu1 %vm990_vm1, %v977_v29  ;;  %v1019_v48 = vsel %vm990_vm1, %v977_v29, 0 }
 0x347   : >> { %v979_v24 = vpop.permute.xlu1 %978 }
 0x348   : >> { %v1022_v55 = vsel %vm990_vm1, %v979_v24, 0 }
 0x349   : >> { %2858 = vmatpush3.bf16.xpose.msra.mxu1 %v1019_v48 }
 0x34a   : >> { %2957 = vmatprep.subr.msk.bf16.mxu1 %vm990_vm1, %v979_v24 }
 0x34b   : >> { %v981_v49 = vpop.permute.xlu1 %980 }
 0x34c   : >> { %v1025_v52 = vsel %vm990_vm1, %v981_v49, 0 }
 0x34f   : >> { %v985_v51 = vpop.permute.xlu1 %984  ;;  %v983_v57 = vpop.permute.xlu0 %982 }
 0x350   : >> { %v1028_v17 = vsel %vm990_vm1, %v983_v57, 0  ;;  %v1031_v10 = vsel %vm990_vm1, %v985_v51, 0 }
 0x351   : >> { %2860 = vmatpush3.bf16.xpose.msra.mxu1 %v1022_v55 }
 0x352   : >> { %2958 = vmatprep.subr.msk.bf16.mxu1 %vm990_vm1, %v981_v49 }
 0x356   : >> { %v989_v35 = vpop.permute.xlu1 %988 }
 0x357   : >> { %v987_v22 = vpop.permute.xlu0 %986  ;;  %v1037_v29 = vsel %vm990_vm1, %v989_v35, 0 }
 0x358   : >> { %v1034_v60 = vsel %vm990_vm1, %v987_v22, 0 }
 0x359   : >> { %2862 = vmatpush3.bf16.xpose.msra.mxu1 %v1025_v52 }
 0x35a   : >> { %v1289_v45 = vpop.permute.xlu1 %1288  ;;  %2959 = vmatprep.subr.msk.bf16.mxu1 %vm990_vm1, %v983_v57 }
 0x35b   : >> { %2887 = vmatprep.subr.bf16.mxu0 %v1289_v45 }
 0x35c   : >> { %2888 = vmatpush3.bf16.msra.mxu0 %v1289_v45 }
 0x361   : >> { %2864 = vmatpush3.bf16.xpose.msra.mxu1 %v1028_v17 }
 0x362   : >> { %2960 = vmatprep.subr.msk.bf16.mxu1 %vm990_vm1, %v985_v51 }
 0x369   : >> { %2866 = vmatpush3.bf16.xpose.msra.mxu1 %v1031_v10 }
 0x36a   : >> { %2961 = vmatprep.subr.msk.bf16.mxu1 %vm990_vm1, %v987_v22 }
 0x371   : >> { %2868 = vmatpush3.bf16.xpose.msra.mxu1 %v1034_v60 }
 0x372   : >> { %2962 = vmatprep.subr.msk.bf16.mxu1 %vm990_vm1, %v989_v35 }
 0x379   : >> { %2870 = vmatpush3.bf16.xpose.msra.mxu1 %v1037_v29 }
 0x37a   : >> { %2939 = vmatprep.subr.bf16.mxu1 %v1289_v45 }
 0x380   : >> { %2872 = vmatmul.mubr.msk.bf16.vlgmr.msra.gmra.mrb[0].mxu1 %vm990_vm1, %v4469_v23 }
 0x381   : >> { %2875 = vmatprep.mubr.msk.bf16.mxu1 %vm990_vm1, %v4477_v7  ;;  %2947 = vmatpush3.bf16.msra.mxu1 %v1289_v45 }
 0x388   : >> { %2876 = vmatmul.mubr.msk.bf16.gmra.mrb[4].mxu1 %vm990_vm1, %v4475_v3 }
 0x389   : >> { %2879 = vmatprep.mubr.msk.bf16.mxu1 %vm990_vm1, %v4485_v5 }
 0x390   : >> { %2880 = vmatmul.mubr.msk.bf16.gmra.mrb[8].mxu1 %vm990_vm1, %v4483_v28 }
 0x391   : >> { %2883 = vmatprep.mubr.msk.bf16.mxu1 %vm990_vm1, %v4493_v56 }
 0x398   : >> { %2884 = vmatmul.mubr.msk.bf16.gmra.mrb[12].mxu1 %vm990_vm1, %v4491_v0 }
 0x453   : >> { %v2873_v24 = vpop.f32.mrb[0].mxu1 }
 0x454   : >> { %v1082_v48 = vadd.f32 %v2873_v24, %v3999_v41  ;;  %v1073_v49 = vpop.f32.mrb[1].mxu1 }
 0x455   : >> { %v2874_v55 = vpop.f32.mrb[2].mxu1  ;;  %v1074_v57 = vadd.f32 %v1073_v49, %v3999_v41 }
 0x456   : >> { %1140 = vmax.xlane.f32.xlu0 %v1082_v48  ;;  %v1076_v51 = vpop.f32.mrb[3].mxu1  ;;  %v1085_v45 = vadd.f32 %v2874_v55, %v3999_v41 }
 0x457   : >> { %v4532_v35 = vadd.f32 %v1076_v51, %v3999_v41 }
 0x459   : >> { %1138 = vmax.xlane.f32.xlu1 %v4532_v35 }
 0x45a   : >> { %1136 = vmax.xlane.f32.xlu0 %v1074_v57 }
 0x45b   : >> { %v2877_v52 = vpop.f32.mrb[4].mxu1 }
 0x45c   : >> { %v1098_v17 = vadd.f32 %v2877_v52, %v3999_v41  ;;  %v1089_v22 = vpop.f32.mrb[5].mxu1 }
 0x45d   : >> { %v2878_v10 = vpop.f32.mrb[6].mxu1  ;;  %v1090_v29 = vadd.f32 %v1089_v22, %v3999_v41 }
 0x45e   : >> { %v1092_v60 = vpop.f32.mrb[7].mxu1  ;;  %1148 = vmax.xlane.f32.xlu1 %v1098_v17  ;;  %1142 = vmax.xlane.f32.xlu0 %v1085_v45  ;;  %v4540_v24 = vadd.f32 %v2878_v10, %v3999_v41 }
 0x45f   : >> { %v4544_v51 = vadd.f32 %v1092_v60, %v3999_v41 }
 0x462   : >> { %1144 = vmax.xlane.f32.xlu1 %v1090_v29  ;;  %1150 = vmax.xlane.f32.xlu0 %v4540_v24 }
 0x463   : >> { %v2881_v49 = vpop.f32.mrb[8].mxu1 }
 0x464   : >> { %v4547_v55 = vadd.f32 %v2881_v49, %v3999_v41  ;;  %v1105_v52 = vpop.f32.mrb[9].mxu1 }
 0x465   : >> { %v2882_v6 = vpop.f32.mrb[10].mxu1  ;;  %v4552_v22 = vadd.f32 %v1105_v52, %v3999_v41 }
 0x466   : >> { %v1108_v16 = vpop.f32.mrb[11].mxu1  ;;  %1156 = vmax.xlane.f32.xlu1 %v4547_v55  ;;  %1146 = vmax.xlane.f32.xlu0 %v4544_v51  ;;  %v4555_v10 = vadd.f32 %v2882_v6, %v3999_v41 }
 0x467   : >> { %v4560_v49 = vadd.f32 %v1108_v16, %v3999_v41 }
 0x46a   : >> { %1152 = vmax.xlane.f32.xlu1 %v4552_v22  ;;  %1158 = vmax.xlane.f32.xlu0 %v4555_v10 }
 0x46b   : >> { %v2885_v60 = vpop.f32.mrb[12].mxu1 }
 0x46c   : >> { %v4563_v39 = vadd.f32 %v2885_v60, %v3999_v41  ;;  %v1121_v40 = vpop.f32.mrb[13].mxu1 }
 0x46d   : >> { %v2886_v43 = vpop.f32.mrb[14].mxu1  ;;  %v4568_v6 = vadd.f32 %v1121_v40, %v3999_v41 }
 0x46e   : >> { %v1124_v54 = vpop.f32.mrb[15].mxu1  ;;  %1164 = vmax.xlane.f32.xlu1 %v4563_v39  ;;  %1154 = vmax.xlane.f32.xlu0 %v4560_v49  ;;  %v4582_v40 = vadd.f32 %v2886_v43, %v3999_v41 }
 0x46f   : >> { %v4586_v16 = vadd.f32 %v1124_v54, %v3999_v41 }
 0x472   : >> { %1160 = vmax.xlane.f32.xlu1 %v4568_v6 }
 0x483   : >> { %1290 = vrot.lane.b32.xlu1 %v4469_v23, %s3678_s24 }
 0x484   : >> { %1292 = vrot.lane.b32.xlu0 %v4477_v7, %s3678_s24 }
 0x487   : >> { %1294 = vrot.lane.b32.xlu1 %v4475_v3, %s3678_s24 }
 0x488   : >> { %1296 = vrot.lane.b32.xlu0 %v4485_v5, %s3678_s24 }
 0x48b   : >> { %1300 = vrot.lane.b32.xlu1 %v4493_v56, %s3678_s24 }
 0x4a7   : >> { %1166 = vmax.xlane.f32.xlu0 %v4582_v40 }
 0x4ab   : >> { %1162 = vmax.xlane.f32.xlu0 %v4586_v16 }
 0x4c1   : >> { %1298 = vrot.lane.b32.xlu0 %v4483_v28, %s3678_s24 }
 0x4e3   : >> { %v1141_v23 = vpop.xlane.xlu0 %1140 }
 0x4e4   : >> { %v1170_v3 = vsub.f32 %v1082_v48, %v1141_v23 }
 0x4e6   : >> { %v1188_v7 = vmul.f32 1.442695, %v1170_v3  ;;  %v1139_v5 = vpop.xlane.xlu1 %1138 }
 0x4e7   : >> { %v1137_v52 = vpop.xlane.xlu0 %1136  ;;  %v1169_v54 = vsub.f32 %v4532_v35, %v1139_v5 }
 0x4e8   : >> { %3238 = vpow2.f32 %v1188_v7  ;;  %v1168_v56 = vsub.f32 %v1074_v57, %v1137_v52 }
 0x4e9   : >> { %v1186_v23 = vmul.f32 1.442695, %v1169_v54 }
 0x4ea   : >> { %v1184_v60 = vmul.f32 1.442695, %v1168_v56 }
 0x4eb   : >> { %v1149_v43 = vpop.xlane.xlu1 %1148  ;;  %v1143_v58 = vpop.xlane.xlu0 %1142 }
 0x4ec   : >> { %3240 = vpow2.f32 %v1184_v60  ;;  %v1174_v2 = vsub.f32 %v1098_v17, %v1149_v43  ;;  %v1171_v8 = vsub.f32 %v1085_v45, %v1143_v58 }
 0x4ee   : >> { %v1196_v9 = vmul.f32 1.442695, %v1174_v2  ;;  %v1190_v15 = vmul.f32 1.442695, %v1171_v8 }
 0x4ef   : >> { %v1145_v30 = vpop.xlane.xlu1 %1144  ;;  %v1151_v37 = vpop.xlane.xlu0 %1150 }
 0x4f0   : >> { %3242 = vpow2.f32 %v1196_v9  ;;  %v1172_v28 = vsub.f32 %v1090_v29, %v1145_v30  ;;  %v1175_v48 = vsub.f32 %v4540_v24, %v1151_v37 }
 0x4f1   : >> { %3244 = vpow2.f32 %v1190_v15 }
 0x4f2   : >> { %v4593_v3 = vpop.eup %3238  ;;  %v1192_v57 = vmul.f32 1.442695, %v1172_v28  ;;  %v1198_v58 = vmul.f32 1.442695, %v1175_v48 }
 0x4f3   : >> { %v1157_v7 = vpop.xlane.xlu1 %1156  ;;  %1220 = vadd.xlane.f32.xlu0 %v4593_v3  ;;  %v1147_v17 = vpop.xlane.xlu0 %1146 }
 0x4f4   : >> { %3246 = vpow2.f32 %v1192_v57  ;;  %v1178_v2 = vsub.f32 %v4547_v55, %v1157_v7  ;;  %v1173_v8 = vsub.f32 %v4544_v51, %v1147_v17 }
 0x4f5   : >> { %3248 = vpow2.f32 %v1186_v23 }
 0x4f6   : >> { %v4598_v9 = vpop.eup %3240  ;;  %v1194_v30 = vmul.f32 1.442695, %v1173_v8  ;;  %3250 = vpow2.f32 %v1198_v58  ;;  %v1204_v35 = vmul.f32 1.442695, %v1178_v2 }
 0x4f7   : >> { %v1153_v37 = vpop.xlane.xlu1 %1152  ;;  %1216 = vadd.xlane.f32.xlu0 %v4598_v9  ;;  %v1159_v15 = vpop.xlane.xlu0 %1158 }
 0x4f8   : >> { %v1176_v45 = vsub.f32 %v4552_v22, %v1153_v37  ;;  %3252 = vpow2.f32 %v1194_v30  ;;  %v1179_v52 = vsub.f32 %v4555_v10, %v1159_v15 }
 0x4f9   : >> { %3254 = vpow2.f32 %v1204_v35 }
 0x4fa   : >> { %v4602_v29 = vpop.eup %3242  ;;  %v1200_v5 = vmul.f32 1.442695, %v1176_v45  ;;  %v1206_v48 = vmul.f32 1.442695, %v1179_v52 }
 0x4fb   : >> { %v4604_v24 = vpop.eup %3244  ;;  %1228 = vadd.xlane.f32.xlu1 %v4602_v29  ;;  %v1165_v51 = vpop.xlane.xlu1 %1164 }
 0x4fc   : >> { %v1155_v55 = vpop.xlane.xlu0 %1154  ;;  %1222 = vadd.xlane.f32.xlu0 %v4604_v24  ;;  %v1182_v60 = vsub.f32 %v4563_v39, %v1165_v51  ;;  %3256 = vpow2.f32 %v1200_v5 }
 0x4fd   : >> { %v1177_v56 = vsub.f32 %v4560_v49, %v1155_v55 }
 0x4fe   : >> { %v4611_v22 = vpop.eup %3246  ;;  %v1212_v10 = vmul.f32 1.442695, %v1182_v60 }
 0x4ff   : >> { %v1202_v43 = vmul.f32 1.442695, %v1177_v56  ;;  %v4613_v54 = vpop.eup %3248  ;;  %1224 = vadd.xlane.f32.xlu1 %v4611_v22  ;;  %v1161_v28 = vpop.xlane.xlu1 %1160 }
 0x500   : >> { %v1180_v23 = vsub.f32 %v4568_v6, %v1161_v28  ;;  %1218 = vadd.xlane.f32.xlu0 %v4613_v54  ;;  %v4618_v57 = vpop.eup %3250  ;;  %v1293_v17 = vpop.permute.xlu0 %1292 }
 0x501   : >> { %3258 = vpow2.f32 %v1202_v43 }
 0x502   : >> { %v4620_v49 = vpop.eup %3252  ;;  %3260 = vpow2.f32 %v1206_v48  ;;  %v1208_v7 = vmul.f32 1.442695, %v1180_v23 }
 0x503   : >> { %v1291_v39 = vpop.permute.xlu1 %1290  ;;  %1230 = vadd.xlane.f32.xlu1 %v4618_v57  ;;  %3262 = vpow2.f32 %v1212_v10  ;;  %v4624_v6 = vpop.eup %3254 }
 0x504   : >> { %1226 = vadd.xlane.f32.xlu0 %v4620_v49  ;;  %2889 = vmatprep.subr.bf16.mxu0 %v1291_v39  ;;  %3264 = vpow2.f32 %v1208_v7  ;;  %v1297_v30 = vpop.permute.xlu0 %1296 }
 0x505   : >> { %2940 = vmatprep.subr.bf16.mxu1 %v1291_v39  ;;  %2890 = vmatpush3.bf16.msra.mxu0 %v1291_v39 }
 0x506   : >> { %2948 = vmatpush3.bf16.msra.mxu1 %v1291_v39  ;;  %2891 = vmatprep.subr.bf16.mxu0 %v1293_v17  ;;  %v4627_v2 = vpop.eup %3256 }
 0x507   : >> { %2941 = vmatprep.subr.bf16.mxu1 %v1293_v17  ;;  %1236 = vadd.xlane.f32.xlu1 %v4624_v6  ;;  %v1295_v58 = vpop.permute.xlu1 %1294 }
 0x509   : >> { %2892 = vmatpush3.bf16.msra.mxu0 %v1293_v17 }
 0x50a   : >> { %2949 = vmatpush3.bf16.msra.mxu1 %v1293_v17  ;;  %2893 = vmatprep.subr.bf16.mxu0 %v1295_v58 }
 0x50b   : >> { %v4629_v8 = vpop.eup %3258  ;;  %2942 = vmatprep.subr.bf16.mxu1 %v1295_v58  ;;  %1232 = vadd.xlane.f32.xlu1 %v4627_v2  ;;  %v1301_v43 = vpop.permute.xlu1 %1300 }
 0x50c   : >> { %1234 = vadd.xlane.f32.xlu0 %v4629_v8  ;;  %v4633_v37 = vpop.eup %3260 }
 0x50d   : >> { %2894 = vmatpush3.bf16.msra.mxu0 %v1295_v58  ;;  %v4635_v15 = vpop.eup %3262 }
 0x50e   : >> { %2950 = vmatpush3.bf16.msra.mxu1 %v1295_v58  ;;  %2895 = vmatprep.subr.bf16.mxu0 %v1297_v30  ;;  %v4639_v35 = vpop.eup %3264 }
 0x50f   : >> { %2943 = vmatprep.subr.bf16.mxu1 %v1297_v30  ;;  %1238 = vadd.xlane.f32.xlu1 %v4633_v37 }
 0x510   : >> { %1244 = vadd.xlane.f32.xlu0 %v4635_v15 }
 0x511   : >> { %2896 = vmatpush3.bf16.msra.mxu0 %v1297_v30 }
 0x512   : >> { %2951 = vmatpush3.bf16.msra.mxu1 %v1297_v30 }
 0x513   : >> { %1240 = vadd.xlane.f32.xlu1 %v4639_v35 }
 0x534   : >> { %v1167_v45 = vpop.xlane.xlu0 %1166 }
 0x535   : >> { %v1183_v51 = vsub.f32 %v4582_v40, %v1167_v45 }
 0x537   : >> { %v1214_v55 = vmul.f32 1.442695, %v1183_v51 }
 0x538   : >> { %v1163_v5 = vpop.xlane.xlu0 %1162 }
 0x539   : >> { %3266 = vpow2.f32 %v1214_v55  ;;  %v1181_v52 = vsub.f32 %v4586_v16, %v1163_v5 }
 0x53b   : >> { %v1210_v56 = vmul.f32 1.442695, %v1181_v52 }
 0x53c   : >> { %v1299_v60 = vpop.permute.xlu0 %1298 }
 0x53d   : >> { %3268 = vpow2.f32 %v1210_v56  ;;  %2897 = vmatprep.subr.bf16.mxu0 %v1299_v60  ;;  %2944 = vmatprep.subr.bf16.mxu1 %v1299_v60 }
 0x53e   : >> { %2898 = vmatpush3.bf16.msra.mxu0 %v1299_v60  ;;  %2952 = vmatpush3.bf16.msra.mxu1 %v1299_v60 }
 0x53f   : >> { %2899 = vmatprep.subr.bf16.mxu0 %v1301_v43  ;;  %2945 = vmatprep.subr.bf16.mxu1 %v1301_v43 }
 0x542   : >> { %2900 = vmatpush3.bf16.msra.mxu0 %v1301_v43  ;;  %2953 = vmatpush3.bf16.msra.mxu1 %v1301_v43 }
 0x543   : >> { %v4644_v28 = vpop.eup %3266 }
 0x544   : >> { %1246 = vadd.xlane.f32.xlu1 %v4644_v28 }
 0x547   : >> { %v4647_v40 = vpop.eup %3268 }
 0x548   : >> { %1242 = vadd.xlane.f32.xlu0 %v4647_v40 }
 0x55e   : >> { %1302 = vrot.lane.b32.xlu0 %v4491_v0, %s3678_s24  ;;  %s3470_s24 = scalar_lea.vmem (%p4733_p6), %s3469_s15, 4096 }
 0x55f   : > { %p3472_p7 = scmp.lt.s32.totalorder (%p4733_p6), %s3470_s24, %s3464_s22 }
 0x561   : > { %p3473_p9 = por (%p4733_p6), %p3472_p7, %p3471_p3 }
 0x563   : > { %p3474_p2 = pnand (%p4733_p6), %p3473_p9, %p3467_p13 }
 0x580   : >> { %v1221_v16 = vpop.xlane.xlu0 %1220 }
 0x581   : >> { %3270 = vrcp.f32 %v1221_v16 }
 0x584   : >> { %v1217_v48 = vpop.xlane.xlu0 %1216 }
 0x588   : >> { %v1229_v23 = vpop.xlane.xlu1 %1228 }
 0x589   : >> { %v1223_v10 = vpop.xlane.xlu0 %1222 }
 0x58a   : >> { %3272 = vrcp.f32 %v1223_v10 }
 0x58b   : >> { %3274 = vrcp.f32 %v1217_v48  ;;  %v3271_v0 = vpop.eup %3270 }
 0x58c   : >> { %v1225_v39 = vpop.xlane.xlu1 %1224  ;;  %v1266_v45 = vmul.f32 %v3271_v0, %v4593_v3 }
 0x58d   : >> { %v1219_v7 = vpop.xlane.xlu0 %1218 }
 0x58e   : >> { %3276 = vrcp.f32 %v1219_v7 }
 0x58f   : >> { %3278 = vrcp.f32 %v1229_v23 }
 0x590   : >> { %v1231_v17 = vpop.xlane.xlu1 %1230 }
 0x591   : >> { %3280 = vrcp.f32 %v1231_v17  ;;  %v1227_v55 = vpop.xlane.xlu0 %1226 }
 0x594   : >> { %v3273_v58 = vpop.eup %3272  ;;  %v1237_v30 = vpop.xlane.xlu1 %1236 }
 0x595   : >> { %v1267_v51 = vmul.f32 %v3273_v58, %v4604_v24  ;;  %v3275_v5 = vpop.eup %3274 }
 0x596   : >> { %v1264_v48 = vmul.f32 %v3275_v5, %v4598_v9 }
 0x597   : >> { %v1281_v52 = vpack.c.bf16 %v1267_v51, %v1266_v45 }
 0x598   : >> { %v3277_v56 = vpop.eup %3276  ;;  %v1233_v60 = vpop.xlane.xlu1 %1232 }
 0x599   : >> { %v3279_v43 = vpop.eup %3278  ;;  %3282 = vrcp.f32 %v1233_v60  ;;  %v1235_v16 = vpop.xlane.xlu0 %1234  ;;  %v1265_v23 = vmul.f32 %v3277_v56, %v4613_v54 }
 0x59a   : >> { %3284 = vrcp.f32 %v1235_v16  ;;  %v1270_v17 = vmul.f32 %v3279_v43, %v4602_v29 }
 0x59b   : >> { %v3281_v10 = vpop.eup %3280  ;;  %v1280_v7 = vpack.c.bf16 %v1265_v23, %v1264_v48  ;;  %v3236_v48 = vld [vmem:[%s4656_s27] sm:$0xff]  }
 0x59c   : >> { %v1271_v3 = vmul.f32 %v3281_v10, %v4618_v57  ;;  %v1239_v9 = vpop.xlane.xlu1 %1238 }
 0x59d   : >> { %2903 = vmatprep.mubr.bf16.mxu0 %v1280_v7  ;;  %3286 = vrcp.f32 %v1239_v9  ;;  %v1245_v29 = vpop.xlane.xlu0 %1244  ;;  %v3237_v7 = vld [vmem:[%s4656_s27 + $0x8] sm:$0xff]   ;;  %s2700_s27 = sshll.u32 (%p4733_p6), %s3754_s13, 11  ;;  %s2456_s13 = scalar_lea.sflag (%p4733_p6), [#allocation4], %s3869_s25 }
 0x59e   : >> { %v1283_v24 = vpack.c.bf16 %v1271_v3, %v1270_v17  ;;  %3288 = vrcp.f32 %v1227_v55  ;;  %s5197_s17 = scalar_lea.hbm (%p4733_p6), %s5255_s9, %s2700_s27 }
 0x59f   : >> { %3290 = vrcp.f32 %v1237_v30 }
 0x5a0   : >> { %v1241_v54 = vpop.xlane.xlu1 %1240  ;;  %3292 = vrcp.f32 %v1225_v39 }
 0x5a3   : >> { %v3283_v0 = vpop.eup %3282 }
 0x5a4   : >> { %v3285_v58 = vpop.eup %3284  ;;  %v1272_v45 = vmul.f32 %v3283_v0, %v4627_v2 }
 0x5a5   : >> { %v1273_v51 = vmul.f32 %v3285_v58, %v4629_v8 }
 0x5a7   : >> { %v1284_v60 = vpack.c.bf16 %v1273_v51, %v1272_v45  ;;  %v3287_v57 = vpop.eup %3286 }
 0x5a8   : >> { %v3289_v43 = vpop.eup %3288  ;;  %v1275_v16 = vmul.f32 %v3287_v57, %v4633_v37 }
 0x5a9   : >> { %2911 = vmatprep.mubr.bf16.mxu1 %v1284_v60  ;;  %v3291_v2 = vpop.eup %3290  ;;  %v1269_v30 = vmul.f32 %v3289_v43, %v4620_v49 }
 0x5aa   : >> { %v3293_v8 = vpop.eup %3292  ;;  %v1274_v39 = vmul.f32 %v3291_v2, %v4624_v6 }
 0x5ab   : >> { %v1268_v23 = vmul.f32 %v3293_v8, %v4611_v22 }
 0x5ac   : >> { %v1285_v10 = vpack.c.bf16 %v1275_v16, %v1274_v39 }
 0x5ad   : >> { %v1282_v3 = vpack.c.bf16 %v1269_v30, %v1268_v23 }
 0x5d1   : >> { %v1247_v5 = vpop.xlane.xlu1 %1246 }
 0x5d2   : >> { %3294 = vrcp.f32 %v1247_v5 }
 0x5d3   : >> { %3296 = vrcp.f32 %v1241_v54 }
 0x5d4   : >> { %3298 = vrcp.f32 %v1245_v29 }
 0x5d5   : >> { %v1243_v56 = vpop.xlane.xlu0 %1242 }
 0x5d6   : >> { %3300 = vrcp.f32 %v1243_v56 }
 0x5d9   : >> { %v1303_v55 = vpop.permute.xlu0 %1302 }
 0x5da   : >> { %2901 = vmatprep.subr.bf16.mxu0 %v1303_v55  ;;  %2946 = vmatprep.subr.bf16.mxu1 %v1303_v55 }
 0x5db   : >> { %2902 = vmatpush3.bf16.msra.mxu0 %v1303_v55  ;;  %2954 = vmatpush3.bf16.msra.mxu1 %v1303_v55 }
 0x5dc   : >> { %2919 = vmatprep.subr.bf16.mxu0 %v3236_v48  ;;  %v3295_v17 = vpop.eup %3294 }
 0x5dd   : >> { %v3297_v0 = vpop.eup %3296  ;;  %v1279_v6 = vmul.f32 %v3295_v17, %v4644_v28 }
 0x5de   : >> { %2904 = vmatmul.mubr.bf16.vlgmr.msra.gmra.mrb[16].mxu0 %v1281_v52  ;;  %2912 = vmatmul.mubr.bf16.vlgmr.msra.gmra.mrb[16].mxu1 %v1285_v10  ;;  %v3299_v37 = vpop.eup %3298  ;;  %v1276_v58 = vmul.f32 %v3297_v0, %v4639_v35 }
 0x5df   : >> { %2907 = vmatprep.mubr.bf16.mxu0 %v1282_v3  ;;  %2920 = vmatpush3.bf16.msra.mxu0 %v3236_v48  ;;  %v1278_v22 = vmul.f32 %v3299_v37, %v4635_v15 }
 0x5e0   : >> { %v3301_v49 = vpop.eup %3300  ;;  %2921 = vmatprep.subr.bf16.mxu0 %v3237_v7 }
 0x5e1   : >> { %v1277_v45 = vmul.f32 %v3301_v49, %v4647_v40  ;;  %v1287_v60 = vpack.c.bf16 %v1279_v6, %v1278_v22 }
 0x5e3   : >> { %v1286_v51 = vpack.c.bf16 %v1277_v45, %v1276_v58  ;;  %2922 = vmatpush3.bf16.msra.mxu0 %v3237_v7 }
 0x5e5   : >> { %2915 = vmatprep.mubr.bf16.mxu1 %v1286_v51 }
 0x5e6   : >> { %2908 = vmatmul.mubr.bf16.gmra.mrb[20].mxu0 %v1283_v24  ;;  %2916 = vmatmul.mubr.bf16.gmra.mrb[20].mxu1 %v1287_v60 }
 0x6b1   : >> { %v2905_v52 = vpop.f32.mrb[16].mxu0  ;;  %v2913_v9 = vpop.f32.mrb[16].mxu1 }
 0x6b2   : >> { %v1346_v54 = vpop.f32.mrb[17].mxu0  ;;  %v1378_v29 = vpop.f32.mrb[17].mxu1 }
 0x6b3   : >> { %v2906_v5 = vpop.f32.mrb[18].mxu0  ;;  %v2914_v57 = vpop.f32.mrb[18].mxu1 }
 0x6b4   : >> { %v1410_v28 = vpack.c.bf16 %v2906_v5, %v2905_v52  ;;  %v1414_v56 = vpack.c.bf16 %v2914_v57, %v2913_v9  ;;  %v1349_v43 = vpop.f32.mrb[19].mxu0  ;;  %v1381_v35 = vpop.f32.mrb[19].mxu1 }
 0x6b5   : >> { %v1409_v2 = vpack.c.bf16 %v1349_v43, %v1346_v54  ;;  %v1413_v40 = vpack.c.bf16 %v1381_v35, %v1378_v29 }
 0x6b7   : >> { %2923 = vmatprep.mubr.msk.bf16.mxu0 %vm990_vm1, %v1409_v2 }
 0x6b8   : >> { %2924 = vmatmul.mubr.msk.bf16.vlgmr.msra.gmra.mrb[24].mxu0 %vm990_vm1, %v1410_v28 }
 0x6b9   : >> { %v2909_v15 = vpop.f32.mrb[20].mxu0  ;;  %v2917_v8 = vpop.f32.mrb[20].mxu1 }
 0x6ba   : >> { %v1362_v24 = vpop.f32.mrb[21].mxu0  ;;  %v1394_v16 = vpop.f32.mrb[21].mxu1 }
 0x6bb   : >> { %v2910_v48 = vpop.f32.mrb[22].mxu0  ;;  %v2918_v55 = vpop.f32.mrb[22].mxu1 }
 0x6bc   : >> { %v1412_v30 = vpack.c.bf16 %v2910_v48, %v2909_v15  ;;  %v1416_v39 = vpack.c.bf16 %v2918_v55, %v2917_v8  ;;  %v1365_v23 = vpop.f32.mrb[23].mxu0  ;;  %v1397_v10 = vpop.f32.mrb[23].mxu1 }
 0x6bd   : >> { %v1411_v7 = vpack.c.bf16 %v1365_v23, %v1362_v24  ;;  %v1415_v17 = vpack.c.bf16 %v1397_v10, %v1394_v16 }
 0x6bf   : >> { %2927 = vmatprep.mubr.msk.bf16.mxu0 %vm990_vm1, %v1411_v7 }
 0x6c0   : >> { %2928 = vmatmul.mubr.msk.bf16.gmra.mrb[28].mxu0 %vm990_vm1, %v1412_v30 }
 0x6c1   : >> { %2931 = vmatprep.mubr.msk.bf16.mxu0 %vm990_vm1, %v1413_v40 }
 0x6c8   : >> { %2932 = vmatmul.mubr.msk.bf16.gmra.mrb[32].mxu0 %vm990_vm1, %v1414_v56 }
 0x6c9   : >> { %2935 = vmatprep.mubr.msk.bf16.mxu0 %vm990_vm1, %v1415_v17 }
 0x6d0   : >> { %2936 = vmatmul.mubr.msk.bf16.gmra.mrb[36].mxu0 %vm990_vm1, %v1416_v39 }
 0x78b   : >> { %v2925_v3 = vpop.f32.mrb[24].mxu0 }
 0x78c   : >> { %v4685_v12 = vadd.f32 %v3658_v12, %v2925_v3   ;;  %v1494_v37 = vpop.f32.mrb[25].mxu0 }
 0x78d   : >> { %v4688_v11 = vadd.f32 %v3666_v11, %v1494_v37   ;;  %v2926_v6 = vpop.f32.mrb[26].mxu0 }
 0x78e   : >> { %v5302_v0 = vmov %v4685_v12  ;;  %v4691_v14 = vadd.f32 %v3654_v14, %v2926_v6   ;;  %v1497_v45 = vpop.f32.mrb[27].mxu0 }
 0x78f   : >> { %v5303_v49 = vmov %v4688_v11  ;;  %v4694_v13 = vadd.f32 %v3662_v13, %v1497_v45   ;;  %1577 = vadd.xlane.f32.xlu1 (%p4733_p6), %v5302_v0 }
 0x790   : >> { %v5304_v58 = vmov %v4691_v14  ;;  %1573 = vadd.xlane.f32.xlu0 (%p4733_p6), %v5303_v49 }
 0x791   : >> { %v5305_v22 = vmov %v4694_v13 }
 0x793   : >> { %v2929_v51 = vpop.f32.mrb[28].mxu0  ;;  %1579 = vadd.xlane.f32.xlu1 (%p4733_p6), %v5304_v58 }
 0x794   : >> { %v4697_v20 = vadd.f32 %v3642_v20, %v2929_v51   ;;  %v1510_v52 = vpop.f32.mrb[29].mxu0  ;;  %1575 = vadd.xlane.f32.xlu0 (%p4733_p6), %v5305_v22 }
 0x795   : >> { %v4700_v18 = vadd.f32 %v3650_v18, %v1510_v52   ;;  %v2930_v12 = vpop.f32.mrb[30].mxu0 }
 0x796   : >> { %v5306_v60 = vmov %v4697_v20  ;;  %v4703_v21 = vadd.f32 %v3638_v21, %v2930_v12   ;;  %v1513_v11 = vpop.f32.mrb[31].mxu0  ;;  %v5332_v12 = vmov %v5302_v0 }
 0x797   : >> { %v5307_v9 = vmov %v4700_v18  ;;  %v4706_v19 = vadd.f32 %v3646_v19, %v1513_v11   ;;  %v5334_v11 = vmov %v5303_v49 }
 0x798   : >> { %v5308_v54 = vmov %v4703_v21  ;;  %1581 = vadd.xlane.f32.xlu0 (%p4733_p6), %v5307_v9 }
 0x799   : >> { %v5309_v29 = vmov %v4706_v19 }
 0x79a   : > { %1583 = vadd.xlane.f32.xlu1 (%p4733_p6), %v5309_v29 }
 0x79b   : >> { %v2933_v14 = vpop.f32.mrb[32].mxu0 }
 0x79c   : >> { %v4709_v27 = vadd.f32 %v3626_v27, %v2933_v14   ;;  %v1526_v13 = vpop.f32.mrb[33].mxu0  ;;  %v5331_v14 = vmov %v5304_v58  ;;  %1585 = vadd.xlane.f32.xlu0 (%p4733_p6), %v5306_v60 }
 0x79d   : >> { %v4712_v25 = vadd.f32 %v3634_v25, %v1526_v13   ;;  %v2934_v20 = vpop.f32.mrb[34].mxu0  ;;  %v5333_v13 = vmov %v5305_v22 }
 0x79e   : >> { %v5310_v5 = vmov %v4709_v27  ;;  %v4715_v31 = vadd.f32 %v3622_v31, %v2934_v20   ;;  %v1529_v18 = vpop.f32.mrb[35].mxu0  ;;  %v5328_v20 = vmov %v5306_v60  ;;  %1587 = vadd.xlane.f32.xlu1 (%p4733_p6), %v5308_v54 }
 0x79f   : >> { %v5311_v57 = vmov %v4712_v25  ;;  %v4718_v26 = vadd.f32 %v3630_v26, %v1529_v18   ;;  %v5330_v18 = vmov %v5307_v9 }
 0x7a0   : >> { %v5312_v28 = vmov %v4715_v31  ;;  %1589 = vadd.xlane.f32.xlu0 (%p4733_p6), %v5311_v57 }
 0x7a1   : >> { %v5313_v56 = vmov %v4718_v26  ;;  %v5323_v31 = vmov %v5312_v28 }
 0x7a2   : >> { %v5325_v26 = vmov %v5313_v56  ;;  %1591 = vadd.xlane.f32.xlu1 (%p4733_p6), %v5313_v56 }
 0x7a3   : >> { %v2937_v21 = vpop.f32.mrb[36].mxu0 }
 0x7a4   : >> { %v4721_v34 = vadd.f32 %v3610_v34, %v2937_v21   ;;  %v1542_v19 = vpop.f32.mrb[37].mxu0  ;;  %v5327_v21 = vmov %v5308_v54  ;;  %768 = sbr.rel (!%p4733_p6) target bundleno = 463 (0x1cf), region = 118  ;;  %1593 = vadd.xlane.f32.xlu0 (%p4733_p6), %v5310_v5 }
 0x7a5   : >> { %v4724_v32 = vadd.f32 %v3618_v32, %v1542_v19   ;;  %v2938_v27 = vpop.f32.mrb[38].mxu0  ;;  %v5329_v19 = vmov %v5309_v29 }
 0x7a6   : >> { %v5314_v43 = vmov %v4721_v34  ;;  %v4727_v36 = vadd.f32 %v3606_v36, %v2938_v27   ;;  %v1545_v25 = vpop.f32.mrb[39].mxu0  ;;  %v5324_v27 = vmov %v5310_v5  ;;  %1595 = vadd.xlane.f32.xlu1 (%p4733_p6), %v5312_v28 }
 0x7a7   : >> { %v5315_v35 = vmov %v4724_v32  ;;  %v4730_v33 = vadd.f32 %v3614_v33, %v1545_v25   ;;  %v5320_v34 = vmov %v5314_v43  ;;  %v5326_v25 = vmov %v5311_v57 }
 0x7a8   : >> { %v5316_v2 = vmov %v4727_v36  ;;  %v5322_v32 = vmov %v5315_v35  ;;  %1597 = vadd.xlane.f32.xlu0 (%p4733_p6), %v5315_v35 }
 0x7a9   : >> { %v5317_v40 = vmov %v4730_v33  ;;  %v5319_v36 = vmov %v5316_v2 }
 0x7aa   : >> { %v5321_v33 = vmov %v5317_v40  ;;  %1599 = vadd.xlane.f32.xlu1 (%p4733_p6), %v5317_v40 }
 0x7ac   : > { %1601 = vadd.xlane.f32.xlu0 %v5314_v43 }
 0x7ae   : > { %1603 = vadd.xlane.f32.xlu1 %v5316_v2 }
 0x81c   : > { %v1578_v31 = vpop.xlane.xlu1 %1577 }
 0x81d   : > { %v1574_v26 = vpop.xlane.xlu0 %1573  ;;  %v1607_v33 = vmul.f32 0.0078125, %v1578_v31 }
 0x81e   : > { %v1605_v32 = vmul.f32 0.0078125, %v1574_v26 }
 0x81f   : > { %v4809_v36 = vsub.f32 %v5302_v0, %v1607_v33 }
 0x820   : > { %v4806_v34 = vsub.f32 %v5303_v49, %v1605_v32  ;;  %v1580_v42 = vpop.xlane.xlu1 %1579 }
 0x821   : > { %v1576_v41 = vpop.xlane.xlu0 %1575  ;;  %v1608_v50 = vmul.f32 0.0078125, %v1580_v42  ;;  %v1639_v59 = vmul.f32 %v4809_v36, %v4809_v36 }
 0x822   : > { %v1606_v47 = vmul.f32 0.0078125, %v1576_v41  ;;  %v1637_v53 = vmul.f32 %v4806_v34, %v4806_v34 }
 0x823   : > { %v4817_v44 = vsub.f32 %v5304_v58, %v1608_v50 }
 0x824   : > { %v4814_v46 = vsub.f32 %v5305_v22, %v1606_v47  ;;  %1653 = vadd.xlane.f32.xlu0 %v1637_v53 }
 0x825   : > { %v1582_v61 = vpop.xlane.xlu0 %1581  ;;  %v1640_v48 = vmul.f32 %v4817_v44, %v4817_v44 }
 0x826   : > { %v1609_v63 = vmul.f32 0.0078125, %v1582_v61  ;;  %v1638_v15 = vmul.f32 %v4814_v46, %v4814_v46 }
 0x827   : > { %v1584_v62 = vpop.xlane.xlu1 %1583 }
 0x828   : > { %v1610_v8 = vmul.f32 0.0078125, %v1584_v62  ;;  %v4824_v24 = vsub.f32 %v5307_v9, %v1609_v63  ;;  %1657 = vadd.xlane.f32.xlu0 %v1639_v59  ;;  %1655 = vadd.xlane.f32.xlu1 %v1638_v15 }
 0x829   : > { %v1586_v55 = vpop.xlane.xlu0 %1585 }
 0x82a   : > { %v4827_v16 = vsub.f32 %v5309_v29, %v1610_v8  ;;  %v1611_v39 = vmul.f32 0.0078125, %v1586_v55  ;;  %v1641_v23 = vmul.f32 %v4824_v24, %v4824_v24  ;;  %v3302_v8 = vld [vmem:[%s5252_s6 + $0x4] ss:$8 sps:$4 sm:$0xff]  }
 0x82b   : > { %v1588_v30 = vpop.xlane.xlu1 %1587  ;;  %2017 = vmatprep.subr.bf16.mxu0 %v3302_v8  ;;  %v3335_v8 = vld [vmem:[#allocation5 + $0x20] sm:$0xff]  }
 0x82c   : > { %v1612_v10 = vmul.f32 0.0078125, %v1588_v30  ;;  %v4834_v7 = vsub.f32 %v5306_v60, %v1611_v39  ;;  %1659 = vadd.xlane.f32.xlu1 %v1640_v48  ;;  %1661 = vadd.xlane.f32.xlu0 %v1641_v23  ;;  %v1642_v3 = vmul.f32 %v4827_v16, %v4827_v16  ;;  %v3304_v39 = vld [vmem:[%s5252_s6] ss:$8 sps:$4 sm:$0xff]  }
 0x82d   : > { %v1590_v37 = vpop.xlane.xlu0 %1589  ;;  %2018 = vmatpush1.bf16.msra.mxu0 %v3304_v39 }
 0x82e   : > { %v4837_v17 = vsub.f32 %v5308_v54, %v1612_v10  ;;  %v1613_v45 = vmul.f32 0.0078125, %v1590_v37  ;;  %v1643_v51 = vmul.f32 %v4834_v7, %v4834_v7  ;;  %v3305_v10 = vld [vmem:[%s5252_s6 + $0x14] ss:$8 sps:$4 sm:$0xff]   ;;  %v3307_v37 = vld [vmem:[%s5252_s6 + $0x10] ss:$8 sps:$4 sm:$0xff]  }
 0x82f   : > { %v1592_v6 = vpop.xlane.xlu1 %1591  ;;  %2019 = vmatprep.subr.bf16.mxu0 %v3305_v10 }
 0x830   : > { %v1614_v52 = vmul.f32 0.0078125, %v1592_v6  ;;  %v4844_v12 = vsub.f32 %v5311_v57, %v1613_v45  ;;  %1663 = vadd.xlane.f32.xlu1 %v1642_v3  ;;  %1665 = vadd.xlane.f32.xlu0 %v1643_v51  ;;  %v1644_v14 = vmul.f32 %v4837_v17, %v4837_v17  ;;  %v3308_v6 = vld [vmem:[%s5252_s6 + $0x24] ss:$8 sps:$4 sm:$0xff]   ;;  %v3310_v45 = vld [vmem:[%s5252_s6 + $0x20] ss:$8 sps:$4 sm:$0xff]  }
 0x831   : > { %v1594_v13 = vpop.xlane.xlu0 %1593  ;;  %2020 = vmatpush1.bf16.msra.mxu0 %v3307_v37  ;;  %v3311_v51 = vld [vmem:[%s5252_s6 + $0x34] ss:$8 sps:$4 sm:$0xff]  }
 0x832   : > { %v4847_v11 = vsub.f32 %v5313_v56, %v1614_v52  ;;  %v1615_v18 = vmul.f32 0.0078125, %v1594_v13  ;;  %v1645_v21 = vmul.f32 %v4844_v12, %v4844_v12  ;;  %2021 = vmatprep.subr.bf16.mxu0 %v3308_v6  ;;  %v3313_v52 = vld [vmem:[%s5252_s6 + $0x30] ss:$8 sps:$4 sm:$0xff]   ;;  %v3316_v13 = vld [vmem:[%s5252_s6 + $0x40] ss:$8 sps:$4 sm:$0xff]  }
 0x833   : > { %v1596_v20 = vpop.xlane.xlu1 %1595 }
 0x834   : > { %v1616_v19 = vmul.f32 0.0078125, %v1596_v20  ;;  %v4854_v27 = vsub.f32 %v5310_v5, %v1615_v18  ;;  %1667 = vadd.xlane.f32.xlu1 %v1644_v14  ;;  %1669 = vadd.xlane.f32.xlu0 %v1645_v21  ;;  %v1646_v26 = vmul.f32 %v4847_v11, %v4847_v11  ;;  %v3314_v14 = vld [vmem:[%s5252_s6 + $0x44] ss:$8 sps:$4 sm:$0xff]   ;;  %v3317_v20 = vld [vmem:[%s5252_s6 + $0x54] ss:$8 sps:$4 sm:$0xff]  }
 0x835   : > { %v1598_v31 = vpop.xlane.xlu0 %1597  ;;  %2022 = vmatpush1.bf16.msra.mxu0 %v3310_v45  ;;  %v3319_v18 = vld [vmem:[%s5252_s6 + $0x50] ss:$8 sps:$4 sm:$0xff]   ;;  %v3320_v21 = vld [vmem:[%s5252_s6 + $0x64] ss:$8 sps:$4 sm:$0xff]  }
 0x836   : > { %v4857_v25 = vsub.f32 %v5312_v28, %v1616_v19  ;;  %v1617_v33 = vmul.f32 0.0078125, %v1598_v31  ;;  %v1647_v41 = vmul.f32 %v4854_v27, %v4854_v27  ;;  %2023 = vmatprep.subr.bf16.mxu0 %v3311_v51  ;;  %v3322_v19 = vld [vmem:[%s5252_s6 + $0x60] ss:$8 sps:$4 sm:$0xff]   ;;  %v3325_v31 = vld [vmem:[%s5252_s6 + $0x70] ss:$8 sps:$4 sm:$0xff]  }
 0x837   : > { %v1600_v32 = vpop.xlane.xlu1 %1599 }
 0x838   : > { %v1618_v42 = vmul.f32 0.0078125, %v1600_v32  ;;  %v4864_v47 = vsub.f32 %v5315_v35, %v1617_v33  ;;  %1671 = vadd.xlane.f32.xlu1 %v1646_v26  ;;  %1673 = vadd.xlane.f32.xlu0 %v1647_v41  ;;  %v1648_v50 = vmul.f32 %v4857_v25, %v4857_v25  ;;  %v3323_v26 = vld [vmem:[%s5252_s6 + $0x74] ss:$8 sps:$4 sm:$0xff]   ;;  %v3679_v32 = vmov 0   ;;  %v3326_v33 = vld [vmem:[#allocation5 + $0x40] sm:$0xff]  }
 0x839   : > { %v1602_v59 = vpop.xlane.xlu0 %1601  ;;  %2024 = vmatpush1.bf16.msra.mxu0 %v3313_v52  ;;  %2049 = vmatprep.mubr.bf16.mxu0 %v3679_v32  ;;  %v3327_v41 = vld [vmem:[#allocation5] sm:$0xff]  }
 0x83a   : > { %v4867_v53 = vsub.f32 %v5317_v40, %v1618_v42  ;;  %v1619_v62 = vmul.f32 0.0078125, %v1602_v59  ;;  %v1649_v63 = vmul.f32 %v4864_v47, %v4864_v47  ;;  %2025 = vmatprep.subr.bf16.mxu0 %v3314_v14  ;;  %v3328_v42 = vld [vmem:[#allocation5 + $0x48] sm:$0xff]   ;;  %2759 = vmatprep.subr.bf16.mxu1 %v3326_v33  ;;  %v3330_v59 = vld [vmem:[#allocation5 + $0x50] sm:$0xff]  }
 0x83b   : > { %v1604_v61 = vpop.xlane.xlu1 %1603  ;;  %2760 = vmatpush3.bf16.msra.mxu1 %v3327_v41 }
 0x83c   : > { %v1620_v15 = vmul.f32 0.0078125, %v1604_v61  ;;  %v4877_v48 = vsub.f32 %v5314_v43, %v1619_v62  ;;  %1675 = vadd.xlane.f32.xlu1 %v1648_v50  ;;  %1677 = vadd.xlane.f32.xlu0 %v1649_v63  ;;  %v1650_v30 = vmul.f32 %v4867_v53, %v4867_v53  ;;  %v3329_v50 = vld [vmem:[#allocation5 + $0x8] sm:$0xff]   ;;  %v3331_v61 = vld [vmem:[#allocation5 + $0x10] sm:$0xff]   ;;  %v3332_v62 = vld [vmem:[#allocation5 + $0x58] sm:$0xff]  }
 0x83d   : > { %2026 = vmatpush1.bf16.msra.mxu0 %v3316_v13  ;;  %2761 = vmatprep.subr.bf16.mxu1 %v3328_v42  ;;  %v3333_v63 = vld [vmem:[#allocation5 + $0x18] sm:$0xff]  }
 0x83e   : > { %v4880_v55 = vsub.f32 %v5316_v2, %v1620_v15  ;;  %v1651_v23 = vmul.f32 %v4877_v48, %v4877_v48  ;;  %2027 = vmatprep.subr.bf16.mxu0 %v3317_v20  ;;  %v3334_v15 = vld [vmem:[#allocation5 + $0x60] sm:$0xff]  }
 0x83f   : > { %2762 = vmatpush3.bf16.msra.mxu1 %v3329_v50 }
 0x840   : > { %1679 = vadd.xlane.f32.xlu1 %v1650_v30  ;;  %1681 = vadd.xlane.f32.xlu0 %v1651_v23  ;;  %v1652_v3 = vmul.f32 %v4880_v55, %v4880_v55  ;;  %v3336_v30 = vld [vmem:[#allocation5 + $0x68] sm:$0xff]  }
 0x841   : > { %2028 = vmatpush1.bf16.msra.mxu0 %v3319_v18  ;;  %2763 = vmatprep.subr.bf16.mxu1 %v3330_v59 }
 0x842   : > { %2029 = vmatprep.subr.bf16.mxu0 %v3320_v21 }
 0x843   : > { %2764 = vmatpush3.bf16.msra.mxu1 %v3331_v61 }
 0x844   : > { %1683 = vadd.xlane.f32.xlu1 %v1652_v3  ;;  %2765 = vmatprep.subr.bf16.mxu1 %v3332_v62 }
 0x845   : > { %2030 = vmatpush1.bf16.msra.mxu0 %v3322_v19 }
 0x846   : > { %2031 = vmatprep.subr.bf16.mxu0 %v3323_v26 }
 0x847   : > { %2766 = vmatpush3.bf16.msra.mxu1 %v3333_v63 }
 0x848   : > { %2767 = vmatprep.subr.bf16.mxu1 %v3334_v15 }
 0x849   : > { %2032 = vmatpush1.bf16.msra.mxu0 %v3325_v31 }
 0x84b   : > { %2768 = vmatpush3.bf16.msra.mxu1 %v3335_v8 }
 0x84c   : > { %2769 = vmatprep.subr.bf16.mxu1 %v3336_v30 }
 0x8b1   : > { %v1654_v39 = vpop.xlane.xlu0 %1653 }
 0x8b2   : > { %v1685_v23 = vmul.f32 0.007874016, %v1654_v39 }
 0x8b4   : > { %3342 = vrsqrt.f32 %v1685_v23  ;;  %vm1703_vm2 = vcmp.eq.f32.partialorder %v1685_v23, inf  ;;  %v1706_v19 = vand.u32 2147483648, %v1685_v23  ;;  %vm1705_vm3 = vcmp.eq.f32.partialorder %v1685_v23, 0.0 }
 0x8b5   : > { %v1656_v10 = vpop.xlane.xlu1 %1655  ;;  %v1658_v3 = vpop.xlane.xlu0 %1657 }
 0x8b6   : > { %v1686_v37 = vmul.f32 0.007874016, %v1656_v10  ;;  %v1687_v6 = vmul.f32 0.007874016, %v1658_v3 }
 0x8b8   : > { %3344 = vrsqrt.f32 %v1686_v37  ;;  %vm1710_vm4 = vcmp.eq.f32.partialorder %v1686_v37, inf  ;;  %v1713_v61 = vand.u32 2147483648, %v1686_v37  ;;  %vm1712_vm5 = vcmp.eq.f32.partialorder %v1686_v37, 0.0 }
 0x8b9   : > { %v1660_v45 = vpop.xlane.xlu1 %1659  ;;  %v1662_v51 = vpop.xlane.xlu0 %1661  ;;  %3346 = vrsqrt.f32 %v1687_v6  ;;  %vm1717_vm6 = vcmp.eq.f32.partialorder %v1687_v6, inf  ;;  %vm1719_vm8 = vcmp.eq.f32.partialorder %v1687_v6, 0.0 }
 0x8ba   : > { %v4934_v52 = vmul.f32 0.007874016, %v1660_v45  ;;  %v4936_v14 = vmul.f32 0.007874016, %v1662_v51 }
 0x8bc   : > { %3348 = vrsqrt.f32 %v4934_v52  ;;  %vm1731_vm7 = vcmp.eq.f32.partialorder %v4936_v14, inf  ;;  %vm1724_vm9 = vcmp.eq.f32.partialorder %v4934_v52, inf  ;;  %vm1733_vm10 = vcmp.eq.f32.partialorder %v4936_v14, 0.0 }
 0x8bd   : > { %v1664_v13 = vpop.xlane.xlu1 %1663  ;;  %3350 = vrsqrt.f32 %v4936_v14  ;;  %v1666_v31 = vpop.xlane.xlu0 %1665  ;;  %vm1726_vm12 = vcmp.eq.f32.partialorder %v4934_v52, 0.0 }
 0x8be   : > { %v3343_v20 = vpop.eup %3342  ;;  %v4938_v18 = vmul.f32 0.007874016, %v1664_v13  ;;  %v4945_v62 = vmul.f32 0.007874016, %v1666_v31  ;;  %v1720_v31 = vand.u32 2147483648, %v1687_v6 }
 0x8bf   : > { %v1702_v21 = vmul.f32 %v3343_v20, %v1685_v23 }
 0x8c0   : > { %3352 = vrsqrt.f32 %v4938_v18  ;;  %vm1738_vm11 = vcmp.eq.f32.partialorder %v4938_v18, inf  ;;  %vm1740_vm13 = vcmp.eq.f32.partialorder %v4938_v18, 0.0  ;;  %vm1745_vm15 = vcmp.eq.f32.partialorder %v4945_v62, inf }
 0x8c1   : > { %v1704_v26 = vsel %vm1703_vm2, %v1685_v23, %v1702_v21  ;;  %v1668_v33 = vpop.xlane.xlu1 %1667  ;;  %v1670_v51 = vpop.xlane.xlu0 %1669  ;;  %vm1747_vm1 = vcmp.eq.f32.partialorder %v4945_v62, 0.0 }
 0x8c2   : > { %v3345_v41 = vpop.eup %3344  ;;  %v1707_v42 = vsel %vm1705_vm3, %v1706_v19, %v1704_v26  ;;  %v4943_v59 = vmul.f32 0.007874016, %v1668_v33  ;;  %v4953_v26 = vmul.f32 0.007874016, %v1670_v51 }
 0x8c3   : > { %v1709_v50 = vmul.f32 %v3345_v41, %v1686_v37  ;;  %v1813_v63 = vadd.f32 1e-06, %v1707_v42  ;;  %v3347_v8 = vpop.eup %3346  ;;  %v1863_v42 = vsub.s32 2, %v3883_v1 }
 0x8c4   : > { %3354 = vrsqrt.f32 %v4943_v59  ;;  %v1716_v3 = vmul.f32 %v3347_v8, %v1687_v6  ;;  %vm1752_vm14 = vcmp.eq.f32.partialorder %v4943_v59, inf  ;;  %vm1754_vm0 = vcmp.eq.f32.partialorder %v4943_v59, 0.0 }
 0x8c5   : > { %v1711_v15 = vsel %vm1710_vm4, %v1686_v37, %v1709_v50  ;;  %3356 = vrsqrt.f32 %v4945_v62  ;;  %v1672_v39 = vpop.xlane.xlu1 %1671  ;;  %vm1759_vm3 = vcmp.eq.f32.partialorder %v4953_v26, inf }
 0x8c6   : > { %v1714_v30 = vsel %vm1712_vm5, %v1713_v61, %v1711_v15  ;;  %v3349_v23 = vpop.eup %3348  ;;  %3358 = vrcp.f32 %v1813_v63  ;;  %v4949_v20 = vmul.f32 0.007874016, %v1672_v39  ;;  %v1718_v37 = vsel %vm1717_vm6, %v1687_v6, %v1716_v3 }
 0x8c7   : > { %v1814_v10 = vadd.f32 1e-06, %v1714_v30  ;;  %v3351_v45 = vpop.eup %3350  ;;  %v1723_v21 = vmul.f32 %v3349_v23, %v4934_v52  ;;  %v1721_v50 = vsel %vm1719_vm8, %v1720_v31, %v1718_v37  ;;  %v1727_v63 = vand.u32 2147483648, %v4934_v52  ;;  %v1674_v23 = vpop.xlane.xlu0 %1673 }
 0x8c8   : > { %v1730_v19 = vmul.f32 %v3351_v45, %v4936_v14  ;;  %v1734_v15 = vand.u32 2147483648, %v4936_v14  ;;  %v1815_v45 = vadd.f32 1e-06, %v1721_v50  ;;  %v4975_v37 = vrot.slane %v3895_v4, %v1863_v42 }
 0x8c9   : > { %3360 = vrcp.f32 %v1814_v10  ;;  %v1676_v41 = vpop.xlane.xlu1 %1675  ;;  %v1725_v61 = vsel %vm1724_vm9, %v4934_v52, %v1723_v21  ;;  %v4978_v52 = vmul.f32 0.007874016, %v1674_v23  ;;  %v1883_v31 = vsub.s32 3, %v3883_v1 }
 0x8ca   : > { %v3353_v13 = vpop.eup %3352  ;;  %3362 = vrsqrt.f32 %v4949_v20  ;;  %v1732_v30 = vsel %vm1731_vm7, %v4936_v14, %v1730_v19  ;;  %v4969_v10 = vmul.f32 0.007874016, %v1676_v41  ;;  %v1728_v51 = vsel %vm1726_vm12, %v1727_v63, %v1725_v61 }
 0x8cb   : > { %v1737_v33 = vmul.f32 %v3353_v13, %v4938_v18  ;;  %3364 = vrsqrt.f32 %v4953_v26  ;;  %v1741_v13 = vand.u32 2147483648, %v4938_v18  ;;  %v1735_v21 = vsel %vm1733_vm10, %v1734_v15, %v1732_v30 }
 0x8cc   : > { %3366 = vrsqrt.f32 %v4969_v10  ;;  %v1817_v61 = vadd.f32 1e-06, %v1735_v21  ;;  %v1755_v42 = vand.u32 2147483648, %v4943_v59  ;;  %vm1766_vm2 = vcmp.eq.f32.partialorder %v4949_v20, inf }
 0x8cd   : > { %v1739_v39 = vsel %vm1738_vm11, %v4938_v18, %v1737_v33  ;;  %v1816_v33 = vadd.f32 1e-06, %v1728_v51  ;;  %3368 = vrcp.f32 %v1815_v45  ;;  %vm1768_vm4 = vcmp.eq.f32.partialorder %v4949_v20, 0.0 }
 0x8ce   : > { %v3355_v8 = vpop.eup %3354  ;;  %v1742_v19 = vsel %vm1740_vm13, %v1741_v13, %v1739_v39  ;;  %3370 = vrsqrt.f32 %v4978_v52  ;;  %v4992_v39 = vrot.slane %v3895_v4, %v1883_v31  ;;  %vm1761_vm5 = vcmp.eq.f32.partialorder %v4953_v26, 0.0 }
 0x8cf   : > { %v3357_v6 = vpop.eup %3356  ;;  %v1751_v14 = vmul.f32 %v3355_v8, %v4943_v59  ;;  %v1818_v63 = vadd.f32 1e-06, %v1742_v19  ;;  %v1680_v8 = vpop.xlane.xlu1 %1679  ;;  %3372 = vrcp.f32 %v1816_v33  ;;  %vm1780_vm6 = vcmp.eq.f32.partialorder %v4969_v10, inf }
 0x8d0   : > { %v3359_v3 = vpop.eup %3358  ;;  %v1744_v41 = vmul.f32 %v3357_v6, %v4945_v62  ;;  %v1748_v6 = vand.u32 2147483648, %v4945_v62  ;;  %v4997_v13 = vmul.f32 0.007874016, %v1680_v8  ;;  %3374 = vrcp.f32 %v1817_v61 }
 0x8d1   : > { %v1845_v50 = vmul.f32 %v3359_v3, %v4806_v34  ;;  %v1753_v15 = vsel %vm1752_vm14, %v4943_v59, %v1751_v14  ;;  %v1678_v3 = vpop.xlane.xlu0 %1677  ;;  %3376 = vrcp.f32 %v1818_v63  ;;  %vm1773_vm7 = vcmp.eq.f32.partialorder %v4978_v52, inf }
 0x8d2   : > { %v1746_v23 = vsel %vm1745_vm15, %v4945_v62, %v1744_v41  ;;  %v1756_v51 = vsel %vm1754_vm0, %v1755_v42, %v1753_v15  ;;  %v5002_v19 = vmul.f32 0.007874016, %v1678_v3  ;;  %3378 = vrsqrt.f32 %v4997_v13 }
 0x8d3   : > { %v3361_v18 = vpop.eup %3360  ;;  %v1865_v45 = vmul.f32 %v4975_v37, %v1845_v50  ;;  %v1749_v14 = vsel %vm1747_vm1, %v1748_v6, %v1746_v23  ;;  %v1820_v33 = vadd.f32 1e-06, %v1756_v51  ;;  %v1769_v50 = vand.u32 2147483648, %v4949_v20  ;;  %v1684_v15 = vpop.xlane.xlu1 %1683 }
 0x8d4   : > { %v3363_v30 = vpop.eup %3362  ;;  %v1846_v34 = vmul.f32 %v3361_v18, %v4814_v46  ;;  %v1819_v42 = vadd.f32 1e-06, %v1749_v14  ;;  %3380 = vrsqrt.f32 %v5002_v19  ;;  %vm1782_vm8 = vcmp.eq.f32.partialorder %v4969_v10, 0.0 }
 0x8d5   : > { %v3365_v59 = vpop.eup %3364  ;;  %v1765_v46 = vmul.f32 %v3363_v30, %v4949_v20  ;;  %v1885_v62 = vadd.f32 %v4992_v39, %v1865_v45  ;;  %v1762_v30 = vand.u32 2147483648, %v4953_v26  ;;  %v1682_v6 = vpop.xlane.xlu0 %1681  ;;  %3382 = vrcp.f32 %v1820_v33 }
 0x8d6   : > { %v1866_v21 = vmul.f32 %v4975_v37, %v1846_v34  ;;  %v1758_v41 = vmul.f32 %v3365_v59, %v4953_v26  ;;  %v3367_v61 = vpop.eup %3366  ;;  %3384 = vrcp.f32 %v1819_v42  ;;  %v1776_v42 = vand.u32 2147483648, %v4978_v52 }
 0x8d7   : > { %v1767_v63 = vsel %vm1766_vm2, %v4949_v20, %v1765_v46  ;;  %v3369_v8 = vpop.eup %3368  ;;  %v5018_v20 = vmul.f32 0.007874016, %v1684_v15  ;;  %v1779_v51 = vmul.f32 %v3367_v61, %v4969_v10  ;;  %vm1775_vm9 = vcmp.eq.f32.partialorder %v4978_v52, 0.0 }
 0x8d8   : > { %v1886_v31 = vadd.f32 %v4992_v39, %v1866_v21  ;;  %v1760_v34 = vsel %vm1759_vm3, %v4953_v26, %v1758_v41  ;;  %v1847_v23 = vmul.f32 %v3369_v8, %v4809_v36  ;;  %v3371_v3 = vpop.eup %3370  ;;  %v1770_v45 = vsel %vm1768_vm4, %v1769_v50, %v1767_v63 }
 0x8d9   : > { %v3373_v59 = vpop.eup %3372  ;;  %v5021_v21 = vmul.f32 0.007874016, %v1682_v6  ;;  %v1763_v14 = vsel %vm1761_vm5, %v1762_v30, %v1760_v34  ;;  %v1772_v33 = vmul.f32 %v3371_v3, %v4978_v52  ;;  %v1783_v41 = vand.u32 2147483648, %v4969_v10 }
 0x8da   : > { %v1901_v18 = vpack.c.bf16 %v1886_v31, %v1885_v62  ;;  %v3375_v46 = vpop.eup %3374  ;;  %v1848_v26 = vmul.f32 %v3373_v59, %v4817_v44  ;;  %v1867_v62 = vmul.f32 %v4975_v37, %v1847_v23  ;;  %v1822_v31 = vadd.f32 1e-06, %v1770_v45 }
 0x8db   : > { %v3377_v36 = vpop.eup %3376  ;;  %3386 = vrsqrt.f32 %v5018_v20  ;;  %v1821_v61 = vadd.f32 1e-06, %v1763_v14  ;;  %v1781_v44 = vsel %vm1780_vm6, %v4969_v10, %v1779_v51  ;;  %v1849_v30 = vmul.f32 %v3375_v46, %v4824_v24 }
 0x8dc   : > { %2050 = vmatmul.mubr.bf16.vlgmr.msra.gmra.mrb[0].mxu0 %v1901_v18  ;;  %v1868_v50 = vmul.f32 %v4975_v37, %v1848_v26  ;;  %v1850_v18 = vmul.f32 %v3377_v36, %v4827_v16  ;;  %v3379_v63 = vpop.eup %3378  ;;  %3388 = vrsqrt.f32 %v5021_v21  ;;  %v1887_v15 = vadd.f32 %v4992_v39, %v1867_v62 }
 0x8dd   : > { %2059 = vmatprep.mubr.bf16.mxu0 %v3679_v32  ;;  %v1774_v6 = vsel %vm1773_vm7, %v4978_v52, %v1772_v33  ;;  %3390 = vrcp.f32 %v1822_v31  ;;  %v1784_v34 = vsel %vm1782_vm8, %v1783_v41, %v1781_v44  ;;  %v1793_v45 = vmul.f32 %v3379_v63, %v4997_v13 }
 0x8de   : > { %v1888_v8 = vadd.f32 %v4992_v39, %v1868_v50  ;;  %v3381_v16 = vpop.eup %3380  ;;  %v1870_v3 = vmul.f32 %v4975_v37, %v1850_v18  ;;  %3392 = vrcp.f32 %v1821_v61  ;;  %v1777_v59 = vsel %vm1775_vm9, %v1776_v42, %v1774_v6 }
 0x8df   : > { %v3383_v10 = vpop.eup %3382  ;;  %vm1794_vm10 = vcmp.eq.f32.partialorder %v4997_v13, inf  ;;  %v1869_v24 = vmul.f32 %v4975_v37, %v1849_v30  ;;  %v1824_v46 = vadd.f32 1e-06, %v1784_v34  ;;  %v1786_v52 = vmul.f32 %v3381_v16, %v5002_v19 }
 0x8e0   : > { %v1902_v23 = vpack.c.bf16 %v1888_v8, %v1887_v15  ;;  %v3385_v51 = vpop.eup %3384  ;;  %vm1787_vm11 = vcmp.eq.f32.partialorder %v5002_v19, inf  ;;  %v1797_v14 = vand.u32 2147483648, %v4997_v13  ;;  %v1890_v26 = vadd.f32 %v4992_v39, %v1870_v3 }
 0x8e1   : > { %v1852_v62 = vmul.f32 %v3383_v10, %v4837_v17  ;;  %v1823_v36 = vadd.f32 1e-06, %v1777_v59  ;;  %v1795_v31 = vsel %vm1794_vm10, %v4997_v13, %v1793_v45  ;;  %vm1796_vm12 = vcmp.eq.f32.partialorder %v4997_v13, 0.0 }
 0x8e2   : > { %v1790_v41 = vand.u32 2147483648, %v5002_v19  ;;  %v1889_v50 = vadd.f32 %v4992_v39, %v1869_v24  ;;  %v1851_v18 = vmul.f32 %v3385_v51, %v4834_v7  ;;  %v1788_v61 = vsel %vm1787_vm11, %v5002_v19, %v1786_v52 }
 0x8e3   : > { %vm1789_vm13 = vcmp.eq.f32.partialorder %v5002_v19, 0.0  ;;  %3394 = vrcp.f32 %v1824_v46  ;;  %v1798_v44 = vsel %vm1796_vm12, %v1797_v14, %v1795_v31  ;;  %v1872_v63 = vmul.f32 %v4975_v37, %v1852_v62 }
 0x8e4   : > { %2060 = vmatmul.mubr.bf16.gmra.mrb[4].mxu0 %v1902_v23  ;;  %v1903_v17 = vpack.c.bf16 %v1890_v26, %v1889_v50  ;;  %3396 = vrcp.f32 %v1823_v36  ;;  %v1791_v8 = vsel %vm1789_vm13, %v1790_v41, %v1788_v61  ;;  %vm1808_vm14 = vcmp.eq.f32.partialorder %v5018_v20, inf }
 0x8e5   : > { %2069 = vmatprep.mubr.bf16.mxu0 %v3679_v32  ;;  %v3387_v33 = vpop.eup %3386  ;;  %v1871_v7 = vmul.f32 %v4975_v37, %v1851_v18  ;;  %v1826_v6 = vadd.f32 1e-06, %v1798_v44  ;;  %vm1801_vm15 = vcmp.eq.f32.partialorder %v5021_v21, inf  ;;  %v1811_v16 = vand.u32 2147483648, %v5018_v20 }
 0x8e6   : > { %v3389_v42 = vpop.eup %3388  ;;  %v1807_v13 = vmul.f32 %v3387_v33, %v5018_v20  ;;  %v1892_v34 = vadd.f32 %v4992_v39, %v1872_v63  ;;  %v1825_v3 = vadd.f32 1e-06, %v1791_v8  ;;  %vm1810_vm0 = vcmp.eq.f32.partialorder %v5018_v20, 0.0 }
 0x8e7   : > { %v3391_v15 = vpop.eup %3390  ;;  %v1800_v19 = vmul.f32 %v3389_v42, %v5021_v21  ;;  %v1804_v45 = vand.u32 2147483648, %v5021_v21  ;;  %v1891_v59 = vadd.f32 %v4992_v39, %v1871_v7  ;;  %vm1803_vm1 = vcmp.eq.f32.partialorder %v5021_v21, 0.0 }
 0x8e8   : > { %v3393_v30 = vpop.eup %3392  ;;  %v1854_v23 = vmul.f32 %v3391_v15, %v4847_v11  ;;  %v1809_v10 = vsel %vm1808_vm14, %v5018_v20, %v1807_v13  ;;  %3398 = vrcp.f32 %v1826_v6 }
 0x8e9   : > { %v1853_v24 = vmul.f32 %v3393_v30, %v4844_v12  ;;  %v1802_v51 = vsel %vm1801_vm15, %v5021_v21, %v1800_v19  ;;  %v1812_v46 = vsel %vm1810_vm0, %v1811_v16, %v1809_v10  ;;  %v1904_v52 = vpack.c.bf16 %v1892_v34, %v1891_v59  ;;  %v3337_v59 = vld [vmem:[#allocation5 + $0x28] sm:$0xff]  }
 0x8ea   : > { %v1874_v11 = vmul.f32 %v4975_v37, %v1854_v23  ;;  %3400 = vrcp.f32 %v1825_v3  ;;  %v1805_v26 = vsel %vm1803_vm1, %v1804_v45, %v1802_v51  ;;  %v1828_v36 = vadd.f32 1e-06, %v1812_v46  ;;  %2770 = vmatpush3.bf16.msra.mxu1 %v3337_v59  ;;  %v3340_v51 = vld [vmem:[#allocation5 + $0x78] sm:$0xff]  }
 0x8eb   : > { %v1873_v20 = vmul.f32 %v4975_v37, %v1853_v24  ;;  %v1827_v21 = vadd.f32 1e-06, %v1805_v26  ;;  %v3339_v24 = vld [vmem:[#allocation5 + $0x30] sm:$0xff]  }
 0x8ec   : > { %2070 = vmatmul.mubr.bf16.gmra.mrb[8].mxu0 %v1903_v17  ;;  %v1894_v12 = vadd.f32 %v4992_v39, %v1874_v11  ;;  %3402 = vrcp.f32 %v1828_v36 }
 0x8ed   : > { %2079 = vmatprep.mubr.bf16.mxu0 %v3679_v32  ;;  %v3395_v14 = vpop.eup %3394  ;;  %v1893_v33 = vadd.f32 %v4992_v39, %v1873_v20  ;;  %3404 = vrcp.f32 %v1827_v21 }
 0x8ee   : > { %v3397_v62 = vpop.eup %3396  ;;  %v1856_v31 = vmul.f32 %v3395_v14, %v4857_v25 }
 0x8ef   : > { %v1855_v41 = vmul.f32 %v3397_v62, %v4854_v27  ;;  %v1905_v50 = vpack.c.bf16 %v1894_v12, %v1893_v33 }
 0x8f0   : > { %v1876_v18 = vmul.f32 %v4975_v37, %v1856_v31 }
 0x8f1   : > { %v1875_v42 = vmul.f32 %v4975_v37, %v1855_v41 }
 0x8f2   : > { %v3399_v61 = vpop.eup %3398  ;;  %v1896_v17 = vadd.f32 %v4992_v39, %v1876_v18 }
 0x8f3   : > { %v1858_v25 = vmul.f32 %v3399_v61, %v4867_v53  ;;  %v1895_v63 = vadd.f32 %v4992_v39, %v1875_v42 }
 0x8f4   : > { %2080 = vmatmul.mubr.bf16.gmra.mrb[12].mxu0 %v1904_v52  ;;  %v3401_v44 = vpop.eup %3400 }
 0x8f5   : > { %2089 = vmatprep.mubr.bf16.mxu0 %v3679_v32  ;;  %v1857_v27 = vmul.f32 %v3401_v44, %v4864_v47  ;;  %v1906_v15 = vpack.c.bf16 %v1896_v17, %v1895_v63  ;;  %v1878_v13 = vmul.f32 %v4975_v37, %v1858_v25 }
 0x8f6   : > { %v3403_v8 = vpop.eup %3402 }
 0x8f7   : > { %v1877_v7 = vmul.f32 %v4975_v37, %v1857_v27  ;;  %v3405_v30 = vpop.eup %3404  ;;  %v1898_v6 = vadd.f32 %v4992_v39, %v1878_v13  ;;  %v1860_v19 = vmul.f32 %v3403_v8, %v4880_v55  ;;  %v3338_v55 = vld [vmem:[#allocation5 + $0x70] sm:$0xff]  }
 0x8f8   : > { %v1859_v16 = vmul.f32 %v3405_v30, %v4877_v48  ;;  %2771 = vmatprep.subr.bf16.mxu1 %v3338_v55  ;;  %v3341_v48 = vld [vmem:[#allocation5 + $0x38] sm:$0xff]  }
 0x8f9   : > { %v1897_v53 = vadd.f32 %v4992_v39, %v1877_v7  ;;  %v1880_v47 = vmul.f32 %v4975_v37, %v1860_v19  ;;  %2772 = vmatpush3.bf16.msra.mxu1 %v3339_v24 }
 0x8fa   : > { %v1879_v23 = vmul.f32 %v4975_v37, %v1859_v16  ;;  %2773 = vmatprep.subr.bf16.mxu1 %v3340_v51 }
 0x8fb   : > { %v1907_v34 = vpack.c.bf16 %v1898_v6, %v1897_v53  ;;  %v1900_v3 = vadd.f32 %v4992_v39, %v1880_v47 }
 0x8fc   : > { %2090 = vmatmul.mubr.bf16.gmra.mrb[16].mxu0 %v1905_v50  ;;  %v1899_v10 = vadd.f32 %v4992_v39, %v1879_v23  ;;  %v5335_v39 = vsub.s32 1, %v3883_v1 }
 0x8fd   : > { %2099 = vmatprep.mubr.bf16.mxu0 %v3679_v32  ;;  %2774 = vmatpush3.bf16.msra.mxu1 %v3341_v48 }
 0x8fe   : > { %v1908_v45 = vpack.c.bf16 %v1900_v3, %v1899_v10 }
 0x904   : > { %2100 = vmatmul.mubr.bf16.gmra.mrb[20].mxu0 %v1906_v15 }
 0x905   : > { %2109 = vmatprep.mubr.bf16.mxu0 %v3679_v32 }
 0x90c   : > { %2110 = vmatmul.mubr.bf16.gmra.mrb[24].mxu0 %v1907_v34 }
 0x90d   : > { %2119 = vmatprep.mubr.bf16.mxu0 %v3679_v32  ;;  %v1925_v32 = vld [vmem:[%s5253_s7] sm:$0x3] }
 0x90e   : > { %v5105_v37 = vrot.slane %v1925_v32, %v3996_v38  ;;  %v5109_v46 = vrot.slane %v1925_v32, %v5335_v39 }
 0x914   : > { %2120 = vmatmul.mubr.bf16.gmra.mrb[28].mxu0 %v1908_v45 }
 0x9af   : > { %v2051_v52 = vpop.f32.mrb[0].mxu0 }
 0x9b0   : > { %v2052_v11 = vadd.f32 %v2051_v52, %v5105_v37  ;;  %v2053_v14 = vpop.f32.mrb[1].mxu0 }
 0x9b1   : > { %v2054_v26 = vadd.f32 %v2053_v14, %v5109_v46  ;;  %v2055_v20 = vpop.f32.mrb[2].mxu0 }
 0x9b2   : > { %v2056_v62 = vadd.f32 %v2055_v20, %v5105_v37  ;;  %v2057_v36 = vpop.f32.mrb[3].mxu0  ;;  %v2130_v31 = vmax.f32 %v2052_v11, 0.0 }
 0x9b3   : > { %v2058_v12 = vadd.f32 %v2057_v36, %v5109_v46  ;;  %v2131_v38 = vmax.f32 %v2054_v26, 0.0 }
 0x9b4   : > { %v2132_v21 = vmax.f32 %v2056_v62, 0.0 }
 0x9b5   : > { %v2133_v33 = vmax.f32 %v2058_v12, 0.0 }
 0x9b6   : > { %v2162_v41 = vpack.c.bf16 %v2132_v21, %v2130_v31 }
 0x9b7   : > { %v2163_v50 = vpack.c.bf16 %v2133_v33, %v2131_v38  ;;  %v2061_v18 = vpop.f32.mrb[4].mxu0 }
 0x9b8   : > { %v2062_v61 = vadd.f32 %v2061_v18, %v5105_v37  ;;  %v2063_v42 = vpop.f32.mrb[5].mxu0 }
 0x9b9   : > { %2338 = vmatprep.mubr.bf16.mxu1 %v2163_v50  ;;  %v2064_v44 = vadd.f32 %v2063_v42, %v5109_v46  ;;  %v2065_v17 = vpop.f32.mrb[6].mxu0 }
 0x9ba   : > { %2339 = vmatmul.mubr.bf16.vlgmr.msra.gmra.mrb[0].mxu1 %v2162_v41  ;;  %v2066_v25 = vadd.f32 %v2065_v17, %v5105_v37  ;;  %v2067_v63 = vpop.f32.mrb[7].mxu0  ;;  %v2134_v15 = vmax.f32 %v2062_v61, 0.0 }
 0x9bb   : > { %v2068_v27 = vadd.f32 %v2067_v63, %v5109_v46  ;;  %v2135_v8 = vmax.f32 %v2064_v44, 0.0 }
 0x9bc   : > { %v2136_v13 = vmax.f32 %v2066_v25, 0.0 }
 0x9bd   : > { %v2137_v7 = vmax.f32 %v2068_v27, 0.0 }
 0x9be   : > { %v2164_v30 = vpack.c.bf16 %v2136_v13, %v2134_v15 }
 0x9bf   : > { %v2165_v6 = vpack.c.bf16 %v2137_v7, %v2135_v8  ;;  %v2071_v19 = vpop.f32.mrb[8].mxu0 }
 0x9c0   : > { %v2072_v53 = vadd.f32 %v2071_v19, %v5105_v37  ;;  %v2073_v16 = vpop.f32.mrb[9].mxu0 }
 0x9c1   : > { %v2074_v34 = vadd.f32 %v2073_v16, %v5109_v46  ;;  %v2075_v47 = vpop.f32.mrb[10].mxu0  ;;  %2346 = vmatprep.mubr.bf16.mxu1 %v2165_v6 }
 0x9c2   : > { %v2076_v23 = vadd.f32 %v2075_v47, %v5105_v37  ;;  %v2077_v3 = vpop.f32.mrb[11].mxu0  ;;  %2347 = vmatmul.mubr.bf16.gmra.mrb[4].mxu1 %v2164_v30  ;;  %v2138_v45 = vmax.f32 %v2072_v53, 0.0 }
 0x9c3   : > { %v2078_v10 = vadd.f32 %v2077_v3, %v5109_v46  ;;  %v2139_v55 = vmax.f32 %v2074_v34, 0.0 }
 0x9c4   : > { %v2140_v59 = vmax.f32 %v2076_v23, 0.0 }
 0x9c5   : > { %v2141_v24 = vmax.f32 %v2078_v10, 0.0 }
 0x9c6   : > { %v2166_v51 = vpack.c.bf16 %v2140_v59, %v2138_v45 }
 0x9c7   : > { %v2167_v48 = vpack.c.bf16 %v2141_v24, %v2139_v55  ;;  %v2081_v32 = vpop.f32.mrb[12].mxu0 }
 0x9c8   : > { %v2082_v39 = vadd.f32 %v2081_v32, %v5105_v37  ;;  %v2083_v52 = vpop.f32.mrb[13].mxu0 }
 0x9c9   : > { %v2084_v11 = vadd.f32 %v2083_v52, %v5109_v46  ;;  %v2085_v14 = vpop.f32.mrb[14].mxu0  ;;  %2354 = vmatprep.mubr.bf16.mxu1 %v2167_v48 }
 0x9ca   : > { %v2086_v26 = vadd.f32 %v2085_v14, %v5105_v37  ;;  %v2087_v20 = vpop.f32.mrb[15].mxu0  ;;  %2355 = vmatmul.mubr.bf16.gmra.mrb[8].mxu1 %v2166_v51  ;;  %v2142_v36 = vmax.f32 %v2082_v39, 0.0 }
 0x9cb   : > { %v2088_v62 = vadd.f32 %v2087_v20, %v5109_v46  ;;  %v2143_v31 = vmax.f32 %v2084_v11, 0.0 }
 0x9cc   : > { %v2144_v12 = vmax.f32 %v2086_v26, 0.0 }
 0x9cd   : > { %v2145_v21 = vmax.f32 %v2088_v62, 0.0 }
 0x9ce   : > { %v2168_v38 = vpack.c.bf16 %v2144_v12, %v2142_v36 }
 0x9cf   : > { %v2169_v33 = vpack.c.bf16 %v2145_v21, %v2143_v31  ;;  %v2091_v41 = vpop.f32.mrb[16].mxu0 }
 0x9d0   : > { %v2092_v50 = vadd.f32 %v2091_v41, %v5105_v37  ;;  %v2093_v18 = vpop.f32.mrb[17].mxu0 }
 0x9d1   : > { %v2094_v61 = vadd.f32 %v2093_v18, %v5109_v46  ;;  %v2095_v42 = vpop.f32.mrb[18].mxu0  ;;  %2362 = vmatprep.mubr.bf16.mxu1 %v2169_v33 }
 0x9d2   : > { %v2096_v44 = vadd.f32 %v2095_v42, %v5105_v37  ;;  %v2097_v17 = vpop.f32.mrb[19].mxu0  ;;  %2363 = vmatmul.mubr.bf16.gmra.mrb[12].mxu1 %v2168_v38  ;;  %v2146_v63 = vmax.f32 %v2092_v50, 0.0 }
 0x9d3   : > { %v2098_v25 = vadd.f32 %v2097_v17, %v5109_v46  ;;  %v2147_v15 = vmax.f32 %v2094_v61, 0.0 }
 0x9d4   : > { %v2148_v27 = vmax.f32 %v2096_v44, 0.0 }
 0x9d5   : > { %v2149_v13 = vmax.f32 %v2098_v25, 0.0 }
 0x9d6   : > { %v2170_v8 = vpack.c.bf16 %v2148_v27, %v2146_v63 }
 0x9d7   : > { %v2171_v7 = vpack.c.bf16 %v2149_v13, %v2147_v15  ;;  %v2101_v30 = vpop.f32.mrb[20].mxu0 }
 0x9d8   : > { %v2102_v6 = vadd.f32 %v2101_v30, %v5105_v37  ;;  %v2103_v19 = vpop.f32.mrb[21].mxu0 }
 0x9d9   : > { %v2104_v53 = vadd.f32 %v2103_v19, %v5109_v46  ;;  %v2105_v16 = vpop.f32.mrb[22].mxu0  ;;  %2370 = vmatprep.mubr.bf16.mxu1 %v2171_v7 }
 0x9da   : > { %v2106_v34 = vadd.f32 %v2105_v16, %v5105_v37  ;;  %v2107_v47 = vpop.f32.mrb[23].mxu0  ;;  %2371 = vmatmul.mubr.bf16.gmra.mrb[16].mxu1 %v2170_v8  ;;  %v2150_v3 = vmax.f32 %v2102_v6, 0.0  ;;  %v2421_v8 = vsub.s32 5, %v3883_v1 }
 0x9db   : > { %v2108_v23 = vadd.f32 %v2107_v47, %v5109_v46  ;;  %v2151_v45 = vmax.f32 %v2104_v53, 0.0 }
 0x9dc   : > { %v2152_v10 = vmax.f32 %v2106_v34, 0.0 }
 0x9dd   : > { %v2153_v59 = vmax.f32 %v2108_v23, 0.0 }
 0x9de   : > { %v2172_v55 = vpack.c.bf16 %v2152_v10, %v2150_v3 }
 0x9df   : > { %v2173_v24 = vpack.c.bf16 %v2153_v59, %v2151_v45  ;;  %v2111_v51 = vpop.f32.mrb[24].mxu0 }
 0x9e0   : > { %v2112_v48 = vadd.f32 %v2111_v51, %v5105_v37  ;;  %v2113_v32 = vpop.f32.mrb[25].mxu0 }
 0x9e1   : > { %v2114_v39 = vadd.f32 %v2113_v32, %v5109_v46  ;;  %v2115_v52 = vpop.f32.mrb[26].mxu0  ;;  %2378 = vmatprep.mubr.bf16.mxu1 %v2173_v24 }
 0x9e2   : > { %v2116_v11 = vadd.f32 %v2115_v52, %v5105_v37  ;;  %v2117_v14 = vpop.f32.mrb[27].mxu0  ;;  %2379 = vmatmul.mubr.bf16.gmra.mrb[20].mxu1 %v2172_v55  ;;  %v2154_v20 = vmax.f32 %v2112_v48, 0.0 }
 0x9e3   : > { %v2118_v26 = vadd.f32 %v2117_v14, %v5109_v46  ;;  %v2155_v36 = vmax.f32 %v2114_v39, 0.0 }
 0x9e4   : > { %v2156_v62 = vmax.f32 %v2116_v11, 0.0 }
 0x9e5   : > { %v2157_v12 = vmax.f32 %v2118_v26, 0.0 }
 0x9e6   : > { %v2174_v31 = vpack.c.bf16 %v2156_v62, %v2154_v20 }
 0x9e7   : > { %v2175_v21 = vpack.c.bf16 %v2157_v12, %v2155_v36  ;;  %v2121_v38 = vpop.f32.mrb[28].mxu0 }
 0x9e8   : > { %v2122_v33 = vadd.f32 %v2121_v38, %v5105_v37  ;;  %v2123_v41 = vpop.f32.mrb[29].mxu0 }
 0x9e9   : > { %v2124_v50 = vadd.f32 %v2123_v41, %v5109_v46  ;;  %v2125_v18 = vpop.f32.mrb[30].mxu0  ;;  %2386 = vmatprep.mubr.bf16.mxu1 %v2175_v21 }
 0x9ea   : > { %v2126_v61 = vadd.f32 %v2125_v18, %v5105_v37  ;;  %v2127_v42 = vpop.f32.mrb[31].mxu0  ;;  %2387 = vmatmul.mubr.bf16.gmra.mrb[24].mxu1 %v2174_v31  ;;  %v2158_v17 = vmax.f32 %v2122_v33, 0.0  ;;  %v5145_v37 = vrot.slane %v3895_v4, %v2421_v8 }
 0x9eb   : > { %v2128_v44 = vadd.f32 %v2127_v42, %v5109_v46  ;;  %v2159_v63 = vmax.f32 %v2124_v50, 0.0 }
 0x9ec   : > { %v2160_v25 = vmax.f32 %v2126_v61, 0.0 }
 0x9ed   : > { %v2161_v27 = vmax.f32 %v2128_v44, 0.0 }
 0x9ee   : > { %v2176_v15 = vpack.c.bf16 %v2160_v25, %v2158_v17 }
 0x9ef   : > { %v2177_v13 = vpack.c.bf16 %v2161_v27, %v2159_v63 }
 0x9f1   : > { %2394 = vmatprep.mubr.bf16.mxu1 %v2177_v13 }
 0x9f2   : > { %2395 = vmatmul.mubr.bf16.gmra.mrb[28].mxu1 %v2176_v15 }
 0xa8d   : > { %v2775_v7 = vpop.f32.mrb[0].mxu1 }
 0xa8e   : > { %v2776_v30 = vpop.f32.mrb[1].mxu1 }
 0xa8f   : > { %v2777_v6 = vadd.f32 %v2776_v30, %v2775_v7  ;;  %v2778_v19 = vpop.f32.mrb[2].mxu1 }
 0xa90   : > { %v2779_v46 = vpop.f32.mrb[3].mxu1 }
 0xa91   : > { %v2403_v53 = vadd.f32 %v2777_v6, %v5303_v49  ;;  %v2780_v16 = vadd.f32 %v2779_v46, %v2778_v19 }
 0xa93   : > { %v2423_v34 = vadd.f32 %v5145_v37, %v2403_v53  ;;  %v2404_v47 = vadd.f32 %v2780_v16, %v5305_v22 }
 0xa95   : > { %2439 = vst [vmem:[%s4334_s19] sm:$0xff] %v2423_v34  ;;  %v2424_v1 = vadd.f32 %v5145_v37, %v2404_v47  ;;  %v2781_v23 = vpop.f32.mrb[4].mxu1 }
 0xa96   : > { %v2782_v3 = vpop.f32.mrb[5].mxu1 }
 0xa97   : > { %2440 = vst [vmem:[%s4334_s19 + $0x8] sm:$0xff] %v2424_v1  ;;  %v2783_v10 = vadd.f32 %v2782_v3, %v2781_v23  ;;  %v2784_v4 = vpop.f32.mrb[6].mxu1 }
 0xa98   : > { %v2785_v45 = vpop.f32.mrb[7].mxu1 }
 0xa99   : > { %v2405_v59 = vadd.f32 %v2783_v10, %v5302_v0  ;;  %v2786_v49 = vadd.f32 %v2785_v45, %v2784_v4 }
 0xa9b   : > { %v2425_v55 = vadd.f32 %v5145_v37, %v2405_v59  ;;  %v2406_v24 = vadd.f32 %v2786_v49, %v5304_v58 }
 0xa9d   : > { %2441 = vst [vmem:[%s4334_s19 + $0x10] sm:$0xff] %v2425_v55  ;;  %v2426_v22 = vadd.f32 %v5145_v37, %v2406_v24  ;;  %v2787_v51 = vpop.f32.mrb[8].mxu1 }
 0xa9e   : > { %v2788_v48 = vpop.f32.mrb[9].mxu1 }
 0xa9f   : > { %2442 = vst [vmem:[%s4334_s19 + $0x18] sm:$0xff] %v2426_v22  ;;  %v2789_v32 = vadd.f32 %v2788_v48, %v2787_v51  ;;  %v2790_v39 = vpop.f32.mrb[10].mxu1 }
 0xaa0   : > { %v2791_v52 = vpop.f32.mrb[11].mxu1 }
 0xaa1   : > { %v2407_v11 = vadd.f32 %v2789_v32, %v5307_v9  ;;  %v2792_v0 = vadd.f32 %v2791_v52, %v2790_v39 }
 0xaa3   : > { %v2427_v14 = vadd.f32 %v5145_v37, %v2407_v11  ;;  %v2408_v26 = vadd.f32 %v2792_v0, %v5309_v29 }
 0xaa5   : > { %2443 = vst [vmem:[%s4334_s19 + $0x20] sm:$0xff] %v2427_v14  ;;  %v2428_v58 = vadd.f32 %v5145_v37, %v2408_v26  ;;  %v2793_v20 = vpop.f32.mrb[12].mxu1 }
 0xaa6   : > { %v2794_v62 = vpop.f32.mrb[13].mxu1 }
 0xaa7   : > { %2444 = vst [vmem:[%s4334_s19 + $0x28] sm:$0xff] %v2428_v58  ;;  %v2795_v36 = vadd.f32 %v2794_v62, %v2793_v20  ;;  %v2796_v12 = vpop.f32.mrb[14].mxu1 }
 0xaa8   : > { %v2797_v31 = vpop.f32.mrb[15].mxu1 }
 0xaa9   : > { %v2409_v21 = vadd.f32 %v2795_v36, %v5306_v60  ;;  %v2798_v9 = vadd.f32 %v2797_v31, %v2796_v12 }
 0xaab   : > { %v2429_v38 = vadd.f32 %v5145_v37, %v2409_v21  ;;  %v2410_v33 = vadd.f32 %v2798_v9, %v5308_v54 }
 0xaad   : > { %2445 = vst [vmem:[%s4334_s19 + $0x30] sm:$0xff] %v2429_v38  ;;  %v2430_v29 = vadd.f32 %v5145_v37, %v2410_v33  ;;  %v2799_v41 = vpop.f32.mrb[16].mxu1 }
 0xaae   : > { %v2800_v50 = vpop.f32.mrb[17].mxu1 }
 0xaaf   : > { %2446 = vst [vmem:[%s4334_s19 + $0x38] sm:$0xff] %v2430_v29  ;;  %v2801_v18 = vadd.f32 %v2800_v50, %v2799_v41  ;;  %v2802_v61 = vpop.f32.mrb[18].mxu1 }
 0xab0   : > { %v2803_v42 = vpop.f32.mrb[19].mxu1 }
 0xab1   : > { %v2411_v44 = vadd.f32 %v2801_v18, %v5311_v57  ;;  %v2804_v60 = vadd.f32 %v2803_v42, %v2802_v61 }
 0xab3   : > { %v2431_v17 = vadd.f32 %v5145_v37, %v2411_v44  ;;  %v2412_v25 = vadd.f32 %v2804_v60, %v5313_v56 }
 0xab5   : > { %2447 = vst [vmem:[%s4334_s19 + $0x40] sm:$0xff] %v2431_v17  ;;  %v2432_v54 = vadd.f32 %v5145_v37, %v2412_v25  ;;  %v2805_v63 = vpop.f32.mrb[20].mxu1 }
 0xab6   : > { %v2806_v27 = vpop.f32.mrb[21].mxu1 }
 0xab7   : > { %2448 = vst [vmem:[%s4334_s19 + $0x48] sm:$0xff] %v2432_v54  ;;  %v2807_v15 = vadd.f32 %v2806_v27, %v2805_v63  ;;  %v2808_v13 = vpop.f32.mrb[22].mxu1 }
 0xab8   : > { %v2809_v8 = vpop.f32.mrb[23].mxu1 }
 0xab9   : > { %v2413_v7 = vadd.f32 %v2807_v15, %v5310_v5  ;;  %v2810_v57 = vadd.f32 %v2809_v8, %v2808_v13 }
 0xabb   : > { %v2433_v30 = vadd.f32 %v5145_v37, %v2413_v7  ;;  %v2414_v6 = vadd.f32 %v2810_v57, %v5312_v28 }
 0xabd   : > { %2449 = vst [vmem:[%s4334_s19 + $0x50] sm:$0xff] %v2433_v30  ;;  %v2434_v56 = vadd.f32 %v5145_v37, %v2414_v6  ;;  %v2811_v19 = vpop.f32.mrb[24].mxu1 }
 0xabe   : > { %v2812_v46 = vpop.f32.mrb[25].mxu1 }
 0xabf   : > { %2450 = vst [vmem:[%s4334_s19 + $0x58] sm:$0xff] %v2434_v56  ;;  %v2813_v53 = vadd.f32 %v2812_v46, %v2811_v19  ;;  %v2814_v16 = vpop.f32.mrb[26].mxu1 }
 0xac0   : > { %v2815_v34 = vpop.f32.mrb[27].mxu1 }
 0xac1   : > { %v2415_v5 = vadd.f32 %v2813_v53, %v5315_v35  ;;  %v2816_v47 = vadd.f32 %v2815_v34, %v2814_v16 }
 0xac3   : > { %v2435_v1 = vadd.f32 %v5145_v37, %v2415_v5  ;;  %v2416_v23 = vadd.f32 %v2816_v47, %v5317_v40 }
 0xac5   : > { %2451 = vst [vmem:[%s4334_s19 + $0x60] sm:$0xff] %v2435_v1  ;;  %v2436_v28 = vadd.f32 %v5145_v37, %v2416_v23  ;;  %v2817_v3 = vpop.f32.mrb[28].mxu1 }
 0xac6   : > { %v2818_v10 = vpop.f32.mrb[29].mxu1 }
 0xac7   : > { %2452 = vst [vmem:[%s4334_s19 + $0x68] sm:$0xff] %v2436_v28  ;;  %v2819_v4 = vadd.f32 %v2818_v10, %v2817_v3  ;;  %v2820_v45 = vpop.f32.mrb[30].mxu1 }
 0xac8   : > { %v2821_v59 = vpop.f32.mrb[31].mxu1 }
 0xac9   : > { %v2417_v35 = vadd.f32 %v2819_v4, %v5314_v43  ;;  %v2822_v49 = vadd.f32 %v2821_v59, %v2820_v45 }
 0xacb   : > { %v2437_v40 = vadd.f32 %v5145_v37, %v2417_v35  ;;  %v2418_v55 = vadd.f32 %v2822_v49, %v5316_v2 }
 0xacd   : > { %2453 = vst [vmem:[%s4334_s19 + $0x70] sm:$0xff] %v2437_v40  ;;  %v2438_v43 = vadd.f32 %v5145_v37, %v2418_v55 }
 0xacf   : > { %2454 = vst [vmem:[%s4334_s19 + $0x78] sm:$0xff] %v2438_v43 }
 0xad0   : > { %3477 = shalt.err (!%p3474_p2)
}
 0xad1   : > { %s3478_s19 = scalar_lea.hbm %s5197_s17, 2048  ;;  %s3482_s26 = scalar_lea.hbm %s5255_s9, 4096 }
 0xad2   : > { %p3479_p5 = scmp.ne.s32.totalorder %s5197_s17, %s3478_s19  ;;  %p3483_p11 = scmp.lt.u32.totalorder %s5197_s17, %s5255_s9 }
 0xad3   : > { %p3484_p4 = scmp.lt.u32.totalorder %s3482_s26, %s3478_s19  ;;  %p3486_p8 = scmp.lt.u32.totalorder %s3478_s19, %s5197_s17 }
 0xad4   : > { %p3480_p0 = pnand %p3479_p5, %p3824_p12 }
 0xad5   : > { %p3485_p6 = por %p3484_p4, %p3483_p11 }
 0xad6   : > { %p3481_p1 = pneg %p3480_p0 }
 0xad7   : > { %p3487_p10 = por %p3486_p8, %p3485_p6 }
 0xad9   : > { %p3488_p13 = pnand %p3487_p10, %p3481_p1 }
 0xadb   : > { %3491 = shalt.err (!%p3488_p13)
}
 0xadc   : > { %s3681_s16 = smov 128   ;;  %s3682_s22 = smov 8  }
 0xadd   : > { %2969 = dma.vmem_to_hbm [thread:$0]  (%p3824_p12), %s5199_s18, 2048, %s5197_s17, %s2456_s13, %s3681_s16, %s3681_s16, %s3682_s22  }
 0xade PF: > { %s5336_s23 = sld [smem:[#allocation11_spill]]  ;;  %s2484_s15 = sand.u32 1, %s3590_s30  }
 0xadf   : > { %p5338_p7 = scmp.ge.s32.totalorder %s3602_s12, 2  ;;  %s2485_s24 = scalar_lea.sflag [#allocation4], %s2484_s15 }
 0xae4   : > { %p5337_p3 = scmp.ne.s32.totalorder %s5336_s23, 0 }
 0xae6   : > { %p2980_p9 = pnand %p5338_p7, %p5337_p3 }
 0xae8   : > { %3585 = dma.done.wait (!%p2980_p9), %s2485_s24, 2048  }
 0xae9   : > { %3587 = vsyncadd (!%p2980_p9), %s2485_s24, 4294965248  ;;  %s5339_s12 = sld [smem:[#allocation12_spill]]  ;;  %s5340_s30 = smov %s3594_s10 }
 0xaea   : > { %s5341_s10 = smov %s3598_s11  ;;  %s5342_s11 = smov %s3820_s28 }
 0xaef   : > { %p23_p2 = scmp.ge.s32.totalorder %s5339_s12, 4  }
 0xaf1   :  { %25 = sbr.rel (!%p23_p2) target bundleno = 6 (0x6), region = 129 }
 0xaf8   :  { %2490 = vsyncpa [#allocation3], 1 }
 0xaf9   :  { %2492 = vsyncpa [#allocation3 + $0x1], 1 }
 0xafa   :  { %2493 = vsyncpa [#allocation6], 1 }
 0xafb   :  { %2494 = vsyncpa [#allocation4], 1 }
 0xafc   :  { %2496 = vsyncpa [#allocation4 + $0x1], 1 }

</bundles_post_ra>
